<compile_context>
chip_gen: v7x
topology: tpu7x:2x2x1
jax: 0.10.0
libtpu: 0.0.40
codegen_flags: <defaults>
</compile_context>

<pallas_src>
import functools

import jax
import jax.numpy as jnp
from jax.experimental import pallas as pl
from jax.experimental.pallas import tpu as pltpu

EPS = 1e-5          # nn.BatchNorm2d default eps
SLOPE = 0.1         # LeakyReLU negative_slope
LANE = 128          # TPU lane width

# Tile preferences (multiples of 128 -> valid on v5e's 4x128^2 MXU and v6e/v7x's 2x256^2;
# small enough to double-buffer inside v7x's 64 MiB VMEM with wide margins).
TM_MM, TN_MM, TK_MM = 256, 256, 256
TM_BN = 256


def _round_up(n, m):
    return ((n + m - 1) // m) * m


def _tile_and_pad(dim, preferred, align):
    """Pick a tile size (multiple of `align`) and the padded extent it divides."""
    if dim <= preferred:
        t = _round_up(dim, align)
        return t, t
    t = _round_up(preferred, align)
    return t, _round_up(dim, t)


def _pad2(x, rows, cols):
    r, c = x.shape
    if r == rows and c == cols:
        return x
    return jnp.pad(x, ((0, rows - r), (0, cols - c)))


def _pad_last(x, c_target):
    c = x.shape[-1]
    if c == c_target:
        return x
    pad = [(0, 0)] * (x.ndim - 1) + [(0, c_target - c)]
    return jnp.pad(x, pad)


def _pad_vec(v, n):
    return jnp.pad(v, (0, n - v.shape[0]))


# ----------------------------- Pallas kernels ------------------------------

def matmul_kernel(a_ref, w_ref, o_ref, acc_ref):
    """o = a @ w, tiled over (M, N, K) with an fp32 VMEM accumulator."""
    @pl.when(pl.program_id(2) == 0)
    def _init():
        acc_ref[...] = jnp.zeros_like(acc_ref)

    acc_ref[...] += jnp.dot(a_ref[...], w_ref[...],
                            preferred_element_type=jnp.float32)

    @pl.when(pl.program_id(2) == pl.num_programs(2) - 1)
    def _done():
        o_ref[...] = acc_ref[...].astype(o_ref.dtype)


def matmul_add_kernel(a_ref, w_ref, r_ref, o_ref, acc_ref):
    """o = a @ w + r (conv2 with fused residual add; r added once, on the last K step)."""
    @pl.when(pl.program_id(2) == 0)
    def _init():
        acc_ref[...] = jnp.zeros_like(acc_ref)

    acc_ref[...] += jnp.dot(a_ref[...], w_ref[...],
                            preferred_element_type=jnp.float32)

    @pl.when(pl.program_id(2) == pl.num_programs(2) - 1)
    def _done():
        o_ref[...] = (acc_ref[...] + r_ref[...].astype(jnp.float32)).astype(o_ref.dtype)


def bn_stats_kernel(x_ref, sum_ref, sq_ref):
    """Per-channel sum and sum-of-squares, accumulated across the M grid axis.

    The (1, C) outputs keep the same block index for every grid step, so they stay
    resident in VMEM (accumulator pattern); zero rows from padding contribute nothing.
    """
    @pl.when(pl.program_id(0) == 0)
    def _init():
        sum_ref[...] = jnp.zeros_like(sum_ref)
        sq_ref[...] = jnp.zeros_like(sq_ref)

    x = x_ref[...].astype(jnp.float32)
    sum_ref[...] += jnp.sum(x, axis=0, keepdims=True)
    sq_ref[...] += jnp.sum(x * x, axis=0, keepdims=True)


def bn_apply_kernel(x_ref, sum_ref, sq_ref, g_ref, b_ref, o_ref, *, inv_m):
    """Apply BN (biased batch variance, like PyTorch training forward) + LeakyReLU(0.1).

    Epilogue math stays in fp32 (v5e has no bf16 VPU/EUP)."""
    mean = sum_ref[...] * inv_m
    var = jnp.maximum(sq_ref[...] * inv_m - mean * mean, 0.0)
    scale = g_ref[...] * jax.lax.rsqrt(var + EPS)
    shift = b_ref[...] - mean * scale
    y = x_ref[...].astype(jnp.float32) * scale + shift
    o_ref[...] = jnp.where(y >= 0.0, y, SLOPE * y).astype(o_ref.dtype)


# ----------------------------- kernel wrappers ------------------------------

def _tiled_matmul(a, w, residual=None, *, out_dtype=jnp.float32,
                  compute_dtype=jnp.float32):
    """(M,K) @ (K,N) [+ residual], zero-padded to tile multiples, MXU-tiled."""
    M, K = a.shape
    _, N = w.shape
    tm, Mp = _tile_and_pad(M, TM_MM, 16)    # 16-aligned sublane: valid for bf16 and fp32
    tk, Kp = _tile_and_pad(K, TK_MM, 128)
    tn, Np = _tile_and_pad(N, TN_MM, 128)

    a_p = _pad2(a.astype(compute_dtype), Mp, Kp)
    w_p = _pad2(w.astype(compute_dtype), Kp, Np)

    grid = (Mp // tm, Np // tn, Kp // tk)   # K (reduction) innermost
    out_spec = pl.BlockSpec((tm, tn), lambda i, j, k: (i, j))
    scratch = [pltpu.VMEM((tm, tn), jnp.float32)]
    cparams = pltpu.CompilerParams(
        dimension_semantics=("parallel", "parallel", "arbitrary"))

    if residual is None:
        out = pl.pallas_call(
            matmul_kernel,
            out_shape=jax.ShapeDtypeStruct((Mp, Np), out_dtype),
            grid_spec=pltpu.PrefetchScalarGridSpec(
                num_scalar_prefetch=0, grid=grid,
                in_specs=[pl.BlockSpec((tm, tk), lambda i, j, k: (i, k)),
                          pl.BlockSpec((tk, tn), lambda i, j, k: (k, j))],
                out_specs=out_spec,
                scratch_shapes=scratch),
            compiler_params=cparams,
        )(a_p, w_p)
    else:
        r_p = _pad2(residual.astype(jnp.float32), Mp, Np)
        out = pl.pallas_call(
            matmul_add_kernel,
            out_shape=jax.ShapeDtypeStruct((Mp, Np), out_dtype),
            grid_spec=pltpu.PrefetchScalarGridSpec(
                num_scalar_prefetch=0, grid=grid,
                in_specs=[pl.BlockSpec((tm, tk), lambda i, j, k: (i, k)),
                          pl.BlockSpec((tk, tn), lambda i, j, k: (k, j)),
                          # residual block index independent of k -> DMA'd once per tile
                          pl.BlockSpec((tm, tn), lambda i, j, k: (i, j))],
                out_specs=out_spec,
                scratch_shapes=scratch),
            compiler_params=cparams,
        )(a_p, w_p, r_p)
    return out[:M, :N]


def bn_lrelu(x_nhwc, gamma_1c, beta_1c):
    """Fused BatchNorm2d (training-mode batch stats) + LeakyReLU, tiled over rows.

    x_nhwc is channel-padded NHWC; gamma/beta are (1, Cp) (zero in padded channels)."""
    N, H, W, Cp = x_nhwc.shape
    M = N * H * W
    x2 = x_nhwc.reshape(M, Cp)
    tm, Mp = _tile_and_pad(M, TM_BN, 8)
    if Mp != M:
        x2 = jnp.pad(x2, ((0, Mp - M), (0, 0)))
    grid = (Mp // tm,)
    row_spec = pl.BlockSpec((tm, Cp), lambda i: (i, 0))
    vec_spec = pl.BlockSpec((1, Cp), lambda i: (0, 0))

    # Pass 1: per-channel sum / sum-of-squares (reduction accumulated in resident output).
    s_sum, s_sq = pl.pallas_call(
        bn_stats_kernel,
        out_shape=(jax.ShapeDtypeStruct((1, Cp), jnp.float32),
                   jax.ShapeDtypeStruct((1, Cp), jnp.float32)),
        grid_spec=pltpu.PrefetchScalarGridSpec(
            num_scalar_prefetch=0, grid=grid,
            in_specs=[row_spec],
            out_specs=[vec_spec, vec_spec]),
        compiler_params=pltpu.CompilerParams(dimension_semantics=("arbitrary",)),
    )(x2)

    # Pass 2: normalize + affine + LeakyReLU (rows are independent -> "parallel").
    out2 = pl.pallas_call(
        functools.partial(bn_apply_kernel, inv_m=1.0 / float(M)),
        out_shape=jax.ShapeDtypeStruct((Mp, Cp), jnp.float32),
        grid_spec=pltpu.PrefetchScalarGridSpec(
            num_scalar_prefetch=0, grid=grid,
            in_specs=[row_spec, vec_spec, vec_spec, vec_spec, vec_spec],
            out_specs=row_spec),
        compiler_params=pltpu.CompilerParams(dimension_semantics=("parallel",)),
    )(x2, s_sum, s_sq, gamma_1c, beta_1c)

    return out2[:M].reshape(N, H, W, Cp)


def _im2col(x_nhwc, ksize, stride, pad, patch_dtype):
    # Plain-JAX glue: (kh, kw, cin)-ordered patches for im2col conv, emitted directly in
    # the matmul compute dtype (bf16 on v6e/v7x) to halve the materialized HBM bytes.
    # TODO(synk): fully eliminate the HBM im2col by gridding the conv over the 9 taps
    # with halo'd shifted input windows (manual-DMA / Element-offset BlockSpecs).
    N, H, W, C = x_nhwc.shape
    xp = jnp.pad(x_nhwc, ((0, 0), (pad, pad), (pad, pad), (0, 0)))
    Ho = (H + 2 * pad - ksize) // stride + 1
    Wo = (W + 2 * pad - ksize) // stride + 1
    cols = []
    for kh in range(ksize):
        for kw in range(ksize):
            cols.append(xp[:, kh:kh + stride * Ho:stride, kw:kw + stride * Wo:stride, :])
    patches = jnp.concatenate(cols, axis=-1).reshape(
        N * Ho * Wo, ksize * ksize * C).astype(patch_dtype)
    return patches, (N, Ho, Wo)


def conv3x3(x_nhwc, wmat, stride, residual_nhwc=None, *, compute_dtype=jnp.float32):
    """3x3 conv (pad=1) on channel-padded NHWC via im2col + tiled MXU matmul."""
    cout_p = wmat.shape[1]
    patches, (N, Ho, Wo) = _im2col(x_nhwc, 3, stride, 1, compute_dtype)
    M = N * Ho * Wo
    r2 = residual_nhwc.reshape(M, cout_p) if residual_nhwc is not None else None
    out2 = _tiled_matmul(patches, wmat, residual=r2, compute_dtype=compute_dtype)
    return out2.reshape(N, Ho, Wo, cout_p)


def conv1x1(x_nhwc, wmat, stride, *, compute_dtype=jnp.float32):
    """1x1 strided shortcut conv on channel-padded NHWC."""
    # TODO(synk): fold the stride into the matmul's index_map / strided pl.ds load
    # instead of materializing this subsampled copy.
    xs = x_nhwc[:, ::stride, ::stride, :]
    N, Ho, Wo, Cp = xs.shape
    out2 = _tiled_matmul(xs.reshape(N * Ho * Wo, Cp), wmat, compute_dtype=compute_dtype)
    return out2.reshape(N, Ho, Wo, wmat.shape[1])


# ----------------------------- weight packing -------------------------------

def _pack_conv3x3_w(w_oihw, cin_p, cout_p):
    co, ci, kh, kw = w_oihw.shape
    w = jnp.transpose(w_oihw, (2, 3, 1, 0))                       # (kh, kw, Cin, Cout)
    w = jnp.pad(w, ((0, 0), (0, 0), (0, cin_p - ci), (0, cout_p - co)))
    return w.reshape(kh * kw * cin_p, cout_p)                     # rows ordered (kh,kw,c)


def _pack_conv1x1_w(w_oihw, cin_p, cout_p):
    co, ci = w_oihw.shape[:2]
    w = w_oihw.reshape(co, ci).T                                  # (Cin, Cout)
    return jnp.pad(w, ((0, cin_p - ci), (0, cout_p - co)))


# ----------------------------- BasicBlock forward ---------------------------

def basic_block_forward(x_nchw, params, *, stride, equal_in_out,
                        activate_before_residual, drop_rate=0.0,
                        compute_dtype=jnp.float32):
    """Pallas implementation of BasicBlock.forward (training-mode BN)."""
    # TODO(synk): F.dropout (droprate > 0) not implemented; module default dropRate=0.0.
    assert drop_rate == 0.0

    x = jnp.transpose(x_nchw, (0, 2, 3, 1)).astype(jnp.float32)   # NCHW -> NHWC
    cin = x.shape[-1]
    cout = params["w_conv1"].shape[0]
    cin_p = _round_up(cin, LANE)
    cout_p = _round_up(cout, LANE)

    xp = _pad_last(x, cin_p)
    g1 = _pad_vec(params["gamma1"], cin_p).reshape(1, cin_p)
    b1 = _pad_vec(params["beta1"], cin_p).reshape(1, cin_p)
    g2 = _pad_vec(params["gamma2"], cout_p).reshape(1, cout_p)
    b2 = _pad_vec(params["beta2"], cout_p).reshape(1, cout_p)
    w1 = _pack_conv3x3_w(params["w_conv1"], cin_p, cout_p)
    w2 = _pack_conv3x3_w(params["w_conv2"], cout_p, cout_p)

    if (not equal_in_out) and activate_before_residual:
        xp = bn_lrelu(xp, g1, b1)
        conv1_in, residual_src = xp, xp
    elif equal_in_out:
        out0 = bn_lrelu(xp, g1, b1)
        conv1_in, residual_src = out0, xp
    else:
        # PyTorch quirk: relu1(bn1(x)) is computed but unused in this branch; skip it.
        conv1_in, residual_src = xp, xp

    h = conv3x3(conv1_in, w1, stride, compute_dtype=compute_dtype)
    h = bn_lrelu(h, g2, b2)

    if equal_in_out:
        res = residual_src                                        # cin_p == cout_p
    else:
        ws = _pack_conv1x1_w(params["w_short"], cin_p, cout_p)
        res = conv1x1(residual_src, ws, stride, compute_dtype=compute_dtype)

    out = conv3x3(h, w2, 1, residual_nhwc=res, compute_dtype=compute_dtype)
    out = out[..., :cout]                                         # strip channel padding
    return jnp.transpose(out, (0, 3, 1, 2))                       # NHWC -> NCHW


# ----------------------------- pure-JAX reference ---------------------------

def _ref_bn_lrelu(x, g, b):  # NHWC
    mean = jnp.mean(x, axis=(0, 1, 2), keepdims=True)
    var = jnp.mean((x - mean) ** 2, axis=(0, 1, 2), keepdims=True)
    y = (x - mean) / jnp.sqrt(var + EPS) * g + b
    return jnp.where(y >= 0.0, y, SLOPE * y)


def _ref_conv(x, w_oihw, stride, pad):  # NHWC
    return jax.lax.conv_general_dilated(
        x, jnp.transpose(w_oihw, (2, 3, 1, 0)), (stride, stride),
        [(pad, pad), (pad, pad)], dimension_numbers=("NHWC", "HWIO", "NHWC"))


def ref_forward(x_nchw, params, *, stride, equal_in_out, activate_before_residual):
    x = jnp.transpose(x_nchw, (0, 2, 3, 1))
    if (not equal_in_out) and activate_before_residual:
        x = _ref_bn_lrelu(x, params["gamma1"], params["beta1"])
        conv1_in, residual_src = x, x
    elif equal_in_out:
        out0 = _ref_bn_lrelu(x, params["gamma1"], params["beta1"])
        conv1_in, residual_src = out0, x
    else:
        conv1_in, residual_src = x, x
    h = _ref_conv(conv1_in, params["w_conv1"], stride, 1)
    h = _ref_bn_lrelu(h, params["gamma2"], params["beta2"])
    res = residual_src if equal_in_out else _ref_conv(residual_src, params["w_short"], stride, 0)
    out = _ref_conv(h, params["w_conv2"], 1, 1) + res
    return jnp.transpose(out, (0, 3, 1, 2))


# ----------------------------- main -----------------------------------------

def make_params(key, in_planes, out_planes):
    ks = jax.random.split(key, 5)
    return {
        "gamma1": 1.0 + 0.1 * jax.random.normal(ks[0], (in_planes,), jnp.float32),
        "beta1": 0.1 * jax.random.normal(ks[1], (in_planes,), jnp.float32),
        "w_conv1": 0.1 * jax.random.normal(ks[2], (out_planes, in_planes, 3, 3), jnp.float32),
        "gamma2": 1.0 + 0.1 * jax.random.normal(ks[3], (out_planes,), jnp.float32),
        "beta2": 0.1 * jax.random.normal(ks[4], (out_planes,), jnp.float32),
        "w_conv2": 0.1 * jax.random.normal(jax.random.fold_in(key, 10),
                                           (out_planes, out_planes, 3, 3), jnp.float32),
        "w_short": 0.1 * jax.random.normal(jax.random.fold_in(key, 11),
                                           (out_planes, in_planes, 1, 1), jnp.float32),
    }


if __name__ == "__main__":
    fwd = jax.jit(basic_block_forward,
                  static_argnames=("stride", "equal_in_out",
                                   "activate_before_residual", "drop_rate",
                                   "compute_dtype"))

    root = jax.random.PRNGKey(0)
    kx, kp1, kp2 = jax.random.split(root, 3)
    x = jax.random.normal(kx, (2, 4, 16, 16), jnp.float32)  # NCHW, like the PyTorch module

    # Config A: equalInOut (in_planes == out_planes, stride=1) -> identity residual. fp32 MXU.
    pA = make_params(kp1, 4, 4)
    outA = fwd(x, pA, stride=1, equal_in_out=True, activate_before_residual=False)
    jax.block_until_ready(outA)
    refA = ref_forward(x, pA, stride=1, equal_in_out=True, activate_before_residual=False)
    assert outA.shape == (2, 4, 16, 16)
    assert float(jnp.max(jnp.abs(outA - refA))) < 2e-3

    # Config B: not equalInOut (4 -> 8, stride=2), activate_before_residual=True
    # -> 1x1 strided shortcut conv on the bn-relu'd input. fp32 MXU.
    pB = make_params(kp2, 4, 8)
    outB = fwd(x, pB, stride=2, equal_in_out=False, activate_before_residual=True)
    jax.block_until_ready(outB)
    refB = ref_forward(x, pB, stride=2, equal_in_out=False, activate_before_residual=True)
    assert outB.shape == (2, 8, 8, 8)
    assert float(jnp.max(jnp.abs(outB - refB))) < 2e-3

    # Config B with bf16 MXU inputs (v6e/v7x fast path; fp32 accumulation).  Looser
    # tolerance accounts only for bf16 rounding of the matmul operands.
    outB16 = fwd(x, pB, stride=2, equal_in_out=False, activate_before_residual=True,
                 compute_dtype=jnp.bfloat16)
    jax.block_until_ready(outB16)
    assert float(jnp.max(jnp.abs(outB16 - refB))) < 1e-1

    print("KERNEL_OK")
</pallas_src>

<mosaic_0001>
module attributes {stable_mosaic.version = 11 : i64} {
  func.func @bn_stats_kernel(%arg0: i32, %arg1: memref<256x128xf32, #tpu.memory_space<vmem>>, %arg2: memref<1x128xf32, #tpu.memory_space<vmem>>, %arg3: memref<1x128xf32, #tpu.memory_space<vmem>>) attributes {dimension_semantics = [#tpu.dimension_semantics<arbitrary>], iteration_bounds = array<i64: 2>, scalar_prefetch = 0 : i64, scratch_operands = 0 : i64, tpu.core_type = #tpu.core_type<tc>, window_params = [{transform_indices = @transform_0, window_bounds = array<i64: 256, 128>}, {pipeline_mode = #tpu.pipeline_mode<synchronous>, transform_indices = @transform_1, window_bounds = array<i64: 1, 128>}, {pipeline_mode = #tpu.pipeline_mode<synchronous>, transform_indices = @transform_2, window_bounds = array<i64: 1, 128>}]} {
    %c0_i32 = arith.constant 0 : i32
    %0 = arith.cmpi eq, %arg0, %c0_i32 : i32
    %1 = arith.extui %0 : i1 to i32
    %c0_i32_0 = arith.constant 0 : i32
    %2 = arith.cmpi ne, %1, %c0_i32_0 : i32
    scf.if %2 {
      %cst_11 = arith.constant 0.000000e+00 : f32
      %15 = vector.broadcast %cst_11 : f32 to vector<1x128xf32>
      %c0_12 = arith.constant 0 : index
      %c0_13 = arith.constant 0 : index
      %16 = vector.load %arg2[%c0_12, %c0_13] : memref<1x128xf32, #tpu.memory_space<vmem>>, vector<1x128xf32>
      tpu.vector_store %arg2[%c0_12, %c0_13], %15 {strides = array<i32>} : memref<1x128xf32, #tpu.memory_space<vmem>>, vector<1x128xf32>,
      %cst_14 = arith.constant 0.000000e+00 : f32
      %17 = vector.broadcast %cst_14 : f32 to vector<1x128xf32>
      %c0_15 = arith.constant 0 : index
      %c0_16 = arith.constant 0 : index
      %18 = vector.load %arg3[%c0_15, %c0_16] : memref<1x128xf32, #tpu.memory_space<vmem>>, vector<1x128xf32>
      tpu.vector_store %arg3[%c0_15, %c0_16], %17 {strides = array<i32>} : memref<1x128xf32, #tpu.memory_space<vmem>>, vector<1x128xf32>,
    } else {
    }
    %c0 = arith.constant 0 : index
    %c0_1 = arith.constant 0 : index
    %3 = vector.load %arg1[%c0, %c0_1] : memref<256x128xf32, #tpu.memory_space<vmem>>, vector<256x128xf32>
    %c0_2 = arith.constant 0 : index
    %c0_3 = arith.constant 0 : index
    %4 = vector.load %arg2[%c0_2, %c0_3] : memref<1x128xf32, #tpu.memory_space<vmem>>, vector<1x128xf32>
    %cst = arith.constant dense<0.000000e+00> : vector<128xf32>
    %5 = vector.multi_reduction <add>, %3, %cst [0] : vector<256x128xf32> to vector<128xf32>
    %6 = vector.shape_cast %5 : vector<128xf32> to vector<1x128xf32>
    %7 = arith.addf %4, %6 : vector<1x128xf32>
    %c0_4 = arith.constant 0 : index
    %c0_5 = arith.constant 0 : index
    %8 = vector.load %arg2[%c0_4, %c0_5] : memref<1x128xf32, #tpu.memory_space<vmem>>, vector<1x128xf32>
    tpu.vector_store %arg2[%c0_4, %c0_5], %7 {strides = array<i32>} : memref<1x128xf32, #tpu.memory_space<vmem>>, vector<1x128xf32>,
    %c0_6 = arith.constant 0 : index
    %c0_7 = arith.constant 0 : index
    %9 = vector.load %arg3[%c0_6, %c0_7] : memref<1x128xf32, #tpu.memory_space<vmem>>, vector<1x128xf32>
    %10 = arith.mulf %3, %3 : vector<256x128xf32>
    %cst_8 = arith.constant dense<0.000000e+00> : vector<128xf32>
    %11 = vector.multi_reduction <add>, %10, %cst_8 [0] : vector<256x128xf32> to vector<128xf32>
    %12 = vector.shape_cast %11 : vector<128xf32> to vector<1x128xf32>
    %13 = arith.addf %9, %12 : vector<1x128xf32>
    %c0_9 = arith.constant 0 : index
    %c0_10 = arith.constant 0 : index
    %14 = vector.load %arg3[%c0_9, %c0_10] : memref<1x128xf32, #tpu.memory_space<vmem>>, vector<1x128xf32>
    tpu.vector_store %arg3[%c0_9, %c0_10], %13 {strides = array<i32>} : memref<1x128xf32, #tpu.memory_space<vmem>>, vector<1x128xf32>,
    return
  }
  func.func @transform_0(%arg0: i32) -> (i32, i32) {
    %c0_i32 = arith.constant 0 : i32
    %c0_i32_0 = arith.constant 0 : i32
    return %arg0, %c0_i32 : i32, i32
  }
  func.func @transform_1(%arg0: i32) -> (i32, i32) {
    %c0_i32 = arith.constant 0 : i32
    %c0_i32_0 = arith.constant 0 : i32
    %c0_i32_1 = arith.constant 0 : i32
    return %c0_i32, %c0_i32_0 : i32, i32
  }
  func.func @transform_2(%arg0: i32) -> (i32, i32) {
    %c0_i32 = arith.constant 0 : i32
    %c0_i32_0 = arith.constant 0 : i32
    %c0_i32_1 = arith.constant 0 : i32
    return %c0_i32, %c0_i32_0 : i32, i32
  }
}

module attributes {stable_mosaic.version = 11 : i64} {
  func.func @bn_apply_kernel(%arg0: i32, %arg1: memref<256x128xf32, #tpu.memory_space<vmem>>, %arg2: memref<1x128xf32, #tpu.memory_space<vmem>>, %arg3: memref<1x128xf32, #tpu.memory_space<vmem>>, %arg4: memref<1x128xf32, #tpu.memory_space<vmem>>, %arg5: memref<1x128xf32, #tpu.memory_space<vmem>>, %arg6: memref<256x128xf32, #tpu.memory_space<vmem>>) attributes {dimension_semantics = [#tpu.dimension_semantics<parallel>], iteration_bounds = array<i64: 2>, scalar_prefetch = 0 : i64, scratch_operands = 0 : i64, tpu.core_type = #tpu.core_type<tc>, window_params = [{transform_indices = @transform_0, window_bounds = array<i64: 256, 128>}, {pipeline_mode = #tpu.pipeline_mode<synchronous>, transform_indices = @transform_1, window_bounds = array<i64: 1, 128>}, {pipeline_mode = #tpu.pipeline_mode<synchronous>, transform_indices = @transform_2, window_bounds = array<i64: 1, 128>}, {pipeline_mode = #tpu.pipeline_mode<synchronous>, transform_indices = @transform_3, window_bounds = array<i64: 1, 128>}, {pipeline_mode = #tpu.pipeline_mode<synchronous>, transform_indices = @transform_4, window_bounds = array<i64: 1, 128>}, {transform_indices = @transform_5, window_bounds = array<i64: 256, 128>}]} {
    %c0 = arith.constant 0 : index
    %c0_0 = arith.constant 0 : index
    %0 = vector.load %arg2[%c0, %c0_0] : memref<1x128xf32, #tpu.memory_space<vmem>>, vector<1x128xf32>
    %cst = arith.constant 0.001953125 : f32
    %1 = vector.broadcast %cst : f32 to vector<1x128xf32>
    %2 = arith.mulf %0, %1 : vector<1x128xf32>
    %c0_1 = arith.constant 0 : index
    %c0_2 = arith.constant 0 : index
    %3 = vector.load %arg3[%c0_1, %c0_2] : memref<1x128xf32, #tpu.memory_space<vmem>>, vector<1x128xf32>
    %cst_3 = arith.constant 0.001953125 : f32
    %4 = vector.broadcast %cst_3 : f32 to vector<1x128xf32>
    %5 = arith.mulf %3, %4 : vector<1x128xf32>
    %6 = arith.mulf %2, %2 : vector<1x128xf32>
    %7 = arith.subf %5, %6 : vector<1x128xf32>
    %cst_4 = arith.constant 0.000000e+00 : f32
    %8 = vector.broadcast %cst_4 : f32 to vector<1x128xf32>
    %9 = arith.maximumf %7, %8 : vector<1x128xf32>
    %c0_5 = arith.constant 0 : index
    %c0_6 = arith.constant 0 : index
    %10 = vector.load %arg4[%c0_5, %c0_6] : memref<1x128xf32, #tpu.memory_space<vmem>>, vector<1x128xf32>
    %cst_7 = arith.constant 9.99999974E-6 : f32
    %11 = vector.broadcast %cst_7 : f32 to vector<1x128xf32>
    %12 = arith.addf %9, %11 : vector<1x128xf32>
    %13 = math.rsqrt %12 : vector<1x128xf32>
    %14 = arith.mulf %10, %13 : vector<1x128xf32>
    %c0_8 = arith.constant 0 : index
    %c0_9 = arith.constant 0 : index
    %15 = vector.load %arg5[%c0_8, %c0_9] : memref<1x128xf32, #tpu.memory_space<vmem>>, vector<1x128xf32>
    %16 = arith.mulf %2, %14 : vector<1x128xf32>
    %17 = arith.subf %15, %16 : vector<1x128xf32>
    %c0_10 = arith.constant 0 : index
    %c0_11 = arith.constant 0 : index
    %18 = vector.load %arg1[%c0_10, %c0_11] : memref<256x128xf32, #tpu.memory_space<vmem>>, vector<256x128xf32>
    %19 = vector.broadcast %14 : vector<1x128xf32> to vector<256x128xf32>
    %20 = arith.mulf %18, %19 : vector<256x128xf32>
    %21 = vector.broadcast %17 : vector<1x128xf32> to vector<256x128xf32>
    %22 = arith.addf %20, %21 : vector<256x128xf32>
    %cst_12 = arith.constant 0.000000e+00 : f32
    %23 = vector.broadcast %cst_12 : f32 to vector<256x128xf32>
    %24 = arith.cmpf oge, %22, %23 : vector<256x128xf32>
    %cst_13 = arith.constant 1.000000e-01 : f32
    %25 = vector.broadcast %cst_13 : f32 to vector<256x128xf32>
    %26 = arith.mulf %25, %22 : vector<256x128xf32>
    %27 = arith.select %24, %22, %26 : vector<256x128xi1>, vector<256x128xf32>
    %c0_14 = arith.constant 0 : index
    %c0_15 = arith.constant 0 : index
    %28 = vector.load %arg6[%c0_14, %c0_15] : memref<256x128xf32, #tpu.memory_space<vmem>>, vector<256x128xf32>
    tpu.vector_store %arg6[%c0_14, %c0_15], %27 {strides = array<i32>} : memref<256x128xf32, #tpu.memory_space<vmem>>, vector<256x128xf32>,
    return
  }
  func.func @transform_0(%arg0: i32) -> (i32, i32) {
    %c0_i32 = arith.constant 0 : i32
    %c0_i32_0 = arith.constant 0 : i32
    return %arg0, %c0_i32 : i32, i32
  }
  func.func @transform_1(%arg0: i32) -> (i32, i32) {
    %c0_i32 = arith.constant 0 : i32
    %c0_i32_0 = arith.constant 0 : i32
    %c0_i32_1 = arith.constant 0 : i32
    return %c0_i32, %c0_i32_0 : i32, i32
  }
  func.func @transform_2(%arg0: i32) -> (i32, i32) {
    %c0_i32 = arith.constant 0 : i32
    %c0_i32_0 = arith.constant 0 : i32
    %c0_i32_1 = arith.constant 0 : i32
    return %c0_i32, %c0_i32_0 : i32, i32
  }
  func.func @transform_3(%arg0: i32) -> (i32, i32) {
    %c0_i32 = arith.constant 0 : i32
    %c0_i32_0 = arith.constant 0 : i32
    %c0_i32_1 = arith.constant 0 : i32
    return %c0_i32, %c0_i32_0 : i32, i32
  }
  func.func @transform_4(%arg0: i32) -> (i32, i32) {
    %c0_i32 = arith.constant 0 : i32
    %c0_i32_0 = arith.constant 0 : i32
    %c0_i32_1 = arith.constant 0 : i32
    return %c0_i32, %c0_i32_0 : i32, i32
  }
  func.func @transform_5(%arg0: i32) -> (i32, i32) {
    %c0_i32 = arith.constant 0 : i32
    %c0_i32_0 = arith.constant 0 : i32
    return %arg0, %c0_i32 : i32, i32
  }
}

module attributes {stable_mosaic.version = 11 : i64} {
  func.func @matmul_kernel(%arg0: i32, %arg1: i32, %arg2: i32, %arg3: memref<256x256xf32, #tpu.memory_space<vmem>>, %arg4: memref<256x128xf32, #tpu.memory_space<vmem>>, %arg5: memref<256x128xf32, #tpu.memory_space<vmem>>, %arg6: memref<256x128xf32, #tpu.memory_space<vmem>>) attributes {dimension_semantics = [#tpu.dimension_semantics<parallel>, #tpu.dimension_semantics<parallel>, #tpu.dimension_semantics<arbitrary>], iteration_bounds = array<i64: 2, 1, 5>, scalar_prefetch = 0 : i64, scratch_operands = 1 : i64, tpu.core_type = #tpu.core_type<tc>, window_params = [{transform_indices = @transform_0, window_bounds = array<i64: 256, 256>}, {transform_indices = @transform_1, window_bounds = array<i64: 256, 128>}, {transform_indices = @transform_2, window_bounds = array<i64: 256, 128>}]} {
    %c0_i32 = arith.constant 0 : i32
    %0 = arith.cmpi eq, %arg2, %c0_i32 : i32
    %1 = arith.extui %0 : i1 to i32
    %c0_i32_0 = arith.constant 0 : i32
    %2 = arith.cmpi ne, %1, %c0_i32_0 : i32
    scf.if %2 {
      %cst_9 = arith.constant 0.000000e+00 : f32
      %12 = vector.broadcast %cst_9 : f32 to vector<256x128xf32>
      %c0_10 = arith.constant 0 : index
      %c0_11 = arith.constant 0 : index
      %13 = vector.load %arg6[%c0_10, %c0_11] : memref<256x128xf32, #tpu.memory_space<vmem>>, vector<256x128xf32>
      tpu.vector_store %arg6[%c0_10, %c0_11], %12 {strides = array<i32>} : memref<256x128xf32, #tpu.memory_space<vmem>>, vector<256x128xf32>,
    } else {
    }
    %c0 = arith.constant 0 : index
    %c0_1 = arith.constant 0 : index
    %3 = vector.load %arg6[%c0, %c0_1] : memref<256x128xf32, #tpu.memory_space<vmem>>, vector<256x128xf32>
    %c0_2 = arith.constant 0 : index
    %c0_3 = arith.constant 0 : index
    %4 = vector.load %arg3[%c0_2, %c0_3] : memref<256x256xf32, #tpu.memory_space<vmem>>, vector<256x256xf32>
    %c0_4 = arith.constant 0 : index
    %c0_5 = arith.constant 0 : index
    %5 = vector.load %arg4[%c0_4, %c0_5] : memref<256x128xf32, #tpu.memory_space<vmem>>, vector<256x128xf32>
    %cst = arith.constant dense<0.000000e+00> : vector<256x128xf32>
    %6 = tpu.matmul %4, %5, %cst {dimension_numbers = #tpu.dot_dimension_numbers<[1], [0], [0], [1], [0, 0, 1, 1], [], []>} : vector<256x256xf32>, vector<256x128xf32>, vector<256x128xf32> -> vector<256x128xf32>
    %7 = arith.addf %3, %6 : vector<256x128xf32>
    %c0_6 = arith.constant 0 : index
    %c0_7 = arith.constant 0 : index
    %8 = vector.load %arg6[%c0_6, %c0_7] : memref<256x128xf32, #tpu.memory_space<vmem>>, vector<256x128xf32>
    tpu.vector_store %arg6[%c0_6, %c0_7], %7 {strides = array<i32>} : memref<256x128xf32, #tpu.memory_space<vmem>>, vector<256x128xf32>,
    %c4_i32 = arith.constant 4 : i32
    %9 = arith.cmpi eq, %arg2, %c4_i32 : i32
    %10 = arith.extui %9 : i1 to i32
    %c0_i32_8 = arith.constant 0 : i32
    %11 = arith.cmpi ne, %10, %c0_i32_8 : i32
    scf.if %11 {
      %c0_9 = arith.constant 0 : index
      %c0_10 = arith.constant 0 : index
      %12 = vector.load %arg6[%c0_9, %c0_10] : memref<256x128xf32, #tpu.memory_space<vmem>>, vector<256x128xf32>
      %c0_11 = arith.constant 0 : index
      %c0_12 = arith.constant 0 : index
      %13 = vector.load %arg5[%c0_11, %c0_12] : memref<256x128xf32, #tpu.memory_space<vmem>>, vector<256x128xf32>
      tpu.vector_store %arg5[%c0_11, %c0_12], %12 {strides = array<i32>} : memref<256x128xf32, #tpu.memory_space<vmem>>, vector<256x128xf32>,
    } else {
    }
    return
  }
  func.func @transform_0(%arg0: i32, %arg1: i32, %arg2: i32) -> (i32, i32) {
    %c0_i32 = arith.constant 0 : i32
    return %arg0, %arg2 : i32, i32
  }
  func.func @transform_1(%arg0: i32, %arg1: i32, %arg2: i32) -> (i32, i32) {
    %c0_i32 = arith.constant 0 : i32
    return %arg2, %arg1 : i32, i32
  }
  func.func @transform_2(%arg0: i32, %arg1: i32, %arg2: i32) -> (i32, i32) {
    %c0_i32 = arith.constant 0 : i32
    return %arg0, %arg1 : i32, i32
  }
}

module attributes {stable_mosaic.version = 11 : i64} {
  func.func @matmul_add_kernel(%arg0: i32, %arg1: i32, %arg2: i32, %arg3: memref<256x256xf32, #tpu.memory_space<vmem>>, %arg4: memref<256x128xf32, #tpu.memory_space<vmem>>, %arg5: memref<256x128xf32, #tpu.memory_space<vmem>>, %arg6: memref<256x128xf32, #tpu.memory_space<vmem>>, %arg7: memref<256x128xf32, #tpu.memory_space<vmem>>) attributes {dimension_semantics = [#tpu.dimension_semantics<parallel>, #tpu.dimension_semantics<parallel>, #tpu.dimension_semantics<arbitrary>], iteration_bounds = array<i64: 2, 1, 5>, scalar_prefetch = 0 : i64, scratch_operands = 1 : i64, tpu.core_type = #tpu.core_type<tc>, window_params = [{transform_indices = @transform_0, window_bounds = array<i64: 256, 256>}, {transform_indices = @transform_1, window_bounds = array<i64: 256, 128>}, {transform_indices = @transform_2, window_bounds = array<i64: 256, 128>}, {transform_indices = @transform_3, window_bounds = array<i64: 256, 128>}]} {
    %c0_i32 = arith.constant 0 : i32
    %0 = arith.cmpi eq, %arg2, %c0_i32 : i32
    %1 = arith.extui %0 : i1 to i32
    %c0_i32_0 = arith.constant 0 : i32
    %2 = arith.cmpi ne, %1, %c0_i32_0 : i32
    scf.if %2 {
      %cst_9 = arith.constant 0.000000e+00 : f32
      %12 = vector.broadcast %cst_9 : f32 to vector<256x128xf32>
      %c0_10 = arith.constant 0 : index
      %c0_11 = arith.constant 0 : index
      %13 = vector.load %arg7[%c0_10, %c0_11] : memref<256x128xf32, #tpu.memory_space<vmem>>, vector<256x128xf32>
      tpu.vector_store %arg7[%c0_10, %c0_11], %12 {strides = array<i32>} : memref<256x128xf32, #tpu.memory_space<vmem>>, vector<256x128xf32>,
    } else {
    }
    %c0 = arith.constant 0 : index
    %c0_1 = arith.constant 0 : index
    %3 = vector.load %arg7[%c0, %c0_1] : memref<256x128xf32, #tpu.memory_space<vmem>>, vector<256x128xf32>
    %c0_2 = arith.constant 0 : index
    %c0_3 = arith.constant 0 : index
    %4 = vector.load %arg3[%c0_2, %c0_3] : memref<256x256xf32, #tpu.memory_space<vmem>>, vector<256x256xf32>
    %c0_4 = arith.constant 0 : index
    %c0_5 = arith.constant 0 : index
    %5 = vector.load %arg4[%c0_4, %c0_5] : memref<256x128xf32, #tpu.memory_space<vmem>>, vector<256x128xf32>
    %cst = arith.constant dense<0.000000e+00> : vector<256x128xf32>
    %6 = tpu.matmul %4, %5, %cst {dimension_numbers = #tpu.dot_dimension_numbers<[1], [0], [0], [1], [0, 0, 1, 1], [], []>} : vector<256x256xf32>, vector<256x128xf32>, vector<256x128xf32> -> vector<256x128xf32>
    %7 = arith.addf %3, %6 : vector<256x128xf32>
    %c0_6 = arith.constant 0 : index
    %c0_7 = arith.constant 0 : index
    %8 = vector.load %arg7[%c0_6, %c0_7] : memref<256x128xf32, #tpu.memory_space<vmem>>, vector<256x128xf32>
    tpu.vector_store %arg7[%c0_6, %c0_7], %7 {strides = array<i32>} : memref<256x128xf32, #tpu.memory_space<vmem>>, vector<256x128xf32>,
    %c4_i32 = arith.constant 4 : i32
    %9 = arith.cmpi eq, %arg2, %c4_i32 : i32
    %10 = arith.extui %9 : i1 to i32
    %c0_i32_8 = arith.constant 0 : i32
    %11 = arith.cmpi ne, %10, %c0_i32_8 : i32
    scf.if %11 {
      %c0_9 = arith.constant 0 : index
      %c0_10 = arith.constant 0 : index
      %12 = vector.load %arg7[%c0_9, %c0_10] : memref<256x128xf32, #tpu.memory_space<vmem>>, vector<256x128xf32>
      %c0_11 = arith.constant 0 : index
      %c0_12 = arith.constant 0 : index
      %13 = vector.load %arg5[%c0_11, %c0_12] : memref<256x128xf32, #tpu.memory_space<vmem>>, vector<256x128xf32>
      %14 = arith.addf %12, %13 : vector<256x128xf32>
      %c0_13 = arith.constant 0 : index
      %c0_14 = arith.constant 0 : index
      %15 = vector.load %arg6[%c0_13, %c0_14] : memref<256x128xf32, #tpu.memory_space<vmem>>, vector<256x128xf32>
      tpu.vector_store %arg6[%c0_13, %c0_14], %14 {strides = array<i32>} : memref<256x128xf32, #tpu.memory_space<vmem>>, vector<256x128xf32>,
    } else {
    }
    return
  }
  func.func @transform_0(%arg0: i32, %arg1: i32, %arg2: i32) -> (i32, i32) {
    %c0_i32 = arith.constant 0 : i32
    return %arg0, %arg2 : i32, i32
  }
  func.func @transform_1(%arg0: i32, %arg1: i32, %arg2: i32) -> (i32, i32) {
    %c0_i32 = arith.constant 0 : i32
    return %arg2, %arg1 : i32, i32
  }
  func.func @transform_2(%arg0: i32, %arg1: i32, %arg2: i32) -> (i32, i32) {
    %c0_i32 = arith.constant 0 : i32
    return %arg0, %arg1 : i32, i32
  }
  func.func @transform_3(%arg0: i32, %arg1: i32, %arg2: i32) -> (i32, i32) {
    %c0_i32 = arith.constant 0 : i32
    return %arg0, %arg1 : i32, i32
  }
}

</mosaic_0001>

<bundles_post_ra>
// kernel: basic_block_forward.6
= control target key start
LH: loop header
LB: loop body
LE: loop exit
PB: predicated region body
PF: predicated region fallthrough
CT: control target
= control target key end

     0   :  { %s355_s9 = smov 0   ;;  %s421_s0 = inlined_call_operand.vmem [shape: f32[512,128], index: 0, kind: input, shape index: {}]   ;;  %s422_s1 = inlined_call_operand.vmem [shape: f32[1,128], index: 1, kind: output, shape index: {0}]   ;;  %s423_s2 = inlined_call_operand.vmem [shape: f32[1,128], index: 2, kind: output, shape index: {1}]  }
   0x1 LB: > { %s313_s10 = sadd.s32 4294967295, %s337_s9   ;;  %p316_p0 = scmp.ge.s32.totalorder %s337_s9, 1  ;;  %s337_s9 = sphi %s355_s9, %s13_s9  }
   0x2   : > { %p106_p1 = scmp.lt.s32.totalorder %s337_s9, 3 }
   0x4   : > { %p107_p2 = pnand %p316_p0, %p106_p1 }
   0x5   : > { %s317_s11 = sshll.u32 (!%p107_p2), %s313_s10, 5  ;;  %p319_p4 = scmp.ne.s32.totalorder (!%p107_p2), %s313_s10, 0 }
   0x6   : > { %110 = sbr.rel (%p107_p2) target bundleno = 100 (0x64), region = 24  ;;  %p124_p3 = scmp.lt.s32.totalorder (!%p107_p2), %s317_s11, 63 }
   0xd   : > { %s425_s11 = smov (!%p124_p3, %s317_s11), 63  ;;  %132 = sbr.rel (%p319_p4) target bundleno = 20 (0x14), region = 28 }
   0xe   : > { %s318_s12 = sshll.u32 %s425_s11, 3  ;;  %v339_v0 = vmov (!%p319_p4), 0.0  }
   0xf   : > { %s366_s15 = scalar_lea.vmem %s421_s0, %s318_s12  ;;  %133 = vst [vmem:[%s422_s1] sm:$0x1] (!%p319_p4), %v339_v0  ;;  %134 = vst [vmem:[%s423_s2] sm:$0x1] (!%p319_p4), %v339_v0 }
  0x14 PF: > { %v135_v1 = vld [vmem:[%s366_s15] sm:$0xff]  ;;  %v136_v2 = vld [vmem:[%s366_s15 + $0x8] sm:$0xff]  ;;  %v137_v3 = vld [vmem:[%s366_s15 + $0x10] sm:$0xff] }
  0x15   : > { %v138_v4 = vld [vmem:[%s366_s15 + $0x18] sm:$0xff]  ;;  %v168_v5 = vadd.f32 %v136_v2, %v135_v1  ;;  %v208_v6 = vmul.f32 %v135_v1, %v135_v1  ;;  %v209_v7 = vmul.f32 %v136_v2, %v136_v2  ;;  %v210_v8 = vmul.f32 %v137_v3, %v137_v3  ;;  %v139_v9 = vld [vmem:[%s366_s15 + $0x20] sm:$0xff]  ;;  %v140_v13 = vld [vmem:[%s366_s15 + $0x28] sm:$0xff] }
  0x16   : > { %v211_v11 = vmul.f32 %v138_v4, %v138_v4  ;;  %v212_v15 = vmul.f32 %v139_v9, %v139_v9  ;;  %v141_v17 = vld [vmem:[%s366_s15 + $0x30] sm:$0xff]  ;;  %v213_v19 = vmul.f32 %v140_v13, %v140_v13  ;;  %v142_v21 = vld [vmem:[%s366_s15 + $0x38] sm:$0xff]  ;;  %v143_v25 = vld [vmem:[%s366_s15 + $0x40] sm:$0xff] }
  0x17   : > { %v169_v10 = vadd.f32 %v168_v5, %v137_v3  ;;  %v240_v12 = vadd.f32 %v209_v7, %v208_v6  ;;  %v214_v23 = vmul.f32 %v141_v17, %v141_v17  ;;  %v215_v27 = vmul.f32 %v142_v21, %v142_v21  ;;  %v144_v29 = vld [vmem:[%s366_s15 + $0x48] sm:$0xff]  ;;  %v145_v33 = vld [vmem:[%s366_s15 + $0x50] sm:$0xff]  ;;  %v146_v37 = vld [vmem:[%s366_s15 + $0x58] sm:$0xff] }
  0x18   : > { %v216_v31 = vmul.f32 %v143_v25, %v143_v25  ;;  %v217_v35 = vmul.f32 %v144_v29, %v144_v29  ;;  %v218_v39 = vmul.f32 %v145_v33, %v145_v33  ;;  %v147_v41 = vld [vmem:[%s366_s15 + $0x60] sm:$0xff]  ;;  %v219_v43 = vmul.f32 %v146_v37, %v146_v37  ;;  %v148_v45 = vld [vmem:[%s366_s15 + $0x68] sm:$0xff]  ;;  %v149_v49 = vld [vmem:[%s366_s15 + $0x70] sm:$0xff] }
  0x19   : > { %v170_v14 = vadd.f32 %v169_v10, %v138_v4  ;;  %v241_v16 = vadd.f32 %v240_v12, %v210_v8  ;;  %v220_v47 = vmul.f32 %v147_v41, %v147_v41  ;;  %v221_v51 = vmul.f32 %v148_v45, %v148_v45  ;;  %v150_v53 = vld [vmem:[%s366_s15 + $0x78] sm:$0xff]  ;;  %v151_v57 = vld [vmem:[%s366_s15 + $0x80] sm:$0xff]  ;;  %v152_v61 = vld [vmem:[%s366_s15 + $0x88] sm:$0xff] }
  0x1a   : > { %v222_v55 = vmul.f32 %v149_v49, %v149_v49  ;;  %v223_v59 = vmul.f32 %v150_v53, %v150_v53  ;;  %v224_v63 = vmul.f32 %v151_v57, %v151_v57  ;;  %v153_v1 = vld [vmem:[%s366_s15 + $0x90] sm:$0xff]  ;;  %v225_v3 = vmul.f32 %v152_v61, %v152_v61  ;;  %v154_v5 = vld [vmem:[%s366_s15 + $0x98] sm:$0xff] }
  0x1b   : > { %v171_v18 = vadd.f32 %v170_v14, %v139_v9  ;;  %v242_v20 = vadd.f32 %v241_v16, %v211_v11  ;;  %v226_v7 = vmul.f32 %v153_v1, %v153_v1  ;;  %v155_v9 = vld [vmem:[%s366_s15 + $0xa0] sm:$0xff]  ;;  %v227_v11 = vmul.f32 %v154_v5, %v154_v5 }
  0x1d   : > { %v172_v22 = vadd.f32 %v171_v18, %v140_v13  ;;  %v243_v24 = vadd.f32 %v242_v20, %v212_v15  ;;  %v156_v13 = vld [vmem:[%s366_s15 + $0xa8] sm:$0xff]  ;;  %v228_v15 = vmul.f32 %v155_v9, %v155_v9 }
  0x1f   : > { %v173_v26 = vadd.f32 %v172_v22, %v141_v17  ;;  %v244_v28 = vadd.f32 %v243_v24, %v213_v19  ;;  %v157_v17 = vld [vmem:[%s366_s15 + $0xb0] sm:$0xff]  ;;  %v229_v19 = vmul.f32 %v156_v13, %v156_v13 }
  0x21   : > { %v174_v30 = vadd.f32 %v173_v26, %v142_v21  ;;  %v245_v32 = vadd.f32 %v244_v28, %v214_v23  ;;  %v158_v21 = vld [vmem:[%s366_s15 + $0xb8] sm:$0xff]  ;;  %v230_v23 = vmul.f32 %v157_v17, %v157_v17 }
  0x23   : > { %v175_v34 = vadd.f32 %v174_v30, %v143_v25  ;;  %v246_v36 = vadd.f32 %v245_v32, %v215_v27  ;;  %v159_v25 = vld [vmem:[%s366_s15 + $0xc0] sm:$0xff]  ;;  %v231_v27 = vmul.f32 %v158_v21, %v158_v21 }
  0x25   : > { %v176_v38 = vadd.f32 %v175_v34, %v144_v29  ;;  %v247_v40 = vadd.f32 %v246_v36, %v216_v31  ;;  %v160_v29 = vld [vmem:[%s366_s15 + $0xc8] sm:$0xff]  ;;  %v232_v31 = vmul.f32 %v159_v25, %v159_v25 }
  0x27   : > { %v177_v42 = vadd.f32 %v176_v38, %v145_v33  ;;  %v248_v44 = vadd.f32 %v247_v40, %v217_v35  ;;  %v161_v33 = vld [vmem:[%s366_s15 + $0xd0] sm:$0xff]  ;;  %v233_v35 = vmul.f32 %v160_v29, %v160_v29 }
  0x29   : > { %v178_v46 = vadd.f32 %v177_v42, %v146_v37  ;;  %v249_v48 = vadd.f32 %v248_v44, %v218_v39  ;;  %v162_v37 = vld [vmem:[%s366_s15 + $0xd8] sm:$0xff]  ;;  %v234_v39 = vmul.f32 %v161_v33, %v161_v33 }
  0x2b   : > { %v179_v50 = vadd.f32 %v178_v46, %v147_v41  ;;  %v250_v52 = vadd.f32 %v249_v48, %v219_v43  ;;  %v163_v41 = vld [vmem:[%s366_s15 + $0xe0] sm:$0xff]  ;;  %v235_v43 = vmul.f32 %v162_v37, %v162_v37 }
  0x2d   : > { %v180_v54 = vadd.f32 %v179_v50, %v148_v45  ;;  %v251_v56 = vadd.f32 %v250_v52, %v220_v47  ;;  %v164_v45 = vld [vmem:[%s366_s15 + $0xe8] sm:$0xff]  ;;  %v236_v47 = vmul.f32 %v163_v41, %v163_v41 }
  0x2f   : > { %v181_v58 = vadd.f32 %v180_v54, %v149_v49  ;;  %v252_v60 = vadd.f32 %v251_v56, %v221_v51  ;;  %v165_v49 = vld [vmem:[%s366_s15 + $0xf0] sm:$0xff]  ;;  %v237_v51 = vmul.f32 %v164_v45, %v164_v45 }
  0x31   : > { %v182_v62 = vadd.f32 %v181_v58, %v150_v53  ;;  %v253_v0 = vadd.f32 %v252_v60, %v222_v55  ;;  %v166_v53 = vld [vmem:[%s366_s15 + $0xf8] sm:$0xff]  ;;  %v238_v55 = vmul.f32 %v165_v49, %v165_v49 }
  0x32   : > { %v239_v58 = vmul.f32 %v166_v53, %v166_v53 }
  0x33   : > { %v183_v2 = vadd.f32 %v182_v62, %v151_v57  ;;  %v254_v4 = vadd.f32 %v253_v0, %v223_v59 }
  0x35   : > { %v184_v6 = vadd.f32 %v183_v2, %v152_v61  ;;  %v255_v8 = vadd.f32 %v254_v4, %v224_v63 }
  0x37   : > { %v185_v10 = vadd.f32 %v184_v6, %v153_v1  ;;  %v256_v12 = vadd.f32 %v255_v8, %v225_v3 }
  0x39   : > { %v186_v14 = vadd.f32 %v185_v10, %v154_v5  ;;  %v257_v16 = vadd.f32 %v256_v12, %v226_v7  ;;  %v167_v7 = vld [vmem:[%s422_s1] sm:$0x1] }
  0x3a   : > { %v207_v12 = vld [vmem:[%s423_s2] sm:$0x1] }
  0x3b   : > { %v187_v18 = vadd.f32 %v186_v14, %v155_v9  ;;  %v258_v20 = vadd.f32 %v257_v16, %v227_v11 }
  0x3d   : > { %v188_v22 = vadd.f32 %v187_v18, %v156_v13  ;;  %v259_v24 = vadd.f32 %v258_v20, %v228_v15 }
  0x3f   : > { %v189_v26 = vadd.f32 %v188_v22, %v157_v17  ;;  %v260_v28 = vadd.f32 %v259_v24, %v229_v19 }
  0x41   : > { %v190_v30 = vadd.f32 %v189_v26, %v158_v21  ;;  %v261_v32 = vadd.f32 %v260_v28, %v230_v23 }
  0x43   : > { %v191_v34 = vadd.f32 %v190_v30, %v159_v25  ;;  %v262_v36 = vadd.f32 %v261_v32, %v231_v27 }
  0x45   : > { %v192_v38 = vadd.f32 %v191_v34, %v160_v29  ;;  %v263_v40 = vadd.f32 %v262_v36, %v232_v31 }
  0x47   : > { %v193_v42 = vadd.f32 %v192_v38, %v161_v33  ;;  %v264_v44 = vadd.f32 %v263_v40, %v233_v35 }
  0x49   : > { %v194_v46 = vadd.f32 %v193_v42, %v162_v37  ;;  %v265_v48 = vadd.f32 %v264_v44, %v234_v39 }
  0x4b   : > { %v195_v50 = vadd.f32 %v194_v46, %v163_v41  ;;  %v266_v52 = vadd.f32 %v265_v48, %v235_v43 }
  0x4d   : > { %v196_v54 = vadd.f32 %v195_v50, %v164_v45  ;;  %v267_v56 = vadd.f32 %v266_v52, %v236_v47 }
  0x4f   : > { %v197_v57 = vadd.f32 %v196_v54, %v165_v49  ;;  %v268_v59 = vadd.f32 %v267_v56, %v237_v51 }
  0x51   : > { %v198_v60 = vadd.f32 %v197_v57, %v166_v53  ;;  %v269_v61 = vadd.f32 %v268_v59, %v238_v55 }
  0x53   : > { %v199_v62 = vrot.slane %v198_v60, 4  ;;  %v270_v63 = vadd.f32 %v269_v61, %v239_v58 }
  0x55   : > { %v200_v0 = vadd.f32 %v199_v62, %v198_v60  ;;  %v271_v1 = vrot.slane %v270_v63, 4 }
  0x57   : > { %v201_v2 = vrot.slane %v200_v0, 2  ;;  %v272_v3 = vadd.f32 %v271_v1, %v270_v63 }
  0x59   : > { %v202_v4 = vadd.f32 %v201_v2, %v200_v0  ;;  %v273_v5 = vrot.slane %v272_v3, 2 }
  0x5b   : > { %v203_v6 = vrot.slane %v202_v4, 1  ;;  %v274_v8 = vadd.f32 %v273_v5, %v272_v3 }
  0x5d   : > { %v204_v9 = vadd.f32 %v203_v6, %v202_v4  ;;  %v275_v10 = vrot.slane %v274_v8, 1 }
  0x5f   : > { %v205_v11 = vadd.f32 %v204_v9, %v167_v7  ;;  %v276_v13 = vadd.f32 %v275_v10, %v274_v8 }
  0x61   : > { %206 = vst [vmem:[%s422_s1] sm:$0x1] %v205_v11  ;;  %v277_v14 = vadd.f32 %v276_v13, %v207_v12 }
  0x63   : > { %278 = vst [vmem:[%s423_s2] sm:$0x1] %v277_v14 }
  0x64 PF: > { %s13_s9 = sadd.s32 1, %s337_s9  }
  0x65   : > { %p10_p5 = scmp.ge.s32.totalorder %s13_s9, 4  }
  0x67   :  { %12 = sbr.rel (!%p10_p5) target bundleno = 1 (0x1), region = 62 }

// kernel: basic_block_forward.7
= control target key start
LH: loop header
LB: loop body
LE: loop exit
PB: predicated region body
PF: predicated region fallthrough
CT: control target
= control target key end

     0   :  { %s593_s18 = smov 0   ;;  %s768_s0 = inlined_call_operand.vmem [shape: f32[512,128], index: 0, kind: input, shape index: {}]   ;;  %s769_s1 = inlined_call_operand.vmem [shape: f32[1,128], index: 1, kind: input, shape index: {}]   ;;  %s770_s2 = inlined_call_operand.vmem [shape: f32[1,128], index: 2, kind: input, shape index: {}]   ;;  %s771_s3 = inlined_call_operand.vmem [shape: f32[1,128], index: 3, kind: input, shape index: {}]   ;;  %s772_s4 = inlined_call_operand.vmem [shape: f32[1,128], index: 4, kind: input, shape index: {}]   ;;  %s773_s5 = inlined_call_operand.vmem [shape: f32[512,128], index: 5, kind: output, shape index: {}]  }
   0x1 LB: > { %s534_s19 = sadd.s32 4294967295, %s561_s18   ;;  %p538_p0 = scmp.ge.s32.totalorder %s561_s18, 1  ;;  %s561_s18 = sphi %s593_s18, %s15_s18  }
   0x2   : > { %p188_p1 = scmp.lt.s32.totalorder %s561_s18, 3 }
   0x4   : > { %p189_p2 = pnand %p538_p0, %p188_p1 }
   0x5   : > { %v228_v0 = vld [vmem:[%s769_s1] sm:$0x1] (!%p189_p2)  ;;  %s539_s24 = sshll.u32 (!%p189_p2), %s534_s19, 5  ;;  %v275_v8 = vlaneseq (!%p189_p2) }
   0x6   : > { %192 = sbr.rel (%p189_p2) target bundleno = 75 (0x4b), region = 40  ;;  %v230_v1 = vld [vmem:[%s770_s2] sm:$0x1] (!%p189_p2)  ;;  %v229_v2 = vmul.f32 (!%p189_p2), 0.001953125, %v228_v0  ;;  %p217_p3 = scmp.lt.s32.totalorder (!%p189_p2), %s539_s24, 63 }
   0x7   : > { %v231_v3 = vmul.f32 (!%p189_p2), 0.001953125, %v230_v1  ;;  %v276_v9 = vshrl.u32 (!%p189_p2), %v275_v8, 7  ;;  %v235_v10 = vld [vmem:[%s771_s3] sm:$0x1] (!%p189_p2) }
   0x8   : > { %v232_v4 = vmul.f32 (!%p189_p2), %v229_v2, %v229_v2  ;;  %v239_v14 = vld [vmem:[%s772_s4] sm:$0x1] (!%p189_p2) }
   0x9   : > { %v277_v11 = vsub.s32 (!%p189_p2), 0, %v276_v9 }
   0xa   : > { %v233_v5 = vsub.f32 (!%p189_p2), %v231_v3, %v232_v4 }
   0xc   : > { %v234_v6 = vmax.f32 (!%p189_p2), %v233_v5, 0.0 }
   0xd   : > { %s775_s24 = smov (!%p217_p3, %s539_s24), 63 }
   0xe   : > { %v236_v7 = vadd.f32 1e-05, %v234_v6  ;;  %s540_s25 = sshll.u32 %s775_s24, 3 }
   0xf   : > { %s615_s28 = scalar_lea.vmem %s768_s0, %s540_s25  ;;  %s670_s10 = scalar_lea.vmem %s773_s5, %s540_s25 }
  0x10   : > { %553 = vrsqrt.f32 %v236_v7  ;;  %v242_v15 = vld [vmem:[%s615_s28] sm:$0xff]  ;;  %v243_v16 = vld [vmem:[%s615_s28 + $0x8] sm:$0xff]  ;;  %v244_v17 = vld [vmem:[%s615_s28 + $0x10] sm:$0xff] }
  0x11   : > { %v245_v18 = vld [vmem:[%s615_s28 + $0x18] sm:$0xff]  ;;  %v246_v19 = vld [vmem:[%s615_s28 + $0x20] sm:$0xff]  ;;  %v247_v22 = vld [vmem:[%s615_s28 + $0x28] sm:$0xff] }
  0x12   : > { %v248_v23 = vld [vmem:[%s615_s28 + $0x30] sm:$0xff]  ;;  %v249_v24 = vld [vmem:[%s615_s28 + $0x38] sm:$0xff]  ;;  %v250_v25 = vld [vmem:[%s615_s28 + $0x40] sm:$0xff] }
  0x13   : > { %v251_v26 = vld [vmem:[%s615_s28 + $0x48] sm:$0xff]  ;;  %v252_v27 = vld [vmem:[%s615_s28 + $0x50] sm:$0xff]  ;;  %v253_v32 = vld [vmem:[%s615_s28 + $0x58] sm:$0xff] }
  0x14   : > { %v254_v33 = vld [vmem:[%s615_s28 + $0x60] sm:$0xff]  ;;  %v255_v34 = vld [vmem:[%s615_s28 + $0x68] sm:$0xff] }
  0x1a   : > { %v554_v12 = vpop.eup %553 }
  0x1b   : > { %v238_v13 = vmul.f32 %v554_v12, %v235_v10 }
  0x1d   : > { %v240_v20 = vmul.f32 %v238_v13, %v229_v2  ;;  %v628_v21 = vrot.slane %v238_v13, %v277_v11 }
  0x1f   : > { %v241_v28 = vsub.f32 %v239_v14, %v240_v20  ;;  %v280_v29 = vmul.f32 %v628_v21, %v242_v15  ;;  %v281_v30 = vmul.f32 %v628_v21, %v243_v16  ;;  %v282_v31 = vmul.f32 %v628_v21, %v244_v17  ;;  %v257_v14 = vld [vmem:[%s615_s28 + $0x78] sm:$0xff]  ;;  %v258_v15 = vld [vmem:[%s615_s28 + $0x80] sm:$0xff] }
  0x20   : > { %v283_v35 = vmul.f32 %v628_v21, %v245_v18  ;;  %v284_v36 = vmul.f32 %v628_v21, %v246_v19  ;;  %v285_v37 = vmul.f32 %v628_v21, %v247_v22  ;;  %v286_v38 = vmul.f32 %v628_v21, %v248_v23  ;;  %v259_v22 = vld [vmem:[%s615_s28 + $0x88] sm:$0xff] }
  0x21   : > { %v646_v39 = vrot.slane %v241_v28, %v277_v11  ;;  %v287_v40 = vmul.f32 %v628_v21, %v249_v24  ;;  %v288_v41 = vmul.f32 %v628_v21, %v250_v25  ;;  %v289_v42 = vmul.f32 %v628_v21, %v251_v26  ;;  %v256_v11 = vld [vmem:[%s615_s28 + $0x70] sm:$0xff]  ;;  %v261_v28 = vld [vmem:[%s615_s28 + $0x98] sm:$0xff] }
  0x22   : > { %v290_v43 = vmul.f32 %v628_v21, %v252_v27  ;;  %v291_v44 = vmul.f32 %v628_v21, %v253_v32  ;;  %v292_v45 = vmul.f32 %v628_v21, %v254_v33  ;;  %v655_v46 = vmul.f32 %v628_v21, %v255_v34  ;;  %v260_v27 = vld [vmem:[%s615_s28 + $0x90] sm:$0xff] }
  0x23   : > { %v318_v47 = vadd.f32 %v646_v39, %v280_v29  ;;  %v319_v48 = vadd.f32 %v646_v39, %v281_v30  ;;  %v320_v49 = vadd.f32 %v646_v39, %v282_v31  ;;  %v321_v50 = vadd.f32 %v646_v39, %v283_v35 }
  0x24   : > { %v322_v51 = vadd.f32 %v646_v39, %v284_v36  ;;  %v323_v52 = vadd.f32 %v646_v39, %v285_v37  ;;  %v324_v53 = vadd.f32 %v646_v39, %v286_v38  ;;  %v325_v54 = vadd.f32 %v646_v39, %v287_v40 }
  0x25   : > { %vm350_vm0 = vcmp.ge.f32.partialorder %v318_v47, 0.0  ;;  %v382_v55 = vmul.f32 0.1, %v318_v47  ;;  %vm351_vm1 = vcmp.ge.f32.partialorder %v319_v48, 0.0  ;;  %v383_v56 = vmul.f32 0.1, %v319_v48 }
  0x26   : > { %vm352_vm2 = vcmp.ge.f32.partialorder %v320_v49, 0.0  ;;  %v384_v57 = vmul.f32 0.1, %v320_v49  ;;  %vm353_vm3 = vcmp.ge.f32.partialorder %v321_v50, 0.0  ;;  %v385_v58 = vmul.f32 0.1, %v321_v50 }
  0x27   : > { %v414_v59 = vsel %vm350_vm0, %v318_v47, %v382_v55  ;;  %v415_v60 = vsel %vm351_vm1, %v319_v48, %v383_v56  ;;  %vm354_vm4 = vcmp.ge.f32.partialorder %v322_v51, 0.0  ;;  %v386_v61 = vmul.f32 0.1, %v322_v51  ;;  %v265_v56 = vld [vmem:[%s615_s28 + $0xb8] sm:$0xff] }
  0x28   : > { %446 = vst [vmem:[%s670_s10] sm:$0xff] %v414_v59  ;;  %447 = vst [vmem:[%s670_s10 + $0x8] sm:$0xff] %v415_v60  ;;  %v416_v62 = vsel %vm352_vm2, %v320_v49, %v384_v57  ;;  %v417_v63 = vsel %vm353_vm3, %v321_v50, %v385_v58  ;;  %vm355_vm5 = vcmp.ge.f32.partialorder %v323_v52, 0.0  ;;  %v387_v0 = vmul.f32 0.1, %v323_v52  ;;  %v266_v57 = vld [vmem:[%s615_s28 + $0xc0] sm:$0xff] }
  0x29   : > { %448 = vst [vmem:[%s670_s10 + $0x10] sm:$0xff] %v416_v62  ;;  %449 = vst [vmem:[%s670_s10 + $0x18] sm:$0xff] %v417_v63  ;;  %v418_v1 = vsel %vm354_vm4, %v322_v51, %v386_v61  ;;  %vm356_vm6 = vcmp.ge.f32.partialorder %v324_v53, 0.0  ;;  %v388_v2 = vmul.f32 0.1, %v324_v53  ;;  %vm357_vm7 = vcmp.ge.f32.partialorder %v325_v54, 0.0 }
  0x2a   : > { %450 = vst [vmem:[%s670_s10 + $0x20] sm:$0xff] %v418_v1  ;;  %v419_v3 = vsel %vm355_vm5, %v323_v52, %v387_v0  ;;  %v389_v4 = vmul.f32 0.1, %v325_v54  ;;  %v326_v5 = vadd.f32 %v646_v39, %v288_v41  ;;  %v327_v6 = vadd.f32 %v646_v39, %v289_v42  ;;  %v264_v51 = vld [vmem:[%s615_s28 + $0xb0] sm:$0xff] }
  0x2b   : > { %451 = vst [vmem:[%s670_s10 + $0x28] sm:$0xff] %v419_v3  ;;  %v420_v7 = vsel %vm356_vm6, %v324_v53, %v388_v2  ;;  %v328_v8 = vadd.f32 %v646_v39, %v290_v43  ;;  %v329_v9 = vadd.f32 %v646_v39, %v291_v44  ;;  %v330_v10 = vadd.f32 %v646_v39, %v292_v45  ;;  %v262_v44 = vld [vmem:[%s615_s28 + $0xa0] sm:$0xff]  ;;  %v263_v45 = vld [vmem:[%s615_s28 + $0xa8] sm:$0xff] }
  0x2c   : > { %452 = vst [vmem:[%s670_s10 + $0x30] sm:$0xff] %v420_v7  ;;  %v421_v12 = vsel %vm357_vm7, %v325_v54, %v389_v4  ;;  %vm358_vm8 = vcmp.ge.f32.partialorder %v326_v5, 0.0  ;;  %v390_v13 = vmul.f32 0.1, %v326_v5  ;;  %vm359_vm9 = vcmp.ge.f32.partialorder %v327_v6, 0.0  ;;  %v267_v4 = vld [vmem:[%s615_s28 + $0xc8] sm:$0xff] }
  0x2d   : > { %453 = vst [vmem:[%s670_s10 + $0x38] sm:$0xff] %v421_v12  ;;  %v391_v16 = vmul.f32 0.1, %v327_v6  ;;  %vm360_vm10 = vcmp.ge.f32.partialorder %v328_v8, 0.0  ;;  %v392_v17 = vmul.f32 0.1, %v328_v8  ;;  %v331_v25 = vadd.f32 %v646_v39, %v655_v46 }
  0x2e   : > { %vm361_vm11 = vcmp.ge.f32.partialorder %v329_v9, 0.0  ;;  %v422_v18 = vsel %vm358_vm8, %v326_v5, %v390_v13  ;;  %v393_v19 = vmul.f32 0.1, %v329_v9  ;;  %vm362_vm12 = vcmp.ge.f32.partialorder %v330_v10, 0.0 }
  0x2f   : > { %v394_v20 = vmul.f32 0.1, %v330_v10  ;;  %454 = vst [vmem:[%s670_s10 + $0x40] sm:$0xff] %v422_v18  ;;  %v423_v23 = vsel %vm359_vm9, %v327_v6, %v391_v16  ;;  %v424_v24 = vsel %vm360_vm10, %v328_v8, %v392_v17  ;;  %v294_v26 = vmul.f32 %v628_v21, %v256_v11  ;;  %v268_v11 = vld [vmem:[%s615_s28 + $0xd0] sm:$0xff]  ;;  %v270_v16 = vld [vmem:[%s615_s28 + $0xe0] sm:$0xff]  ;;  %v271_v17 = vld [vmem:[%s615_s28 + $0xe8] sm:$0xff] }
  0x30   : > { %455 = vst [vmem:[%s670_s10 + $0x48] sm:$0xff] %v423_v23  ;;  %456 = vst [vmem:[%s670_s10 + $0x50] sm:$0xff] %v424_v24  ;;  %v425_v29 = vsel %vm361_vm11, %v329_v9, %v393_v19  ;;  %v295_v31 = vmul.f32 %v628_v21, %v257_v14  ;;  %v296_v32 = vmul.f32 %v628_v21, %v258_v15  ;;  %vm363_vm13 = vcmp.ge.f32.partialorder %v331_v25, 0.0  ;;  %v269_v15 = vld [vmem:[%s615_s28 + $0xd8] sm:$0xff] }
  0x31   : > { %v426_v30 = vsel %vm362_vm12, %v330_v10, %v394_v20  ;;  %457 = vst [vmem:[%s670_s10 + $0x58] sm:$0xff] %v425_v29  ;;  %v395_v33 = vmul.f32 0.1, %v331_v25  ;;  %v332_v34 = vadd.f32 %v646_v39, %v294_v26  ;;  %v297_v35 = vmul.f32 %v628_v21, %v259_v22 }
  0x32   : > { %458 = vst [vmem:[%s670_s10 + $0x60] sm:$0xff] %v426_v30  ;;  %v333_v36 = vadd.f32 %v646_v39, %v295_v31  ;;  %v334_v37 = vadd.f32 %v646_v39, %v296_v32  ;;  %v298_v38 = vmul.f32 %v628_v21, %v260_v27  ;;  %v299_v40 = vmul.f32 %v628_v21, %v261_v28  ;;  %v273_v30 = vld [vmem:[%s615_s28 + $0xf8] sm:$0xff] }
  0x33   : > { %v427_v41 = vsel %vm363_vm13, %v331_v25, %v395_v33  ;;  %vm364_vm14 = vcmp.ge.f32.partialorder %v332_v34, 0.0  ;;  %v396_v42 = vmul.f32 0.1, %v332_v34  ;;  %v335_v43 = vadd.f32 %v646_v39, %v297_v35  ;;  %v272_v25 = vld [vmem:[%s615_s28 + $0xf0] sm:$0xff] }
  0x34   : > { %459 = vst [vmem:[%s670_s10 + $0x68] sm:$0xff] %v427_v41  ;;  %vm365_vm15 = vcmp.ge.f32.partialorder %v333_v36, 0.0  ;;  %v397_v46 = vmul.f32 0.1, %v333_v36  ;;  %vm366_vm0 = vcmp.ge.f32.partialorder %v334_v37, 0.0  ;;  %v336_v50 = vadd.f32 %v646_v39, %v298_v38 }
  0x35   : > { %v398_v47 = vmul.f32 0.1, %v334_v37  ;;  %v428_v48 = vsel %vm364_vm14, %v332_v34, %v396_v42  ;;  %vm367_vm1 = vcmp.ge.f32.partialorder %v335_v43, 0.0  ;;  %v399_v49 = vmul.f32 0.1, %v335_v43 }
  0x36   : > { %460 = vst [vmem:[%s670_s10 + $0x70] sm:$0xff] %v428_v48  ;;  %v429_v52 = vsel %vm365_vm15, %v333_v36, %v397_v46  ;;  %v337_v54 = vadd.f32 %v646_v39, %v299_v40  ;;  %v300_v55 = vmul.f32 %v628_v21, %v262_v44  ;;  %vm368_vm2 = vcmp.ge.f32.partialorder %v336_v50, 0.0 }
  0x37   : > { %v430_v53 = vsel %vm366_vm0, %v334_v37, %v398_v47  ;;  %461 = vst [vmem:[%s670_s10 + $0x78] sm:$0xff] %v429_v52  ;;  %v431_v58 = vsel %vm367_vm1, %v335_v43, %v399_v49  ;;  %v400_v59 = vmul.f32 0.1, %v336_v50  ;;  %v301_v60 = vmul.f32 %v628_v21, %v263_v45 }
  0x38   : > { %462 = vst [vmem:[%s670_s10 + $0x80] sm:$0xff] %v430_v53  ;;  %463 = vst [vmem:[%s670_s10 + $0x88] sm:$0xff] %v431_v58  ;;  %vm369_vm3 = vcmp.ge.f32.partialorder %v337_v54, 0.0  ;;  %v401_v61 = vmul.f32 0.1, %v337_v54  ;;  %v338_v62 = vadd.f32 %v646_v39, %v300_v55  ;;  %v302_v63 = vmul.f32 %v628_v21, %v264_v51 }
  0x39   : > { %v432_v0 = vsel %vm368_vm2, %v336_v50, %v400_v59  ;;  %v339_v1 = vadd.f32 %v646_v39, %v301_v60  ;;  %v303_v2 = vmul.f32 %v628_v21, %v265_v56  ;;  %v304_v3 = vmul.f32 %v628_v21, %v266_v57 }
  0x3a   : > { %464 = vst [vmem:[%s670_s10 + $0x90] sm:$0xff] %v432_v0  ;;  %v433_v5 = vsel %vm369_vm3, %v337_v54, %v401_v61  ;;  %vm370_vm4 = vcmp.ge.f32.partialorder %v338_v62, 0.0  ;;  %v402_v6 = vmul.f32 0.1, %v338_v62  ;;  %v340_v7 = vadd.f32 %v646_v39, %v302_v63 }
  0x3b   : > { %465 = vst [vmem:[%s670_s10 + $0x98] sm:$0xff] %v433_v5  ;;  %vm371_vm5 = vcmp.ge.f32.partialorder %v339_v1, 0.0  ;;  %v403_v8 = vmul.f32 0.1, %v339_v1  ;;  %v341_v9 = vadd.f32 %v646_v39, %v303_v2  ;;  %v342_v10 = vadd.f32 %v646_v39, %v304_v3 }
  0x3c   : > { %v434_v12 = vsel %vm370_vm4, %v338_v62, %v402_v6  ;;  %vm372_vm6 = vcmp.ge.f32.partialorder %v340_v7, 0.0  ;;  %v404_v13 = vmul.f32 0.1, %v340_v7  ;;  %v305_v14 = vmul.f32 %v628_v21, %v267_v4 }
  0x3d   : > { %466 = vst [vmem:[%s670_s10 + $0xa0] sm:$0xff] %v434_v12  ;;  %v435_v18 = vsel %vm371_vm5, %v339_v1, %v403_v8  ;;  %vm373_vm7 = vcmp.ge.f32.partialorder %v341_v9, 0.0  ;;  %v405_v19 = vmul.f32 0.1, %v341_v9  ;;  %vm374_vm8 = vcmp.ge.f32.partialorder %v342_v10, 0.0 }
  0x3e   : > { %467 = vst [vmem:[%s670_s10 + $0xa8] sm:$0xff] %v435_v18  ;;  %v436_v20 = vsel %vm372_vm6, %v340_v7, %v404_v13  ;;  %v406_v22 = vmul.f32 0.1, %v342_v10  ;;  %v343_v23 = vadd.f32 %v646_v39, %v305_v14  ;;  %v306_v24 = vmul.f32 %v628_v21, %v268_v11 }
  0x3f   : > { %468 = vst [vmem:[%s670_s10 + $0xb0] sm:$0xff] %v436_v20  ;;  %v437_v26 = vsel %vm373_vm7, %v341_v9, %v405_v19  ;;  %v307_v27 = vmul.f32 %v628_v21, %v269_v15  ;;  %v308_v28 = vmul.f32 %v628_v21, %v270_v16  ;;  %v309_v29 = vmul.f32 %v628_v21, %v271_v17 }
  0x40   : > { %469 = vst [vmem:[%s670_s10 + $0xb8] sm:$0xff] %v437_v26  ;;  %v438_v31 = vsel %vm374_vm8, %v342_v10, %v406_v22  ;;  %vm375_vm9 = vcmp.ge.f32.partialorder %v343_v23, 0.0  ;;  %v407_v32 = vmul.f32 0.1, %v343_v23  ;;  %v344_v33 = vadd.f32 %v646_v39, %v306_v24 }
  0x41   : > { %470 = vst [vmem:[%s670_s10 + $0xc0] sm:$0xff] %v438_v31  ;;  %v345_v34 = vadd.f32 %v646_v39, %v307_v27  ;;  %v346_v35 = vadd.f32 %v646_v39, %v308_v28  ;;  %v347_v36 = vadd.f32 %v646_v39, %v309_v29  ;;  %v310_v37 = vmul.f32 %v628_v21, %v272_v25 }
  0x42   : > { %v439_v38 = vsel %vm375_vm9, %v343_v23, %v407_v32  ;;  %vm376_vm10 = vcmp.ge.f32.partialorder %v344_v33, 0.0  ;;  %v408_v40 = vmul.f32 0.1, %v344_v33  ;;  %v311_v41 = vmul.f32 %v628_v21, %v273_v30 }
  0x43   : > { %471 = vst [vmem:[%s670_s10 + $0xc8] sm:$0xff] %v439_v38  ;;  %vm377_vm11 = vcmp.ge.f32.partialorder %v345_v34, 0.0  ;;  %v409_v42 = vmul.f32 0.1, %v345_v34  ;;  %vm378_vm12 = vcmp.ge.f32.partialorder %v346_v35, 0.0  ;;  %vm379_vm13 = vcmp.ge.f32.partialorder %v347_v36, 0.0 }
  0x44   : > { %v410_v43 = vmul.f32 0.1, %v346_v35  ;;  %v440_v44 = vsel %vm376_vm10, %v344_v33, %v408_v40  ;;  %v411_v45 = vmul.f32 0.1, %v347_v36  ;;  %v348_v46 = vadd.f32 %v646_v39, %v310_v37 }
  0x45   : > { %472 = vst [vmem:[%s670_s10 + $0xd0] sm:$0xff] %v440_v44  ;;  %v441_v47 = vsel %vm377_vm11, %v345_v34, %v409_v42  ;;  %v349_v49 = vadd.f32 %v646_v39, %v311_v41 }
  0x46   : > { %v442_v48 = vsel %vm378_vm12, %v346_v35, %v410_v43  ;;  %473 = vst [vmem:[%s670_s10 + $0xd8] sm:$0xff] %v441_v47  ;;  %v443_v21 = vsel %vm379_vm13, %v347_v36, %v411_v45  ;;  %vm380_vm14 = vcmp.ge.f32.partialorder %v348_v46, 0.0  ;;  %v412_v50 = vmul.f32 0.1, %v348_v46 }
  0x47   : > { %474 = vst [vmem:[%s670_s10 + $0xe0] sm:$0xff] %v442_v48  ;;  %475 = vst [vmem:[%s670_s10 + $0xe8] sm:$0xff] %v443_v21  ;;  %vm381_vm15 = vcmp.ge.f32.partialorder %v349_v49, 0.0  ;;  %v413_v51 = vmul.f32 0.1, %v349_v49 }
  0x48   : > { %v444_v52 = vsel %vm380_vm14, %v348_v46, %v412_v50 }
  0x49   : > { %476 = vst [vmem:[%s670_s10 + $0xf0] sm:$0xff] %v444_v52  ;;  %v445_v53 = vsel %vm381_vm15, %v349_v49, %v413_v51 }
  0x4a   : > { %477 = vst [vmem:[%s670_s10 + $0xf8] sm:$0xff] %v445_v53 }
  0x4b PF: > { %s15_s18 = sadd.s32 1, %s561_s18  }
  0x4c   : > { %p12_p4 = scmp.ge.s32.totalorder %s15_s18, 4  }
  0x4e   :  { %14 = sbr.rel (!%p12_p4) target bundleno = 1 (0x1), region = 70 }

// kernel: basic_block_forward.8
= control target key start
LH: loop header
LB: loop body
LE: loop exit
PB: predicated region body
PF: predicated region fallthrough
CT: control target
= control target key end

     0   :  { %s1215_s9 = smov 0   ;;  %s1217_s10 = smov 0   ;;  %s1607_s0 = inlined_call_operand.vmem [shape: f32[512,1280], index: 0, kind: input, shape index: {}]   ;;  %s1608_s1 = inlined_call_operand.vmem [shape: f32[1280,128], index: 1, kind: input, shape index: {}]   ;;  %s1609_s2 = inlined_call_operand.vmem [shape: f32[512,128], index: 2, kind: output, shape index: {}]  }
   0x1   :  { %s1219_s11 = smov 0   ;;  %s1221_s12 = smov 0  }
   0x2   :  { %s1223_s13 = smov 0   ;;  %s1225_s14 = smov 0  }
   0x3   :  { %s1227_s15 = smov 0  }
   0x4 LB: > { %s24_s16 = sadd.s32 1, %s1188_s13  ;;  %s31_s17 = sadd.s32 1, %s1192_s14  ;;  %s1196_s15 = sphi %s1227_s15, %s12_s15   ;;  %s1192_s14 = sphi %s1225_s14, %s1615_s14   ;;  %s1188_s13 = sphi %s1223_s13, %s1614_s13   ;;  %s1184_s12 = sphi %s1221_s12, %s1613_s12   ;;  %s1180_s11 = sphi %s1219_s11, %s1612_s11   ;;  %s1176_s10 = sphi %s1217_s10, %s1611_s10   ;;  %s1172_s9 = sphi %s1215_s9, %s1610_s9  }
   0x5   : > { %p25_p0 = scmp.ge.s32.totalorder %s24_s16, 5  ;;  %p47_p1 = scmp.ne.s32.totalorder %s1176_s10, %s1172_s9 }
   0x6   : > { %p48_p2 = scmp.eq.s32.totalorder %s1196_s15, 0  ;;  %s40_s21 = sadd.s32 1, %s1176_s10 }
   0x7   : > { %s1617_s16 = smov (%p25_p0, %s24_s16), 0  ;;  %s1619_s17 = smov (!%p25_p0, %s31_s17), %s1192_s14 }
   0x8   : > { %p49_p3 = por %p48_p2, %p47_p1  ;;  %p33_p4 = scmp.ge.s32.totalorder %s1619_s17, 2 }
   0x9   : > { %s36_s18 = ssub.s32 %s1188_s13, %s1617_s16  ;;  %p987_p6 = scmp.ge.s32.totalorder %s1196_s15, 10 }
   0xa   : > { %s1621_s17 = smov (%p33_p4, %s1619_s17), 0 }
   0xb   : > { %s35_s19 = ssub.s32 %s1192_s14, %s1621_s17  ;;  %129 = sbr.rel (%p987_p6) target bundleno = 58 (0x3a), region = 16 }
   0xc   : > { %s37_s20 = sor.u32 %s36_s18, %s35_s19 }
   0xd   : > { %p38_p5 = scmp.eq.s32.totalorder %s37_s20, 0 }
   0xf   : > { %s1266_s22 = scalar_select %p38_p5, %s1176_s10, %s40_s21  }
  0x12   : > { %132 = sbr.rel (!%p49_p3) target bundleno = 58 (0x3a), region = 20  ;;  %s134_s23 = sand.u32 (%p49_p3), 1, %s1176_s10  }
  0x13   : > { %s990_s24 = sshll.u32 (%p49_p3), %s1188_s13, 1  ;;  %s988_s25 = sshll.u32 (%p49_p3), %s134_s23, 9 }
  0x14   : > { %s1083_s26 = smul.u32 (%p49_p3), 320, %s1192_s14  ;;  %s1280_s4 = scalar_lea.vmem (%p49_p3), [#allocation3], %s988_s25 }
  0x16   : > { %s140_s27 = sadd.s32 (%p49_p3), %s1083_s26, %s990_s24 }
  0x17   : > { %s992_s28 = sshll.u32 (%p49_p3), %s140_s27, 3 }
  0x18   : > { %s1275_s3 = scalar_lea.vmem (%p49_p3), %s1607_s0, %s992_s28 }
  0x19   : > { %v155_v0 = vld [vmem:[%s1275_s3] sm:$0xff]  ;;  %v157_v1 = vld [vmem:[%s1275_s3 + $0x8] sm:$0xff]  ;;  %v159_v2 = vld [vmem:[%s1275_s3 + $0x50] sm:$0xff] }
  0x1a   : > { %156 = vst [vmem:[%s1280_s4] sm:$0xff] %v155_v0  ;;  %158 = vst [vmem:[%s1280_s4 + $0x8] sm:$0xff] %v157_v1  ;;  %v161_v3 = vld [vmem:[%s1275_s3 + $0x58] sm:$0xff]  ;;  %v163_v4 = vld [vmem:[%s1275_s3 + $0xa0] sm:$0xff] }
  0x1b   : > { %160 = vst [vmem:[%s1280_s4 + $0x10] sm:$0xff] %v159_v2  ;;  %v165_v5 = vld [vmem:[%s1275_s3 + $0xa8] sm:$0xff]  ;;  %162 = vst [vmem:[%s1280_s4 + $0x18] sm:$0xff] %v161_v3  ;;  %v167_v6 = vld [vmem:[%s1275_s3 + $0xf0] sm:$0xff] }
  0x1c   : > { %164 = vst [vmem:[%s1280_s4 + $0x20] sm:$0xff] %v163_v4  ;;  %166 = vst [vmem:[%s1280_s4 + $0x28] sm:$0xff] %v165_v5  ;;  %v169_v7 = vld [vmem:[%s1275_s3 + $0xf8] sm:$0xff]  ;;  %v171_v8 = vld [vmem:[%s1275_s3 + $0x140] sm:$0xff] }
  0x1d   : > { %168 = vst [vmem:[%s1280_s4 + $0x30] sm:$0xff] %v167_v6  ;;  %170 = vst [vmem:[%s1280_s4 + $0x38] sm:$0xff] %v169_v7  ;;  %v173_v9 = vld [vmem:[%s1275_s3 + $0x148] sm:$0xff]  ;;  %v175_v10 = vld [vmem:[%s1275_s3 + $0x190] sm:$0xff] }
  0x1e   : > { %172 = vst [vmem:[%s1280_s4 + $0x40] sm:$0xff] %v171_v8  ;;  %v177_v11 = vld [vmem:[%s1275_s3 + $0x198] sm:$0xff]  ;;  %174 = vst [vmem:[%s1280_s4 + $0x48] sm:$0xff] %v173_v9  ;;  %v179_v12 = vld [vmem:[%s1275_s3 + $0x1e0] sm:$0xff] }
  0x1f   : > { %176 = vst [vmem:[%s1280_s4 + $0x50] sm:$0xff] %v175_v10  ;;  %178 = vst [vmem:[%s1280_s4 + $0x58] sm:$0xff] %v177_v11  ;;  %v181_v13 = vld [vmem:[%s1275_s3 + $0x1e8] sm:$0xff]  ;;  %v183_v14 = vld [vmem:[%s1275_s3 + $0x230] sm:$0xff] }
  0x20   : > { %180 = vst [vmem:[%s1280_s4 + $0x60] sm:$0xff] %v179_v12  ;;  %182 = vst [vmem:[%s1280_s4 + $0x68] sm:$0xff] %v181_v13  ;;  %v185_v15 = vld [vmem:[%s1275_s3 + $0x238] sm:$0xff]  ;;  %v187_v16 = vld [vmem:[%s1275_s3 + $0x280] sm:$0xff] }
  0x21   : > { %184 = vst [vmem:[%s1280_s4 + $0x70] sm:$0xff] %v183_v14  ;;  %v189_v17 = vld [vmem:[%s1275_s3 + $0x288] sm:$0xff]  ;;  %186 = vst [vmem:[%s1280_s4 + $0x78] sm:$0xff] %v185_v15  ;;  %v191_v18 = vld [vmem:[%s1275_s3 + $0x2d0] sm:$0xff] }
  0x22   : > { %188 = vst [vmem:[%s1280_s4 + $0x80] sm:$0xff] %v187_v16  ;;  %190 = vst [vmem:[%s1280_s4 + $0x88] sm:$0xff] %v189_v17  ;;  %v193_v19 = vld [vmem:[%s1275_s3 + $0x2d8] sm:$0xff]  ;;  %v195_v20 = vld [vmem:[%s1275_s3 + $0x320] sm:$0xff] }
  0x23   : > { %192 = vst [vmem:[%s1280_s4 + $0x90] sm:$0xff] %v191_v18  ;;  %194 = vst [vmem:[%s1280_s4 + $0x98] sm:$0xff] %v193_v19  ;;  %v197_v21 = vld [vmem:[%s1275_s3 + $0x328] sm:$0xff]  ;;  %v199_v22 = vld [vmem:[%s1275_s3 + $0x370] sm:$0xff] }
  0x24   : > { %196 = vst [vmem:[%s1280_s4 + $0xa0] sm:$0xff] %v195_v20  ;;  %v201_v23 = vld [vmem:[%s1275_s3 + $0x378] sm:$0xff]  ;;  %198 = vst [vmem:[%s1280_s4 + $0xa8] sm:$0xff] %v197_v21  ;;  %v203_v24 = vld [vmem:[%s1275_s3 + $0x3c0] sm:$0xff] }
  0x25   : > { %200 = vst [vmem:[%s1280_s4 + $0xb0] sm:$0xff] %v199_v22  ;;  %202 = vst [vmem:[%s1280_s4 + $0xb8] sm:$0xff] %v201_v23  ;;  %v205_v25 = vld [vmem:[%s1275_s3 + $0x3c8] sm:$0xff]  ;;  %v207_v26 = vld [vmem:[%s1275_s3 + $0x410] sm:$0xff] }
  0x26   : > { %204 = vst [vmem:[%s1280_s4 + $0xc0] sm:$0xff] %v203_v24  ;;  %206 = vst [vmem:[%s1280_s4 + $0xc8] sm:$0xff] %v205_v25  ;;  %v209_v27 = vld [vmem:[%s1275_s3 + $0x418] sm:$0xff]  ;;  %v211_v28 = vld [vmem:[%s1275_s3 + $0x460] sm:$0xff] }
  0x27   : > { %208 = vst [vmem:[%s1280_s4 + $0xd0] sm:$0xff] %v207_v26  ;;  %v213_v29 = vld [vmem:[%s1275_s3 + $0x468] sm:$0xff]  ;;  %210 = vst [vmem:[%s1280_s4 + $0xd8] sm:$0xff] %v209_v27  ;;  %v215_v30 = vld [vmem:[%s1275_s3 + $0x4b0] sm:$0xff] }
  0x28   : > { %212 = vst [vmem:[%s1280_s4 + $0xe0] sm:$0xff] %v211_v28  ;;  %214 = vst [vmem:[%s1280_s4 + $0xe8] sm:$0xff] %v213_v29  ;;  %v217_v31 = vld [vmem:[%s1275_s3 + $0x4b8] sm:$0xff]  ;;  %v219_v32 = vld [vmem:[%s1275_s3 + $0x500] sm:$0xff] }
  0x29   : > { %216 = vst [vmem:[%s1280_s4 + $0xf0] sm:$0xff] %v215_v30  ;;  %218 = vst [vmem:[%s1280_s4 + $0xf8] sm:$0xff] %v217_v31  ;;  %v221_v33 = vld [vmem:[%s1275_s3 + $0x508] sm:$0xff]  ;;  %v223_v34 = vld [vmem:[%s1275_s3 + $0x550] sm:$0xff] }
  0x2a   : > { %220 = vst [vmem:[%s1280_s4 + $0x100] sm:$0xff] %v219_v32  ;;  %v225_v35 = vld [vmem:[%s1275_s3 + $0x558] sm:$0xff]  ;;  %222 = vst [vmem:[%s1280_s4 + $0x108] sm:$0xff] %v221_v33  ;;  %v227_v36 = vld [vmem:[%s1275_s3 + $0x5a0] sm:$0xff] }
  0x2b   : > { %224 = vst [vmem:[%s1280_s4 + $0x110] sm:$0xff] %v223_v34  ;;  %226 = vst [vmem:[%s1280_s4 + $0x118] sm:$0xff] %v225_v35  ;;  %v229_v37 = vld [vmem:[%s1275_s3 + $0x5a8] sm:$0xff]  ;;  %v231_v38 = vld [vmem:[%s1275_s3 + $0x5f0] sm:$0xff] }
  0x2c   : > { %228 = vst [vmem:[%s1280_s4 + $0x120] sm:$0xff] %v227_v36  ;;  %230 = vst [vmem:[%s1280_s4 + $0x128] sm:$0xff] %v229_v37  ;;  %v233_v39 = vld [vmem:[%s1275_s3 + $0x5f8] sm:$0xff]  ;;  %v235_v40 = vld [vmem:[%s1275_s3 + $0x640] sm:$0xff] }
  0x2d   : > { %232 = vst [vmem:[%s1280_s4 + $0x130] sm:$0xff] %v231_v38  ;;  %v237_v41 = vld [vmem:[%s1275_s3 + $0x648] sm:$0xff]  ;;  %234 = vst [vmem:[%s1280_s4 + $0x138] sm:$0xff] %v233_v39  ;;  %v239_v42 = vld [vmem:[%s1275_s3 + $0x690] sm:$0xff] }
  0x2e   : > { %236 = vst [vmem:[%s1280_s4 + $0x140] sm:$0xff] %v235_v40  ;;  %238 = vst [vmem:[%s1280_s4 + $0x148] sm:$0xff] %v237_v41  ;;  %v241_v43 = vld [vmem:[%s1275_s3 + $0x698] sm:$0xff]  ;;  %v243_v44 = vld [vmem:[%s1275_s3 + $0x6e0] sm:$0xff] }
  0x2f   : > { %240 = vst [vmem:[%s1280_s4 + $0x150] sm:$0xff] %v239_v42  ;;  %242 = vst [vmem:[%s1280_s4 + $0x158] sm:$0xff] %v241_v43  ;;  %v245_v45 = vld [vmem:[%s1275_s3 + $0x6e8] sm:$0xff]  ;;  %v247_v46 = vld [vmem:[%s1275_s3 + $0x730] sm:$0xff] }
  0x30   : > { %244 = vst [vmem:[%s1280_s4 + $0x160] sm:$0xff] %v243_v44  ;;  %v249_v47 = vld [vmem:[%s1275_s3 + $0x738] sm:$0xff]  ;;  %246 = vst [vmem:[%s1280_s4 + $0x168] sm:$0xff] %v245_v45  ;;  %v251_v48 = vld [vmem:[%s1275_s3 + $0x780] sm:$0xff] }
  0x31   : > { %248 = vst [vmem:[%s1280_s4 + $0x170] sm:$0xff] %v247_v46  ;;  %250 = vst [vmem:[%s1280_s4 + $0x178] sm:$0xff] %v249_v47  ;;  %v253_v49 = vld [vmem:[%s1275_s3 + $0x788] sm:$0xff]  ;;  %v255_v50 = vld [vmem:[%s1275_s3 + $0x7d0] sm:$0xff] }
  0x32   : > { %252 = vst [vmem:[%s1280_s4 + $0x180] sm:$0xff] %v251_v48  ;;  %254 = vst [vmem:[%s1280_s4 + $0x188] sm:$0xff] %v253_v49  ;;  %v257_v51 = vld [vmem:[%s1275_s3 + $0x7d8] sm:$0xff]  ;;  %v259_v52 = vld [vmem:[%s1275_s3 + $0x820] sm:$0xff] }
  0x33   : > { %256 = vst [vmem:[%s1280_s4 + $0x190] sm:$0xff] %v255_v50  ;;  %v261_v53 = vld [vmem:[%s1275_s3 + $0x828] sm:$0xff]  ;;  %258 = vst [vmem:[%s1280_s4 + $0x198] sm:$0xff] %v257_v51  ;;  %v263_v54 = vld [vmem:[%s1275_s3 + $0x870] sm:$0xff] }
  0x34   : > { %260 = vst [vmem:[%s1280_s4 + $0x1a0] sm:$0xff] %v259_v52  ;;  %262 = vst [vmem:[%s1280_s4 + $0x1a8] sm:$0xff] %v261_v53  ;;  %v265_v55 = vld [vmem:[%s1275_s3 + $0x878] sm:$0xff]  ;;  %v267_v56 = vld [vmem:[%s1275_s3 + $0x8c0] sm:$0xff] }
  0x35   : > { %264 = vst [vmem:[%s1280_s4 + $0x1b0] sm:$0xff] %v263_v54  ;;  %266 = vst [vmem:[%s1280_s4 + $0x1b8] sm:$0xff] %v265_v55  ;;  %v269_v57 = vld [vmem:[%s1275_s3 + $0x8c8] sm:$0xff]  ;;  %v271_v58 = vld [vmem:[%s1275_s3 + $0x910] sm:$0xff] }
  0x36   : > { %268 = vst [vmem:[%s1280_s4 + $0x1c0] sm:$0xff] %v267_v56  ;;  %v273_v59 = vld [vmem:[%s1275_s3 + $0x918] sm:$0xff]  ;;  %270 = vst [vmem:[%s1280_s4 + $0x1c8] sm:$0xff] %v269_v57  ;;  %v275_v60 = vld [vmem:[%s1275_s3 + $0x960] sm:$0xff] }
  0x37   : > { %272 = vst [vmem:[%s1280_s4 + $0x1d0] sm:$0xff] %v271_v58  ;;  %274 = vst [vmem:[%s1280_s4 + $0x1d8] sm:$0xff] %v273_v59  ;;  %v277_v61 = vld [vmem:[%s1275_s3 + $0x968] sm:$0xff]  ;;  %v279_v62 = vld [vmem:[%s1275_s3 + $0x9b0] sm:$0xff] }
  0x38   : > { %276 = vst [vmem:[%s1280_s4 + $0x1e0] sm:$0xff] %v275_v60  ;;  %278 = vst [vmem:[%s1280_s4 + $0x1e8] sm:$0xff] %v277_v61  ;;  %v281_v63 = vld [vmem:[%s1275_s3 + $0x9b8] sm:$0xff] }
  0x39   : > { %280 = vst [vmem:[%s1280_s4 + $0x1f0] sm:$0xff] %v279_v62  ;;  %282 = vst [vmem:[%s1280_s4 + $0x1f8] sm:$0xff] %v281_v63 }
  0x3a PF: > { %p993_p7 = scmp.ge.s32.totalorder %s1196_s15, 1  ;;  %p299_p8 = scmp.lt.s32.totalorder %s1196_s15, 11 }
  0x3c   : > { %p300_p9 = pnand %p993_p7, %p299_p8 }
  0x3d   : > { %s306_s5 = sand.u32 (!%p300_p9), 1, %s1172_s9   ;;  %s995_s6 = sshll.u32 (!%p300_p9), %s1180_s11, 5 }
  0x3e   : > { %303 = sbr.rel (%p300_p9) target bundleno = 437 (0x1b5), region = 47  ;;  %s994_s7 = sshll.u32 (!%p300_p9), %s306_s5, 9 }
  0x3f   : > { %p341_p10 = scmp.lt.s32.totalorder (!%p300_p9), %s995_s6, 159  ;;  %s997_s8 = sshll.u32 (!%p300_p9), %s1184_s12, 5 }
  0x40   : > { %p350_p11 = scmp.lt.s32.totalorder (!%p300_p9), %s997_s8, 63  ;;  %s1422_s9 = scalar_lea.vmem (!%p300_p9), [#allocation3], %s994_s7 }
  0x41   : > { %p999_p12 = scmp.ne.s32.totalorder (!%p300_p9), %s1180_s11, 0 }
  0x45   : > { %s1623_s6 = smov (!%p341_p10, %s995_s6), 159  ;;  %s1625_s8 = smov (!%p350_p11, %s997_s8), 63 }
  0x46   : > { %s996_s18 = sshll.u32 %s1623_s6, 3  ;;  %s998_s23 = sshll.u32 %s1625_s8, 3  ;;  %v1198_v0 = vmov (!%p999_p12), 0.0  }
  0x47   : > { %s1415_s21 = scalar_lea.vmem %s1608_s1, %s996_s18  ;;  %s1420_s26 = scalar_lea.vmem %s1609_s2, %s998_s23  ;;  %362 = vst [vmem:[#allocation2] sm:$0xff] (!%p999_p12), %v1198_v0  ;;  %363 = vst [vmem:[#allocation2 + $0x8] sm:$0xff] (!%p999_p12), %v1198_v0 }
  0x48   : > { %361 = sbr.rel (%p999_p12) target bundleno = 87 (0x57), region = 55  ;;  %364 = vst [vmem:[#allocation2 + $0x10] sm:$0xff] (!%p999_p12), %v1198_v0  ;;  %365 = vst [vmem:[#allocation2 + $0x18] sm:$0xff] (!%p999_p12), %v1198_v0 }
  0x49   : > { %366 = vst [vmem:[#allocation2 + $0x20] sm:$0xff] (!%p999_p12), %v1198_v0  ;;  %367 = vst [vmem:[#allocation2 + $0x28] sm:$0xff] (!%p999_p12), %v1198_v0 }
  0x4a   : > { %368 = vst [vmem:[#allocation2 + $0x30] sm:$0xff] (!%p999_p12), %v1198_v0  ;;  %369 = vst [vmem:[#allocation2 + $0x38] sm:$0xff] (!%p999_p12), %v1198_v0 }
  0x4b   : > { %370 = vst [vmem:[#allocation2 + $0x40] sm:$0xff] (!%p999_p12), %v1198_v0  ;;  %371 = vst [vmem:[#allocation2 + $0x48] sm:$0xff] (!%p999_p12), %v1198_v0 }
  0x4c   : > { %372 = vst [vmem:[#allocation2 + $0x50] sm:$0xff] (!%p999_p12), %v1198_v0  ;;  %373 = vst [vmem:[#allocation2 + $0x58] sm:$0xff] (!%p999_p12), %v1198_v0 }
  0x4d   : > { %374 = vst [vmem:[#allocation2 + $0x60] sm:$0xff] (!%p999_p12), %v1198_v0  ;;  %375 = vst [vmem:[#allocation2 + $0x68] sm:$0xff] (!%p999_p12), %v1198_v0 }
  0x4e   : > { %376 = vst [vmem:[#allocation2 + $0x70] sm:$0xff] (!%p999_p12), %v1198_v0  ;;  %377 = vst [vmem:[#allocation2 + $0x78] sm:$0xff] (!%p999_p12), %v1198_v0 }
  0x4f   : > { %378 = vst [vmem:[#allocation2 + $0x80] sm:$0xff] %v1198_v0  ;;  %379 = vst [vmem:[#allocation2 + $0x88] sm:$0xff] %v1198_v0 }
  0x50   : > { %380 = vst [vmem:[#allocation2 + $0x90] sm:$0xff] %v1198_v0  ;;  %381 = vst [vmem:[#allocation2 + $0x98] sm:$0xff] %v1198_v0 }
  0x51   : > { %382 = vst [vmem:[#allocation2 + $0xa0] sm:$0xff] %v1198_v0  ;;  %383 = vst [vmem:[#allocation2 + $0xa8] sm:$0xff] %v1198_v0 }
  0x52   : > { %384 = vst [vmem:[#allocation2 + $0xb0] sm:$0xff] %v1198_v0  ;;  %385 = vst [vmem:[#allocation2 + $0xb8] sm:$0xff] %v1198_v0 }
  0x53   : > { %386 = vst [vmem:[#allocation2 + $0xc0] sm:$0xff] %v1198_v0  ;;  %387 = vst [vmem:[#allocation2 + $0xc8] sm:$0xff] %v1198_v0 }
  0x54   : > { %388 = vst [vmem:[#allocation2 + $0xd0] sm:$0xff] %v1198_v0  ;;  %389 = vst [vmem:[#allocation2 + $0xd8] sm:$0xff] %v1198_v0 }
  0x55   : > { %390 = vst [vmem:[#allocation2 + $0xe0] sm:$0xff] %v1198_v0  ;;  %391 = vst [vmem:[#allocation2 + $0xe8] sm:$0xff] %v1198_v0 }
  0x56   : > { %392 = vst [vmem:[#allocation2 + $0xf0] sm:$0xff] %v1198_v0  ;;  %393 = vst [vmem:[#allocation2 + $0xf8] sm:$0xff] %v1198_v0 }
  0x57 PF: > { %v490_v1 = vld [vmem:[%s1415_s21] sm:$0xff]  ;;  %v491_v2 = vld [vmem:[%s1415_s21 + $0x8] sm:$0xff]  ;;  %v492_v3 = vld [vmem:[%s1415_s21 + $0x10] sm:$0xff]  ;;  %v1199_v4 = vmov 0.0|0.0   ;;  %p1000_p13 = scmp.ne.s32.totalorder %s1180_s11, 4 }
  0x58   : > { %1003 = vmatprep.subr.bf16.mxu0 %v1199_v4  ;;  %1051 = vmatprep.subr.bf16.mxu1 %v1199_v4  ;;  %v1004_v5 = vpack.c.bf16 %v491_v2, %v490_v1  ;;  %v493_v6 = vld [vmem:[%s1415_s21 + $0x18] sm:$0xff]  ;;  %v494_v8 = vld [vmem:[%s1415_s21 + $0x20] sm:$0xff]  ;;  %v495_v9 = vld [vmem:[%s1415_s21 + $0x28] sm:$0xff] }
  0x59   : > { %v1007_v7 = vpack.c.bf16 %v493_v6, %v492_v3  ;;  %v1010_v10 = vpack.c.bf16 %v495_v9, %v494_v8  ;;  %v496_v11 = vld [vmem:[%s1415_s21 + $0x30] sm:$0xff]  ;;  %v497_v12 = vld [vmem:[%s1415_s21 + $0x38] sm:$0xff]  ;;  %v427_v13 = vld [vmem:[%s1422_s9 + $0x8] sm:$0xff] }
  0x5a   : > { %1005 = vmatpush1.bf16.msra.mxu0 %v1004_v5  ;;  %1067 = vmatpush1.bf16.msra.mxu1 %v1004_v5  ;;  %v1013_v14 = vpack.c.bf16 %v497_v12, %v496_v11  ;;  %v459_v15 = vld [vmem:[%s1422_s9 + $0x108] sm:$0xff]  ;;  %v498_v16 = vld [vmem:[%s1415_s21 + $0x40] sm:$0xff]  ;;  %v500_v19 = vld [vmem:[%s1415_s21 + $0x50] sm:$0xff] }
  0x5b   : > { %1006 = vmatprep.subr.bf16.mxu0 %v1199_v4  ;;  %1052 = vmatprep.subr.bf16.mxu1 %v1199_v4  ;;  %v499_v17 = vld [vmem:[%s1415_s21 + $0x48] sm:$0xff]  ;;  %v501_v20 = vld [vmem:[%s1415_s21 + $0x58] sm:$0xff]  ;;  %v502_v22 = vld [vmem:[%s1415_s21 + $0x60] sm:$0xff] }
  0x5c   : > { %586 = vmatprep.mubr.f32.mxu0 %v427_v13  ;;  %666 = vmatprep.mubr.f32.mxu1 %v459_v15  ;;  %v1016_v18 = vpack.c.bf16 %v499_v17, %v498_v16  ;;  %v1019_v21 = vpack.c.bf16 %v501_v20, %v500_v19  ;;  %v503_v23 = vld [vmem:[%s1415_s21 + $0x68] sm:$0xff]  ;;  %v504_v25 = vld [vmem:[%s1415_s21 + $0x70] sm:$0xff]  ;;  %v505_v26 = vld [vmem:[%s1415_s21 + $0x78] sm:$0xff] }
  0x5d   : > { %v1022_v24 = vpack.c.bf16 %v503_v23, %v502_v22  ;;  %v1025_v27 = vpack.c.bf16 %v505_v26, %v504_v25  ;;  %v506_v28 = vld [vmem:[%s1415_s21 + $0x80] sm:$0xff]  ;;  %v507_v29 = vld [vmem:[%s1415_s21 + $0x88] sm:$0xff]  ;;  %v508_v31 = vld [vmem:[%s1415_s21 + $0x90] sm:$0xff] }
  0x5e   : > { %1008 = vmatpush1.bf16.msra.mxu0 %v1007_v7  ;;  %1068 = vmatpush1.bf16.msra.mxu1 %v1007_v7  ;;  %v1028_v30 = vpack.c.bf16 %v507_v29, %v506_v28  ;;  %v509_v32 = vld [vmem:[%s1415_s21 + $0x98] sm:$0xff]  ;;  %v510_v34 = vld [vmem:[%s1415_s21 + $0xa0] sm:$0xff]  ;;  %v511_v35 = vld [vmem:[%s1415_s21 + $0xa8] sm:$0xff] }
  0x5f   : > { %1009 = vmatprep.subr.bf16.mxu0 %v1199_v4  ;;  %1053 = vmatprep.subr.bf16.mxu1 %v1199_v4  ;;  %v1031_v33 = vpack.c.bf16 %v509_v32, %v508_v31  ;;  %v1034_v36 = vpack.c.bf16 %v511_v35, %v510_v34  ;;  %v512_v37 = vld [vmem:[%s1415_s21 + $0xb0] sm:$0xff]  ;;  %v513_v38 = vld [vmem:[%s1415_s21 + $0xb8] sm:$0xff]  ;;  %v514_v40 = vld [vmem:[%s1415_s21 + $0xc0] sm:$0xff] }
  0x60   : > { %v1037_v39 = vpack.c.bf16 %v513_v38, %v512_v37  ;;  %v515_v41 = vld [vmem:[%s1415_s21 + $0xc8] sm:$0xff]  ;;  %v516_v43 = vld [vmem:[%s1415_s21 + $0xd0] sm:$0xff]  ;;  %v517_v44 = vld [vmem:[%s1415_s21 + $0xd8] sm:$0xff] }
  0x61   : > { %v1040_v42 = vpack.c.bf16 %v515_v41, %v514_v40  ;;  %v1043_v45 = vpack.c.bf16 %v517_v44, %v516_v43  ;;  %v518_v46 = vld [vmem:[%s1415_s21 + $0xe0] sm:$0xff]  ;;  %v519_v47 = vld [vmem:[%s1415_s21 + $0xe8] sm:$0xff]  ;;  %v520_v49 = vld [vmem:[%s1415_s21 + $0xf0] sm:$0xff] }
  0x62   : > { %1011 = vmatpush1.bf16.msra.mxu0 %v1010_v10  ;;  %1069 = vmatpush1.bf16.msra.mxu1 %v1010_v10  ;;  %v1046_v48 = vpack.c.bf16 %v519_v47, %v518_v46  ;;  %v521_v50 = vld [vmem:[%s1415_s21 + $0xf8] sm:$0xff]  ;;  %v426_v52 = vld [vmem:[%s1422_s9] sm:$0xff]  ;;  %v428_v56 = vld [vmem:[%s1422_s9 + $0x10] sm:$0xff] }
  0x63   : > { %1012 = vmatprep.subr.bf16.mxu0 %v1199_v4  ;;  %1054 = vmatprep.subr.bf16.mxu1 %v1199_v4  ;;  %v1049_v51 = vpack.c.bf16 %v521_v50, %v520_v49  ;;  %v458_v53 = vld [vmem:[%s1422_s9 + $0x100] sm:$0xff]  ;;  %v429_v54 = vld [vmem:[%s1422_s9 + $0x18] sm:$0xff]  ;;  %v460_v57 = vld [vmem:[%s1422_s9 + $0x110] sm:$0xff] }
  0x64   : > { %v461_v55 = vld [vmem:[%s1422_s9 + $0x118] sm:$0xff]  ;;  %v431_v58 = vld [vmem:[%s1422_s9 + $0x28] sm:$0xff]  ;;  %v430_v60 = vld [vmem:[%s1422_s9 + $0x20] sm:$0xff] }
  0x65   : > { %v463_v59 = vld [vmem:[%s1422_s9 + $0x128] sm:$0xff]  ;;  %v462_v61 = vld [vmem:[%s1422_s9 + $0x120] sm:$0xff]  ;;  %v433_v62 = vld [vmem:[%s1422_s9 + $0x38] sm:$0xff] }
  0x66   : > { %1014 = vmatpush1.bf16.msra.mxu0 %v1013_v14  ;;  %1070 = vmatpush1.bf16.msra.mxu1 %v1013_v14  ;;  %v465_v63 = vld [vmem:[%s1422_s9 + $0x138] sm:$0xff]  ;;  %v432_v0 = vld [vmem:[%s1422_s9 + $0x30] sm:$0xff]  ;;  %v435_v2 = vld [vmem:[%s1422_s9 + $0x48] sm:$0xff] }
  0x67   : > { %1015 = vmatprep.subr.bf16.mxu0 %v1199_v4  ;;  %1055 = vmatprep.subr.bf16.mxu1 %v1199_v4  ;;  %v464_v1 = vld [vmem:[%s1422_s9 + $0x130] sm:$0xff]  ;;  %v467_v3 = vld [vmem:[%s1422_s9 + $0x148] sm:$0xff]  ;;  %v466_v5 = vld [vmem:[%s1422_s9 + $0x140] sm:$0xff] }
  0x68   : > { %v437_v6 = vld [vmem:[%s1422_s9 + $0x58] sm:$0xff]  ;;  %v436_v8 = vld [vmem:[%s1422_s9 + $0x50] sm:$0xff]  ;;  %v439_v10 = vld [vmem:[%s1422_s9 + $0x68] sm:$0xff] }
  0x69   : > { %v469_v7 = vld [vmem:[%s1422_s9 + $0x158] sm:$0xff]  ;;  %v468_v9 = vld [vmem:[%s1422_s9 + $0x150] sm:$0xff]  ;;  %v471_v11 = vld [vmem:[%s1422_s9 + $0x168] sm:$0xff] }
  0x6a   : > { %1017 = vmatpush1.bf16.msra.mxu0 %v1016_v18  ;;  %1071 = vmatpush1.bf16.msra.mxu1 %v1016_v18  ;;  %v438_v12 = vld [vmem:[%s1422_s9 + $0x60] sm:$0xff]  ;;  %v441_v14 = vld [vmem:[%s1422_s9 + $0x78] sm:$0xff]  ;;  %v440_v16 = vld [vmem:[%s1422_s9 + $0x70] sm:$0xff] }
  0x6b   : > { %1018 = vmatprep.subr.bf16.mxu0 %v1199_v4  ;;  %1056 = vmatprep.subr.bf16.mxu1 %v1199_v4  ;;  %v470_v13 = vld [vmem:[%s1422_s9 + $0x160] sm:$0xff]  ;;  %v473_v15 = vld [vmem:[%s1422_s9 + $0x178] sm:$0xff]  ;;  %v472_v17 = vld [vmem:[%s1422_s9 + $0x170] sm:$0xff] }
  0x6c   : > { %v443_v18 = vld [vmem:[%s1422_s9 + $0x88] sm:$0xff]  ;;  %v442_v20 = vld [vmem:[%s1422_s9 + $0x80] sm:$0xff]  ;;  %v445_v22 = vld [vmem:[%s1422_s9 + $0x98] sm:$0xff] }
  0x6d   : > { %v475_v19 = vld [vmem:[%s1422_s9 + $0x188] sm:$0xff]  ;;  %v477_v23 = vld [vmem:[%s1422_s9 + $0x198] sm:$0xff]  ;;  %v476_v25 = vld [vmem:[%s1422_s9 + $0x190] sm:$0xff] }
  0x6e   : > { %1020 = vmatpush1.bf16.msra.mxu0 %v1019_v21  ;;  %1072 = vmatpush1.bf16.msra.mxu1 %v1019_v21  ;;  %v474_v21 = vld [vmem:[%s1422_s9 + $0x180] sm:$0xff]  ;;  %v447_v26 = vld [vmem:[%s1422_s9 + $0xa8] sm:$0xff]  ;;  %v481_v31 = vld [vmem:[%s1422_s9 + $0x1b8] sm:$0xff] }
  0x6f   : > { %1021 = vmatprep.subr.bf16.mxu0 %v1199_v4  ;;  %1057 = vmatprep.subr.bf16.mxu1 %v1199_v4  ;;  %v446_v28 = vld [vmem:[%s1422_s9 + $0xa0] sm:$0xff]  ;;  %v448_v32 = vld [vmem:[%s1422_s9 + $0xb0] sm:$0xff]  ;;  %v451_v34 = vld [vmem:[%s1422_s9 + $0xc8] sm:$0xff] }
  0x70   : > { %v478_v29 = vld [vmem:[%s1422_s9 + $0x1a0] sm:$0xff]  ;;  %v483_v35 = vld [vmem:[%s1422_s9 + $0x1c8] sm:$0xff]  ;;  %v453_v38 = vld [vmem:[%s1422_s9 + $0xd8] sm:$0xff] }
  0x71   : > { %v482_v37 = vld [vmem:[%s1422_s9 + $0x1c0] sm:$0xff]  ;;  %v452_v40 = vld [vmem:[%s1422_s9 + $0xd0] sm:$0xff]  ;;  %v487_v43 = vld [vmem:[%s1422_s9 + $0x1e8] sm:$0xff] }
  0x72   : > { %1023 = vmatpush1.bf16.msra.mxu0 %v1022_v24  ;;  %1073 = vmatpush1.bf16.msra.mxu1 %v1022_v24  ;;  %v444_v24 = vld [vmem:[%s1422_s9 + $0x90] sm:$0xff]  ;;  %v454_v44 = vld [vmem:[%s1422_s9 + $0xe0] sm:$0xff]  ;;  %v457_v46 = vld [vmem:[%s1422_s9 + $0xf8] sm:$0xff] }
  0x73   : > { %1024 = vmatprep.subr.bf16.mxu0 %v1199_v4  ;;  %1058 = vmatprep.subr.bf16.mxu1 %v1199_v4  ;;  %v484_v41 = vld [vmem:[%s1422_s9 + $0x1d0] sm:$0xff]  ;;  %v489_v47 = vld [vmem:[%s1422_s9 + $0x1f8] sm:$0xff]  ;;  %v394_v50 = vld [vmem:[#allocation2] sm:$0xff] }
  0x74   : > { %v488_v49 = vld [vmem:[%s1422_s9 + $0x1f0] sm:$0xff] }
  0x76   : > { %1026 = vmatpush1.bf16.msra.mxu0 %v1025_v27  ;;  %1074 = vmatpush1.bf16.msra.mxu1 %v1025_v27  ;;  %v479_v27 = vld [vmem:[%s1422_s9 + $0x1a8] sm:$0xff] }
  0x77   : > { %1027 = vmatprep.subr.bf16.mxu0 %v1199_v4  ;;  %1059 = vmatprep.subr.bf16.mxu1 %v1199_v4 }
  0x7a   : > { %1029 = vmatpush1.bf16.msra.mxu0 %v1028_v30  ;;  %1075 = vmatpush1.bf16.msra.mxu1 %v1028_v30  ;;  %v449_v30 = vld [vmem:[%s1422_s9 + $0xb8] sm:$0xff] }
  0x7b   : > { %1030 = vmatprep.subr.bf16.mxu0 %v1199_v4  ;;  %1060 = vmatprep.subr.bf16.mxu1 %v1199_v4 }
  0x7e   : > { %1032 = vmatpush1.bf16.msra.mxu0 %v1031_v33  ;;  %1076 = vmatpush1.bf16.msra.mxu1 %v1031_v33  ;;  %v480_v33 = vld [vmem:[%s1422_s9 + $0x1b0] sm:$0xff] }
  0x7f   : > { %1033 = vmatprep.subr.bf16.mxu0 %v1199_v4  ;;  %1061 = vmatprep.subr.bf16.mxu1 %v1199_v4 }
  0x82   : > { %1035 = vmatpush1.bf16.msra.mxu0 %v1034_v36  ;;  %1077 = vmatpush1.bf16.msra.mxu1 %v1034_v36  ;;  %v450_v36 = vld [vmem:[%s1422_s9 + $0xc0] sm:$0xff] }
  0x83   : > { %1036 = vmatprep.subr.bf16.mxu0 %v1199_v4  ;;  %1062 = vmatprep.subr.bf16.mxu1 %v1199_v4 }
  0x86   : > { %1038 = vmatpush1.bf16.msra.mxu0 %v1037_v39  ;;  %1078 = vmatpush1.bf16.msra.mxu1 %v1037_v39  ;;  %v485_v39 = vld [vmem:[%s1422_s9 + $0x1d8] sm:$0xff] }
  0x87   : > { %1039 = vmatprep.subr.bf16.mxu0 %v1199_v4  ;;  %1063 = vmatprep.subr.bf16.mxu1 %v1199_v4 }
  0x8a   : > { %1041 = vmatpush1.bf16.msra.mxu0 %v1040_v42  ;;  %1079 = vmatpush1.bf16.msra.mxu1 %v1040_v42  ;;  %v455_v42 = vld [vmem:[%s1422_s9 + $0xe8] sm:$0xff] }
  0x8b   : > { %1042 = vmatprep.subr.bf16.mxu0 %v1199_v4  ;;  %1064 = vmatprep.subr.bf16.mxu1 %v1199_v4 }
  0x8e   : > { %1044 = vmatpush1.bf16.msra.mxu0 %v1043_v45  ;;  %1080 = vmatpush1.bf16.msra.mxu1 %v1043_v45  ;;  %v486_v45 = vld [vmem:[%s1422_s9 + $0x1e0] sm:$0xff] }
  0x8f   : > { %1045 = vmatprep.subr.bf16.mxu0 %v1199_v4  ;;  %1065 = vmatprep.subr.bf16.mxu1 %v1199_v4 }
  0x92   : > { %1047 = vmatpush1.bf16.msra.mxu0 %v1046_v48  ;;  %1081 = vmatpush1.bf16.msra.mxu1 %v1046_v48  ;;  %v456_v48 = vld [vmem:[%s1422_s9 + $0xf0] sm:$0xff] }
  0x93   : > { %1048 = vmatprep.subr.bf16.mxu0 %v1199_v4  ;;  %1066 = vmatprep.subr.bf16.mxu1 %v1199_v4  ;;  %v434_v4 = vld [vmem:[%s1422_s9 + $0x40] sm:$0xff] }
  0x96   : > { %1050 = vmatpush1.bf16.msra.mxu0 %v1049_v51  ;;  %1082 = vmatpush1.bf16.msra.mxu1 %v1049_v51  ;;  %v410_v51 = vld [vmem:[#allocation2 + $0x80] sm:$0xff] }
  0x99   : > { %587 = vmatmul.mubr.f32.vlgmr.msra.gmra.mrb[0].mxu0 %v426_v52  ;;  %667 = vmatmul.mubr.f32.vlgmr.msra.gmra.mrb[0].mxu1 %v458_v53 }
  0x9a   : > { %591 = vmatprep.mubr.f32.mxu0 %v429_v54  ;;  %671 = vmatprep.mubr.f32.mxu1 %v461_v55 }
  0x9d   : > { %592 = vmatmul.mubr.f32.gmra.mrb[2].mxu0 %v428_v56  ;;  %672 = vmatmul.mubr.f32.gmra.mrb[2].mxu1 %v460_v57 }
  0x9e   : > { %596 = vmatprep.mubr.f32.mxu0 %v431_v58  ;;  %676 = vmatprep.mubr.f32.mxu1 %v463_v59  ;;  %v395_v58 = vld [vmem:[#allocation2 + $0x8] sm:$0xff] }
  0x9f   : > { %v411_v59 = vld [vmem:[#allocation2 + $0x88] sm:$0xff] }
  0xa1   : > { %597 = vmatmul.mubr.f32.gmra.mrb[4].mxu0 %v430_v60  ;;  %677 = vmatmul.mubr.f32.gmra.mrb[4].mxu1 %v462_v61 }
  0xa2   : > { %601 = vmatprep.mubr.f32.mxu0 %v433_v62  ;;  %681 = vmatprep.mubr.f32.mxu1 %v465_v63 }
  0xa5   : > { %602 = vmatmul.mubr.f32.gmra.mrb[6].mxu0 %v432_v0  ;;  %682 = vmatmul.mubr.f32.gmra.mrb[6].mxu1 %v464_v1 }
  0xa6   : > { %606 = vmatprep.mubr.f32.mxu0 %v435_v2  ;;  %686 = vmatprep.mubr.f32.mxu1 %v467_v3  ;;  %v396_v2 = vld [vmem:[#allocation2 + $0x10] sm:$0xff] }
  0xa7   : > { %v412_v3 = vld [vmem:[#allocation2 + $0x90] sm:$0xff] }
  0xa9   : > { %607 = vmatmul.mubr.f32.gmra.mrb[8].mxu0 %v434_v4  ;;  %687 = vmatmul.mubr.f32.gmra.mrb[8].mxu1 %v466_v5 }
  0xaa   : > { %611 = vmatprep.mubr.f32.mxu0 %v437_v6  ;;  %691 = vmatprep.mubr.f32.mxu1 %v469_v7 }
  0xad   : > { %612 = vmatmul.mubr.f32.gmra.mrb[10].mxu0 %v436_v8  ;;  %692 = vmatmul.mubr.f32.gmra.mrb[10].mxu1 %v468_v9 }
  0xae   : > { %616 = vmatprep.mubr.f32.mxu0 %v439_v10  ;;  %696 = vmatprep.mubr.f32.mxu1 %v471_v11  ;;  %v397_v10 = vld [vmem:[#allocation2 + $0x18] sm:$0xff] }
  0xaf   : > { %v413_v11 = vld [vmem:[#allocation2 + $0x98] sm:$0xff] }
  0xb1   : > { %617 = vmatmul.mubr.f32.gmra.mrb[12].mxu0 %v438_v12  ;;  %697 = vmatmul.mubr.f32.gmra.mrb[12].mxu1 %v470_v13 }
  0xb2   : > { %621 = vmatprep.mubr.f32.mxu0 %v441_v14  ;;  %701 = vmatprep.mubr.f32.mxu1 %v473_v15 }
  0xb5   : > { %622 = vmatmul.mubr.f32.gmra.mrb[14].mxu0 %v440_v16  ;;  %702 = vmatmul.mubr.f32.gmra.mrb[14].mxu1 %v472_v17 }
  0xb6   : > { %626 = vmatprep.mubr.f32.mxu0 %v443_v18  ;;  %706 = vmatprep.mubr.f32.mxu1 %v475_v19  ;;  %v398_v18 = vld [vmem:[#allocation2 + $0x20] sm:$0xff] }
  0xb7   : > { %v414_v19 = vld [vmem:[#allocation2 + $0xa0] sm:$0xff] }
  0xb9   : > { %627 = vmatmul.mubr.f32.gmra.mrb[16].mxu0 %v442_v20  ;;  %707 = vmatmul.mubr.f32.gmra.mrb[16].mxu1 %v474_v21 }
  0xba   : > { %631 = vmatprep.mubr.f32.mxu0 %v445_v22  ;;  %711 = vmatprep.mubr.f32.mxu1 %v477_v23 }
  0xbd   : > { %632 = vmatmul.mubr.f32.gmra.mrb[18].mxu0 %v444_v24  ;;  %712 = vmatmul.mubr.f32.gmra.mrb[18].mxu1 %v476_v25 }
  0xbe   : > { %636 = vmatprep.mubr.f32.mxu0 %v447_v26  ;;  %716 = vmatprep.mubr.f32.mxu1 %v479_v27  ;;  %v399_v26 = vld [vmem:[#allocation2 + $0x28] sm:$0xff] }
  0xbf   : > { %v415_v27 = vld [vmem:[#allocation2 + $0xa8] sm:$0xff] }
  0xc1   : > { %637 = vmatmul.mubr.f32.gmra.mrb[20].mxu0 %v446_v28  ;;  %717 = vmatmul.mubr.f32.gmra.mrb[20].mxu1 %v478_v29 }
  0xc2   : > { %641 = vmatprep.mubr.f32.mxu0 %v449_v30  ;;  %721 = vmatprep.mubr.f32.mxu1 %v481_v31 }
  0xc5   : > { %642 = vmatmul.mubr.f32.gmra.mrb[22].mxu0 %v448_v32  ;;  %722 = vmatmul.mubr.f32.gmra.mrb[22].mxu1 %v480_v33 }
  0xc6   : > { %646 = vmatprep.mubr.f32.mxu0 %v451_v34  ;;  %726 = vmatprep.mubr.f32.mxu1 %v483_v35  ;;  %v400_v34 = vld [vmem:[#allocation2 + $0x30] sm:$0xff] }
  0xc7   : > { %v416_v35 = vld [vmem:[#allocation2 + $0xb0] sm:$0xff] }
  0xc9   : > { %647 = vmatmul.mubr.f32.gmra.mrb[24].mxu0 %v450_v36  ;;  %727 = vmatmul.mubr.f32.gmra.mrb[24].mxu1 %v482_v37 }
  0xca   : > { %651 = vmatprep.mubr.f32.mxu0 %v453_v38  ;;  %731 = vmatprep.mubr.f32.mxu1 %v485_v39 }
  0xcd   : > { %652 = vmatmul.mubr.f32.gmra.mrb[26].mxu0 %v452_v40  ;;  %732 = vmatmul.mubr.f32.gmra.mrb[26].mxu1 %v484_v41 }
  0xce   : > { %656 = vmatprep.mubr.f32.mxu0 %v455_v42  ;;  %736 = vmatprep.mubr.f32.mxu1 %v487_v43  ;;  %v401_v42 = vld [vmem:[#allocation2 + $0x38] sm:$0xff] }
  0xcf   : > { %v417_v43 = vld [vmem:[#allocation2 + $0xb8] sm:$0xff] }
  0xd1   : > { %657 = vmatmul.mubr.f32.gmra.mrb[28].mxu0 %v454_v44  ;;  %737 = vmatmul.mubr.f32.gmra.mrb[28].mxu1 %v486_v45 }
  0xd2   : > { %661 = vmatprep.mubr.f32.mxu0 %v457_v46  ;;  %741 = vmatprep.mubr.f32.mxu1 %v489_v47 }
  0xd5   : > { %662 = vmatmul.mubr.f32.gmra.mrb[30].mxu0 %v456_v48  ;;  %742 = vmatmul.mubr.f32.gmra.mrb[30].mxu1 %v488_v49 }
 0x16c   : > { %v588_v52 = vpop.f32.mrb[0].mxu0  ;;  %v668_v53 = vpop.f32.mrb[0].mxu1 }
 0x16d   : > { %v747_v54 = vadd.f32 %v588_v52, %v394_v50  ;;  %v763_v55 = vadd.f32 %v668_v53, %v410_v51  ;;  %v590_v56 = vpop.f32.mrb[1].mxu0  ;;  %v670_v57 = vpop.f32.mrb[1].mxu1  ;;  %v402_v50 = vld [vmem:[#allocation2 + $0x40] sm:$0xff] }
 0x16e   : > { %v418_v51 = vld [vmem:[#allocation2 + $0xc0] sm:$0xff] }
 0x16f   : > { %779 = vst [vmem:[#allocation2] sm:$0xff] %v747_v54  ;;  %795 = vst [vmem:[#allocation2 + $0x80] sm:$0xff] %v763_v55 }
 0x170   : > { %v593_v60 = vpop.f32.mrb[2].mxu0  ;;  %v673_v61 = vpop.f32.mrb[2].mxu1 }
 0x171   : > { %v748_v62 = vadd.f32 %v593_v60, %v395_v58  ;;  %v764_v63 = vadd.f32 %v673_v61, %v411_v59  ;;  %v595_v0 = vpop.f32.mrb[3].mxu0  ;;  %v675_v1 = vpop.f32.mrb[3].mxu1  ;;  %v403_v58 = vld [vmem:[#allocation2 + $0x48] sm:$0xff] }
 0x172   : > { %v419_v59 = vld [vmem:[#allocation2 + $0xc8] sm:$0xff] }
 0x173   : > { %780 = vst [vmem:[#allocation2 + $0x8] sm:$0xff] %v748_v62  ;;  %796 = vst [vmem:[#allocation2 + $0x88] sm:$0xff] %v764_v63 }
 0x174   : > { %v598_v4 = vpop.f32.mrb[4].mxu0  ;;  %v678_v5 = vpop.f32.mrb[4].mxu1 }
 0x175   : > { %v749_v6 = vadd.f32 %v598_v4, %v396_v2  ;;  %v765_v7 = vadd.f32 %v678_v5, %v412_v3  ;;  %v600_v8 = vpop.f32.mrb[5].mxu0  ;;  %v680_v9 = vpop.f32.mrb[5].mxu1  ;;  %v404_v2 = vld [vmem:[#allocation2 + $0x50] sm:$0xff] }
 0x176   : > { %v420_v3 = vld [vmem:[#allocation2 + $0xd0] sm:$0xff] }
 0x177   : > { %781 = vst [vmem:[#allocation2 + $0x10] sm:$0xff] %v749_v6  ;;  %797 = vst [vmem:[#allocation2 + $0x90] sm:$0xff] %v765_v7 }
 0x178   : > { %v603_v12 = vpop.f32.mrb[6].mxu0  ;;  %v683_v13 = vpop.f32.mrb[6].mxu1 }
 0x179   : > { %v750_v14 = vadd.f32 %v603_v12, %v397_v10  ;;  %v766_v15 = vadd.f32 %v683_v13, %v413_v11  ;;  %v605_v16 = vpop.f32.mrb[7].mxu0  ;;  %v685_v17 = vpop.f32.mrb[7].mxu1  ;;  %v405_v10 = vld [vmem:[#allocation2 + $0x58] sm:$0xff] }
 0x17a   : > { %v421_v11 = vld [vmem:[#allocation2 + $0xd8] sm:$0xff] }
 0x17b   : > { %782 = vst [vmem:[#allocation2 + $0x18] sm:$0xff] %v750_v14  ;;  %798 = vst [vmem:[#allocation2 + $0x98] sm:$0xff] %v766_v15 }
 0x17c   : > { %v608_v20 = vpop.f32.mrb[8].mxu0  ;;  %v688_v21 = vpop.f32.mrb[8].mxu1 }
 0x17d   : > { %v751_v22 = vadd.f32 %v608_v20, %v398_v18  ;;  %v767_v23 = vadd.f32 %v688_v21, %v414_v19  ;;  %v610_v24 = vpop.f32.mrb[9].mxu0  ;;  %v690_v25 = vpop.f32.mrb[9].mxu1  ;;  %v406_v18 = vld [vmem:[#allocation2 + $0x60] sm:$0xff] }
 0x17e   : > { %v422_v19 = vld [vmem:[#allocation2 + $0xe0] sm:$0xff] }
 0x17f   : > { %783 = vst [vmem:[#allocation2 + $0x20] sm:$0xff] %v751_v22  ;;  %799 = vst [vmem:[#allocation2 + $0xa0] sm:$0xff] %v767_v23 }
 0x180   : > { %v613_v28 = vpop.f32.mrb[10].mxu0  ;;  %v693_v29 = vpop.f32.mrb[10].mxu1 }
 0x181   : > { %v752_v30 = vadd.f32 %v613_v28, %v399_v26  ;;  %v768_v31 = vadd.f32 %v693_v29, %v415_v27  ;;  %v615_v32 = vpop.f32.mrb[11].mxu0  ;;  %v695_v33 = vpop.f32.mrb[11].mxu1  ;;  %v407_v26 = vld [vmem:[#allocation2 + $0x68] sm:$0xff] }
 0x182   : > { %v423_v27 = vld [vmem:[#allocation2 + $0xe8] sm:$0xff] }
 0x183   : > { %784 = vst [vmem:[#allocation2 + $0x28] sm:$0xff] %v752_v30  ;;  %800 = vst [vmem:[#allocation2 + $0xa8] sm:$0xff] %v768_v31 }
 0x184   : > { %v618_v36 = vpop.f32.mrb[12].mxu0  ;;  %v698_v37 = vpop.f32.mrb[12].mxu1 }
 0x185   : > { %v753_v38 = vadd.f32 %v618_v36, %v400_v34  ;;  %v769_v39 = vadd.f32 %v698_v37, %v416_v35  ;;  %v620_v40 = vpop.f32.mrb[13].mxu0  ;;  %v700_v41 = vpop.f32.mrb[13].mxu1  ;;  %v408_v34 = vld [vmem:[#allocation2 + $0x70] sm:$0xff] }
 0x186   : > { %v424_v35 = vld [vmem:[#allocation2 + $0xf0] sm:$0xff] }
 0x187   : > { %785 = vst [vmem:[#allocation2 + $0x30] sm:$0xff] %v753_v38  ;;  %801 = vst [vmem:[#allocation2 + $0xb0] sm:$0xff] %v769_v39 }
 0x188   : > { %v623_v44 = vpop.f32.mrb[14].mxu0  ;;  %v703_v45 = vpop.f32.mrb[14].mxu1 }
 0x189   : > { %v754_v46 = vadd.f32 %v623_v44, %v401_v42  ;;  %v770_v47 = vadd.f32 %v703_v45, %v417_v43  ;;  %v625_v48 = vpop.f32.mrb[15].mxu0  ;;  %v705_v49 = vpop.f32.mrb[15].mxu1  ;;  %v409_v42 = vld [vmem:[#allocation2 + $0x78] sm:$0xff] }
 0x18a   : > { %v425_v43 = vld [vmem:[#allocation2 + $0xf8] sm:$0xff] }
 0x18b   : > { %786 = vst [vmem:[#allocation2 + $0x38] sm:$0xff] %v754_v46  ;;  %802 = vst [vmem:[#allocation2 + $0xb8] sm:$0xff] %v770_v47 }
 0x18c   : > { %v628_v52 = vpop.f32.mrb[16].mxu0  ;;  %v708_v53 = vpop.f32.mrb[16].mxu1 }
 0x18d   : > { %v755_v54 = vadd.f32 %v628_v52, %v402_v50  ;;  %v771_v55 = vadd.f32 %v708_v53, %v418_v51  ;;  %v630_v56 = vpop.f32.mrb[17].mxu0  ;;  %v710_v57 = vpop.f32.mrb[17].mxu1  ;;  %v815_v50 = vld [vmem:[#allocation2] sm:$0xff] (!%p1000_p13)  ;;  %v816_v51 = vld [vmem:[#allocation2 + $0x8] sm:$0xff] (!%p1000_p13)  ;;  %v817_v52 = vld [vmem:[#allocation2 + $0x10] sm:$0xff] (!%p1000_p13) }
 0x18e   : > { %847 = vst [vmem:[%s1420_s26] sm:$0xff] (!%p1000_p13), %v815_v50  ;;  %848 = vst [vmem:[%s1420_s26 + $0x8] sm:$0xff] (!%p1000_p13), %v816_v51  ;;  %v818_v53 = vld [vmem:[#allocation2 + $0x18] sm:$0xff] (!%p1000_p13)  ;;  %v821_v56 = vld [vmem:[#allocation2 + $0x30] sm:$0xff] (!%p1000_p13) }
 0x18f   : > { %787 = vst [vmem:[#allocation2 + $0x40] sm:$0xff] %v755_v54  ;;  %803 = vst [vmem:[#allocation2 + $0xc0] sm:$0xff] %v771_v55  ;;  %v819_v54 = vld [vmem:[#allocation2 + $0x20] sm:$0xff] (!%p1000_p13)  ;;  %v820_v55 = vld [vmem:[#allocation2 + $0x28] sm:$0xff] (!%p1000_p13) }
 0x190   : > { %v633_v60 = vpop.f32.mrb[18].mxu0  ;;  %v713_v61 = vpop.f32.mrb[18].mxu1  ;;  %849 = vst [vmem:[%s1420_s26 + $0x10] sm:$0xff] (!%p1000_p13), %v817_v52  ;;  %850 = vst [vmem:[%s1420_s26 + $0x18] sm:$0xff] (!%p1000_p13), %v818_v53 }
 0x191   : > { %v756_v62 = vadd.f32 %v633_v60, %v403_v58  ;;  %v772_v63 = vadd.f32 %v713_v61, %v419_v59  ;;  %v635_v0 = vpop.f32.mrb[19].mxu0  ;;  %v715_v1 = vpop.f32.mrb[19].mxu1  ;;  %851 = vst [vmem:[%s1420_s26 + $0x20] sm:$0xff] (!%p1000_p13), %v819_v54  ;;  %852 = vst [vmem:[%s1420_s26 + $0x28] sm:$0xff] (!%p1000_p13), %v820_v55 }
 0x192   : > { %v822_v57 = vld [vmem:[#allocation2 + $0x38] sm:$0xff] (!%p1000_p13)  ;;  %853 = vst [vmem:[%s1420_s26 + $0x30] sm:$0xff] (!%p1000_p13), %v821_v56 }
 0x193   : > { %788 = vst [vmem:[#allocation2 + $0x48] sm:$0xff] %v756_v62  ;;  %804 = vst [vmem:[#allocation2 + $0xc8] sm:$0xff] %v772_v63 }
 0x194   : > { %v638_v4 = vpop.f32.mrb[20].mxu0  ;;  %v718_v5 = vpop.f32.mrb[20].mxu1  ;;  %854 = vst [vmem:[%s1420_s26 + $0x38] sm:$0xff] (!%p1000_p13), %v822_v57 }
 0x195   : > { %v757_v6 = vadd.f32 %v638_v4, %v404_v2  ;;  %v773_v7 = vadd.f32 %v718_v5, %v420_v3  ;;  %v640_v8 = vpop.f32.mrb[21].mxu0  ;;  %v720_v9 = vpop.f32.mrb[21].mxu1  ;;  %v831_v2 = vld [vmem:[#allocation2 + $0x80] sm:$0xff] (!%p1000_p13)  ;;  %v832_v3 = vld [vmem:[#allocation2 + $0x88] sm:$0xff] (!%p1000_p13)  ;;  %v833_v4 = vld [vmem:[#allocation2 + $0x90] sm:$0xff] (!%p1000_p13) }
 0x196   : > { %v823_v58 = vld [vmem:[#allocation2 + $0x40] sm:$0xff] (!%p1000_p13)  ;;  %863 = vst [vmem:[%s1420_s26 + $0x80] sm:$0xff] (!%p1000_p13), %v831_v2  ;;  %864 = vst [vmem:[%s1420_s26 + $0x88] sm:$0xff] (!%p1000_p13), %v832_v3  ;;  %v834_v5 = vld [vmem:[#allocation2 + $0x98] sm:$0xff] (!%p1000_p13) }
 0x197   : > { %789 = vst [vmem:[#allocation2 + $0x50] sm:$0xff] %v757_v6  ;;  %805 = vst [vmem:[#allocation2 + $0xd0] sm:$0xff] %v773_v7  ;;  %v835_v6 = vld [vmem:[#allocation2 + $0xa0] sm:$0xff] (!%p1000_p13)  ;;  %v836_v7 = vld [vmem:[#allocation2 + $0xa8] sm:$0xff] (!%p1000_p13) }
 0x198   : > { %v643_v12 = vpop.f32.mrb[22].mxu0  ;;  %v723_v13 = vpop.f32.mrb[22].mxu1  ;;  %855 = vst [vmem:[%s1420_s26 + $0x40] sm:$0xff] (!%p1000_p13), %v823_v58  ;;  %865 = vst [vmem:[%s1420_s26 + $0x90] sm:$0xff] (!%p1000_p13), %v833_v4  ;;  %v837_v8 = vld [vmem:[#allocation2 + $0xb0] sm:$0xff] (!%p1000_p13)  ;;  %v838_v9 = vld [vmem:[#allocation2 + $0xb8] sm:$0xff] (!%p1000_p13) }
 0x199   : > { %v758_v14 = vadd.f32 %v643_v12, %v405_v10  ;;  %v774_v15 = vadd.f32 %v723_v13, %v421_v11  ;;  %v645_v16 = vpop.f32.mrb[23].mxu0  ;;  %v725_v17 = vpop.f32.mrb[23].mxu1  ;;  %866 = vst [vmem:[%s1420_s26 + $0x98] sm:$0xff] (!%p1000_p13), %v834_v5  ;;  %867 = vst [vmem:[%s1420_s26 + $0xa0] sm:$0xff] (!%p1000_p13), %v835_v6  ;;  %v839_v10 = vld [vmem:[#allocation2 + $0xc0] sm:$0xff] (!%p1000_p13) }
 0x19a   : > { %v824_v59 = vld [vmem:[#allocation2 + $0x48] sm:$0xff] (!%p1000_p13)  ;;  %868 = vst [vmem:[%s1420_s26 + $0xa8] sm:$0xff] (!%p1000_p13), %v836_v7  ;;  %869 = vst [vmem:[%s1420_s26 + $0xb0] sm:$0xff] (!%p1000_p13), %v837_v8 }
 0x19b   : > { %790 = vst [vmem:[#allocation2 + $0x58] sm:$0xff] %v758_v14  ;;  %806 = vst [vmem:[#allocation2 + $0xd8] sm:$0xff] %v774_v15  ;;  %v840_v11 = vld [vmem:[#allocation2 + $0xc8] sm:$0xff] (!%p1000_p13) }
 0x19c   : > { %v648_v20 = vpop.f32.mrb[24].mxu0  ;;  %v728_v21 = vpop.f32.mrb[24].mxu1  ;;  %856 = vst [vmem:[%s1420_s26 + $0x48] sm:$0xff] (!%p1000_p13), %v824_v59  ;;  %870 = vst [vmem:[%s1420_s26 + $0xb8] sm:$0xff] (!%p1000_p13), %v838_v9 }
 0x19d   : > { %v759_v22 = vadd.f32 %v648_v20, %v406_v18  ;;  %v775_v23 = vadd.f32 %v728_v21, %v422_v19  ;;  %v650_v24 = vpop.f32.mrb[25].mxu0  ;;  %v730_v25 = vpop.f32.mrb[25].mxu1  ;;  %871 = vst [vmem:[%s1420_s26 + $0xc0] sm:$0xff] (!%p1000_p13), %v839_v10  ;;  %872 = vst [vmem:[%s1420_s26 + $0xc8] sm:$0xff] (!%p1000_p13), %v840_v11 }
 0x19e   : > { %v825_v60 = vld [vmem:[#allocation2 + $0x50] sm:$0xff] (!%p1000_p13) }
 0x19f   : > { %791 = vst [vmem:[#allocation2 + $0x60] sm:$0xff] %v759_v22  ;;  %807 = vst [vmem:[#allocation2 + $0xe0] sm:$0xff] %v775_v23  ;;  %v841_v12 = vld [vmem:[#allocation2 + $0xd0] sm:$0xff] (!%p1000_p13) }
 0x1a0   : > { %v653_v28 = vpop.f32.mrb[26].mxu0  ;;  %v733_v29 = vpop.f32.mrb[26].mxu1  ;;  %857 = vst [vmem:[%s1420_s26 + $0x50] sm:$0xff] (!%p1000_p13), %v825_v60  ;;  %873 = vst [vmem:[%s1420_s26 + $0xd0] sm:$0xff] (!%p1000_p13), %v841_v12 }
 0x1a1   : > { %v760_v30 = vadd.f32 %v653_v28, %v407_v26  ;;  %v776_v31 = vadd.f32 %v733_v29, %v423_v27  ;;  %v655_v32 = vpop.f32.mrb[27].mxu0  ;;  %v735_v33 = vpop.f32.mrb[27].mxu1 }
 0x1a2   : > { %v826_v61 = vld [vmem:[#allocation2 + $0x58] sm:$0xff] (!%p1000_p13) }
 0x1a3   : > { %792 = vst [vmem:[#allocation2 + $0x68] sm:$0xff] %v760_v30  ;;  %808 = vst [vmem:[#allocation2 + $0xe8] sm:$0xff] %v776_v31  ;;  %v842_v13 = vld [vmem:[#allocation2 + $0xd8] sm:$0xff] (!%p1000_p13) }
 0x1a4   : > { %v658_v36 = vpop.f32.mrb[28].mxu0  ;;  %v738_v37 = vpop.f32.mrb[28].mxu1  ;;  %858 = vst [vmem:[%s1420_s26 + $0x58] sm:$0xff] (!%p1000_p13), %v826_v61  ;;  %874 = vst [vmem:[%s1420_s26 + $0xd8] sm:$0xff] (!%p1000_p13), %v842_v13 }
 0x1a5   : > { %v761_v38 = vadd.f32 %v658_v36, %v408_v34  ;;  %v777_v39 = vadd.f32 %v738_v37, %v424_v35  ;;  %v660_v40 = vpop.f32.mrb[29].mxu0  ;;  %v740_v41 = vpop.f32.mrb[29].mxu1  ;;  %814 = sbr.rel (%p1000_p13) target bundleno = 437 (0x1b5), region = 59 }
 0x1a6   : > { %v827_v62 = vld [vmem:[#allocation2 + $0x60] sm:$0xff] (!%p1000_p13) }
 0x1a7   : > { %793 = vst [vmem:[#allocation2 + $0x70] sm:$0xff] %v761_v38  ;;  %809 = vst [vmem:[#allocation2 + $0xf0] sm:$0xff] %v777_v39  ;;  %v843_v14 = vld [vmem:[#allocation2 + $0xe0] sm:$0xff] (!%p1000_p13) }
 0x1a8   : > { %v663_v44 = vpop.f32.mrb[30].mxu0  ;;  %v743_v45 = vpop.f32.mrb[30].mxu1  ;;  %859 = vst [vmem:[%s1420_s26 + $0x60] sm:$0xff] (!%p1000_p13), %v827_v62  ;;  %875 = vst [vmem:[%s1420_s26 + $0xe0] sm:$0xff] (!%p1000_p13), %v843_v14 }
 0x1a9   : > { %v762_v46 = vadd.f32 %v663_v44, %v409_v42  ;;  %v778_v47 = vadd.f32 %v743_v45, %v425_v43  ;;  %v665_v48 = vpop.f32.mrb[31].mxu0  ;;  %v745_v49 = vpop.f32.mrb[31].mxu1 }
 0x1aa   : > { %v828_v63 = vld [vmem:[#allocation2 + $0x68] sm:$0xff] (!%p1000_p13) }
 0x1ab   : > { %794 = vst [vmem:[#allocation2 + $0x78] sm:$0xff] %v762_v46  ;;  %810 = vst [vmem:[#allocation2 + $0xf8] sm:$0xff] %v778_v47  ;;  %v844_v15 = vld [vmem:[#allocation2 + $0xe8] sm:$0xff] (!%p1000_p13) }
 0x1ac   : > { %860 = vst [vmem:[%s1420_s26 + $0x68] sm:$0xff] %v828_v63  ;;  %876 = vst [vmem:[%s1420_s26 + $0xe8] sm:$0xff] %v844_v15 }
 0x1ae   : > { %v829_v0 = vld [vmem:[#allocation2 + $0x70] sm:$0xff] }
 0x1af   : > { %861 = vst [vmem:[%s1420_s26 + $0x70] sm:$0xff] %v829_v0  ;;  %v845_v16 = vld [vmem:[#allocation2 + $0xf0] sm:$0xff] }
 0x1b0   : > { %877 = vst [vmem:[%s1420_s26 + $0xf0] sm:$0xff] %v845_v16 }
 0x1b2   : > { %v830_v1 = vld [vmem:[#allocation2 + $0x78] sm:$0xff] }
 0x1b3   : > { %862 = vst [vmem:[%s1420_s26 + $0x78] sm:$0xff] %v830_v1  ;;  %v846_v17 = vld [vmem:[#allocation2 + $0xf8] sm:$0xff] }
 0x1b4   : > { %878 = vst [vmem:[%s1420_s26 + $0xf8] sm:$0xff] %v846_v17 }
 0x1b5 PF: > { %s12_s15 = sadd.s32 1, %s1196_s15   ;;  %s1610_s9 = smov %s1176_s10 }
 0x1b6   : > { %p9_p0 = scmp.ge.s32.totalorder %s12_s15, 12   ;;  %s1611_s10 = smov %s1266_s22 }
 0x1b7   : > { %s1612_s11 = smov %s1188_s13  ;;  %s1613_s12 = smov %s1192_s14 }
 0x1b8   : > { %s1614_s13 = smov %s1617_s16  ;;  %s1615_s14 = smov %s1621_s17 }
 0x1b9   :  { %11 = sbr.rel (!%p9_p0) target bundleno = 4 (0x4), region = 97 }

// kernel: basic_block_forward.11
= control target key start
LH: loop header
LB: loop body
LE: loop exit
PB: predicated region body
PF: predicated region fallthrough
CT: control target
= control target key end

     0   :  { %s1361_s12 = smov 0   ;;  %s1363_s13 = smov 0   ;;  %s1790_s0 = inlined_call_operand.vmem [shape: f32[512,1280], index: 0, kind: input, shape index: {}]   ;;  %s1791_s1 = inlined_call_operand.vmem [shape: f32[1280,128], index: 1, kind: input, shape index: {}]   ;;  %s1792_s2 = inlined_call_operand.vmem [shape: f32[512,128], index: 2, kind: input, shape index: {}]   ;;  %s1793_s3 = inlined_call_operand.vmem [shape: f32[512,128], index: 3, kind: output, shape index: {}]  }
   0x1   :  { %s1365_s14 = smov 0   ;;  %s1367_s15 = smov 0  }
   0x2   :  { %s1369_s16 = smov 0   ;;  %s1371_s17 = smov 0  }
   0x3   :  { %s1373_s18 = smov 0  }
   0x4 LB: > { %s25_s19 = sadd.s32 1, %s1329_s16  ;;  %s32_s20 = sadd.s32 1, %s1333_s17  ;;  %s1337_s18 = sphi %s1373_s18, %s13_s18   ;;  %s1333_s17 = sphi %s1371_s17, %s1799_s17   ;;  %s1329_s16 = sphi %s1369_s16, %s1798_s16   ;;  %s1325_s15 = sphi %s1367_s15, %s1797_s15   ;;  %s1321_s14 = sphi %s1365_s14, %s1796_s14   ;;  %s1317_s13 = sphi %s1363_s13, %s1795_s13   ;;  %s1313_s12 = sphi %s1361_s12, %s1794_s12  }
   0x5   : > { %p26_p0 = scmp.ge.s32.totalorder %s25_s19, 5  ;;  %p48_p1 = scmp.ne.s32.totalorder %s1317_s13, %s1313_s12 }
   0x6   : > { %p49_p2 = scmp.eq.s32.totalorder %s1337_s18, 0  ;;  %s41_s24 = sadd.s32 1, %s1317_s13 }
   0x7   : > { %s1801_s19 = smov (%p26_p0, %s25_s19), 0  ;;  %s1803_s20 = smov (!%p26_p0, %s32_s20), %s1333_s17 }
   0x8   : > { %p50_p3 = por %p49_p2, %p48_p1  ;;  %p34_p4 = scmp.ge.s32.totalorder %s1803_s20, 2 }
   0x9   : > { %s37_s21 = ssub.s32 %s1329_s16, %s1801_s19  ;;  %p1126_p6 = scmp.ge.s32.totalorder %s1337_s18, 10 }
   0xa   : > { %s1805_s20 = smov (%p34_p4, %s1803_s20), 0 }
   0xb   : > { %s36_s22 = ssub.s32 %s1333_s17, %s1805_s20  ;;  %158 = sbr.rel (%p1126_p6) target bundleno = 58 (0x3a), region = 16 }
   0xc   : > { %s38_s23 = sor.u32 %s37_s21, %s36_s22 }
   0xd   : > { %p39_p5 = scmp.eq.s32.totalorder %s38_s23, 0 }
   0xf   : > { %s1412_s25 = scalar_select %p39_p5, %s1317_s13, %s41_s24  }
  0x12   : > { %161 = sbr.rel (!%p50_p3) target bundleno = 58 (0x3a), region = 20  ;;  %s163_s26 = sand.u32 (%p50_p3), 1, %s1317_s13  }
  0x13   : > { %s1129_s27 = sshll.u32 (%p50_p3), %s1329_s16, 1  ;;  %s1127_s28 = sshll.u32 (%p50_p3), %s163_s26, 9 }
  0x14   : > { %s1224_s29 = smul.u32 (%p50_p3), 320, %s1333_s17  ;;  %s1426_s8 = scalar_lea.vmem (%p50_p3), [#allocation3], %s1127_s28 }
  0x16   : > { %s169_s30 = sadd.s32 (%p50_p3), %s1224_s29, %s1129_s27 }
  0x17   : > { %s1131_s4 = sshll.u32 (%p50_p3), %s169_s30, 3 }
  0x18   : > { %s1421_s7 = scalar_lea.vmem (%p50_p3), %s1790_s0, %s1131_s4 }
  0x19   : > { %v184_v0 = vld [vmem:[%s1421_s7] sm:$0xff]  ;;  %v186_v1 = vld [vmem:[%s1421_s7 + $0x8] sm:$0xff]  ;;  %v188_v2 = vld [vmem:[%s1421_s7 + $0x50] sm:$0xff] }
  0x1a   : > { %185 = vst [vmem:[%s1426_s8] sm:$0xff] %v184_v0  ;;  %187 = vst [vmem:[%s1426_s8 + $0x8] sm:$0xff] %v186_v1  ;;  %v190_v3 = vld [vmem:[%s1421_s7 + $0x58] sm:$0xff]  ;;  %v192_v4 = vld [vmem:[%s1421_s7 + $0xa0] sm:$0xff] }
  0x1b   : > { %189 = vst [vmem:[%s1426_s8 + $0x10] sm:$0xff] %v188_v2  ;;  %v194_v5 = vld [vmem:[%s1421_s7 + $0xa8] sm:$0xff]  ;;  %191 = vst [vmem:[%s1426_s8 + $0x18] sm:$0xff] %v190_v3  ;;  %v196_v6 = vld [vmem:[%s1421_s7 + $0xf0] sm:$0xff] }
  0x1c   : > { %193 = vst [vmem:[%s1426_s8 + $0x20] sm:$0xff] %v192_v4  ;;  %195 = vst [vmem:[%s1426_s8 + $0x28] sm:$0xff] %v194_v5  ;;  %v198_v7 = vld [vmem:[%s1421_s7 + $0xf8] sm:$0xff]  ;;  %v200_v8 = vld [vmem:[%s1421_s7 + $0x140] sm:$0xff] }
  0x1d   : > { %197 = vst [vmem:[%s1426_s8 + $0x30] sm:$0xff] %v196_v6  ;;  %199 = vst [vmem:[%s1426_s8 + $0x38] sm:$0xff] %v198_v7  ;;  %v202_v9 = vld [vmem:[%s1421_s7 + $0x148] sm:$0xff]  ;;  %v204_v10 = vld [vmem:[%s1421_s7 + $0x190] sm:$0xff] }
  0x1e   : > { %201 = vst [vmem:[%s1426_s8 + $0x40] sm:$0xff] %v200_v8  ;;  %v206_v11 = vld [vmem:[%s1421_s7 + $0x198] sm:$0xff]  ;;  %203 = vst [vmem:[%s1426_s8 + $0x48] sm:$0xff] %v202_v9  ;;  %v208_v12 = vld [vmem:[%s1421_s7 + $0x1e0] sm:$0xff] }
  0x1f   : > { %205 = vst [vmem:[%s1426_s8 + $0x50] sm:$0xff] %v204_v10  ;;  %207 = vst [vmem:[%s1426_s8 + $0x58] sm:$0xff] %v206_v11  ;;  %v210_v13 = vld [vmem:[%s1421_s7 + $0x1e8] sm:$0xff]  ;;  %v212_v14 = vld [vmem:[%s1421_s7 + $0x230] sm:$0xff] }
  0x20   : > { %209 = vst [vmem:[%s1426_s8 + $0x60] sm:$0xff] %v208_v12  ;;  %211 = vst [vmem:[%s1426_s8 + $0x68] sm:$0xff] %v210_v13  ;;  %v214_v15 = vld [vmem:[%s1421_s7 + $0x238] sm:$0xff]  ;;  %v216_v16 = vld [vmem:[%s1421_s7 + $0x280] sm:$0xff] }
  0x21   : > { %213 = vst [vmem:[%s1426_s8 + $0x70] sm:$0xff] %v212_v14  ;;  %v218_v17 = vld [vmem:[%s1421_s7 + $0x288] sm:$0xff]  ;;  %215 = vst [vmem:[%s1426_s8 + $0x78] sm:$0xff] %v214_v15  ;;  %v220_v18 = vld [vmem:[%s1421_s7 + $0x2d0] sm:$0xff] }
  0x22   : > { %217 = vst [vmem:[%s1426_s8 + $0x80] sm:$0xff] %v216_v16  ;;  %219 = vst [vmem:[%s1426_s8 + $0x88] sm:$0xff] %v218_v17  ;;  %v222_v19 = vld [vmem:[%s1421_s7 + $0x2d8] sm:$0xff]  ;;  %v224_v20 = vld [vmem:[%s1421_s7 + $0x320] sm:$0xff] }
  0x23   : > { %221 = vst [vmem:[%s1426_s8 + $0x90] sm:$0xff] %v220_v18  ;;  %223 = vst [vmem:[%s1426_s8 + $0x98] sm:$0xff] %v222_v19  ;;  %v226_v21 = vld [vmem:[%s1421_s7 + $0x328] sm:$0xff]  ;;  %v228_v22 = vld [vmem:[%s1421_s7 + $0x370] sm:$0xff] }
  0x24   : > { %225 = vst [vmem:[%s1426_s8 + $0xa0] sm:$0xff] %v224_v20  ;;  %v230_v23 = vld [vmem:[%s1421_s7 + $0x378] sm:$0xff]  ;;  %227 = vst [vmem:[%s1426_s8 + $0xa8] sm:$0xff] %v226_v21  ;;  %v232_v24 = vld [vmem:[%s1421_s7 + $0x3c0] sm:$0xff] }
  0x25   : > { %229 = vst [vmem:[%s1426_s8 + $0xb0] sm:$0xff] %v228_v22  ;;  %231 = vst [vmem:[%s1426_s8 + $0xb8] sm:$0xff] %v230_v23  ;;  %v234_v25 = vld [vmem:[%s1421_s7 + $0x3c8] sm:$0xff]  ;;  %v236_v26 = vld [vmem:[%s1421_s7 + $0x410] sm:$0xff] }
  0x26   : > { %233 = vst [vmem:[%s1426_s8 + $0xc0] sm:$0xff] %v232_v24  ;;  %235 = vst [vmem:[%s1426_s8 + $0xc8] sm:$0xff] %v234_v25  ;;  %v238_v27 = vld [vmem:[%s1421_s7 + $0x418] sm:$0xff]  ;;  %v240_v28 = vld [vmem:[%s1421_s7 + $0x460] sm:$0xff] }
  0x27   : > { %237 = vst [vmem:[%s1426_s8 + $0xd0] sm:$0xff] %v236_v26  ;;  %v242_v29 = vld [vmem:[%s1421_s7 + $0x468] sm:$0xff]  ;;  %239 = vst [vmem:[%s1426_s8 + $0xd8] sm:$0xff] %v238_v27  ;;  %v244_v30 = vld [vmem:[%s1421_s7 + $0x4b0] sm:$0xff] }
  0x28   : > { %241 = vst [vmem:[%s1426_s8 + $0xe0] sm:$0xff] %v240_v28  ;;  %243 = vst [vmem:[%s1426_s8 + $0xe8] sm:$0xff] %v242_v29  ;;  %v246_v31 = vld [vmem:[%s1421_s7 + $0x4b8] sm:$0xff]  ;;  %v248_v32 = vld [vmem:[%s1421_s7 + $0x500] sm:$0xff] }
  0x29   : > { %245 = vst [vmem:[%s1426_s8 + $0xf0] sm:$0xff] %v244_v30  ;;  %247 = vst [vmem:[%s1426_s8 + $0xf8] sm:$0xff] %v246_v31  ;;  %v250_v33 = vld [vmem:[%s1421_s7 + $0x508] sm:$0xff]  ;;  %v252_v34 = vld [vmem:[%s1421_s7 + $0x550] sm:$0xff] }
  0x2a   : > { %249 = vst [vmem:[%s1426_s8 + $0x100] sm:$0xff] %v248_v32  ;;  %v254_v35 = vld [vmem:[%s1421_s7 + $0x558] sm:$0xff]  ;;  %251 = vst [vmem:[%s1426_s8 + $0x108] sm:$0xff] %v250_v33  ;;  %v256_v36 = vld [vmem:[%s1421_s7 + $0x5a0] sm:$0xff] }
  0x2b   : > { %253 = vst [vmem:[%s1426_s8 + $0x110] sm:$0xff] %v252_v34  ;;  %255 = vst [vmem:[%s1426_s8 + $0x118] sm:$0xff] %v254_v35  ;;  %v258_v37 = vld [vmem:[%s1421_s7 + $0x5a8] sm:$0xff]  ;;  %v260_v38 = vld [vmem:[%s1421_s7 + $0x5f0] sm:$0xff] }
  0x2c   : > { %257 = vst [vmem:[%s1426_s8 + $0x120] sm:$0xff] %v256_v36  ;;  %259 = vst [vmem:[%s1426_s8 + $0x128] sm:$0xff] %v258_v37  ;;  %v262_v39 = vld [vmem:[%s1421_s7 + $0x5f8] sm:$0xff]  ;;  %v264_v40 = vld [vmem:[%s1421_s7 + $0x640] sm:$0xff] }
  0x2d   : > { %261 = vst [vmem:[%s1426_s8 + $0x130] sm:$0xff] %v260_v38  ;;  %v266_v41 = vld [vmem:[%s1421_s7 + $0x648] sm:$0xff]  ;;  %263 = vst [vmem:[%s1426_s8 + $0x138] sm:$0xff] %v262_v39  ;;  %v268_v42 = vld [vmem:[%s1421_s7 + $0x690] sm:$0xff] }
  0x2e   : > { %265 = vst [vmem:[%s1426_s8 + $0x140] sm:$0xff] %v264_v40  ;;  %267 = vst [vmem:[%s1426_s8 + $0x148] sm:$0xff] %v266_v41  ;;  %v270_v43 = vld [vmem:[%s1421_s7 + $0x698] sm:$0xff]  ;;  %v272_v44 = vld [vmem:[%s1421_s7 + $0x6e0] sm:$0xff] }
  0x2f   : > { %269 = vst [vmem:[%s1426_s8 + $0x150] sm:$0xff] %v268_v42  ;;  %271 = vst [vmem:[%s1426_s8 + $0x158] sm:$0xff] %v270_v43  ;;  %v274_v45 = vld [vmem:[%s1421_s7 + $0x6e8] sm:$0xff]  ;;  %v276_v46 = vld [vmem:[%s1421_s7 + $0x730] sm:$0xff] }
  0x30   : > { %273 = vst [vmem:[%s1426_s8 + $0x160] sm:$0xff] %v272_v44  ;;  %v278_v47 = vld [vmem:[%s1421_s7 + $0x738] sm:$0xff]  ;;  %275 = vst [vmem:[%s1426_s8 + $0x168] sm:$0xff] %v274_v45  ;;  %v280_v48 = vld [vmem:[%s1421_s7 + $0x780] sm:$0xff] }
  0x31   : > { %277 = vst [vmem:[%s1426_s8 + $0x170] sm:$0xff] %v276_v46  ;;  %279 = vst [vmem:[%s1426_s8 + $0x178] sm:$0xff] %v278_v47  ;;  %v282_v49 = vld [vmem:[%s1421_s7 + $0x788] sm:$0xff]  ;;  %v284_v50 = vld [vmem:[%s1421_s7 + $0x7d0] sm:$0xff] }
  0x32   : > { %281 = vst [vmem:[%s1426_s8 + $0x180] sm:$0xff] %v280_v48  ;;  %283 = vst [vmem:[%s1426_s8 + $0x188] sm:$0xff] %v282_v49  ;;  %v286_v51 = vld [vmem:[%s1421_s7 + $0x7d8] sm:$0xff]  ;;  %v288_v52 = vld [vmem:[%s1421_s7 + $0x820] sm:$0xff] }
  0x33   : > { %285 = vst [vmem:[%s1426_s8 + $0x190] sm:$0xff] %v284_v50  ;;  %v290_v53 = vld [vmem:[%s1421_s7 + $0x828] sm:$0xff]  ;;  %287 = vst [vmem:[%s1426_s8 + $0x198] sm:$0xff] %v286_v51  ;;  %v292_v54 = vld [vmem:[%s1421_s7 + $0x870] sm:$0xff] }
  0x34   : > { %289 = vst [vmem:[%s1426_s8 + $0x1a0] sm:$0xff] %v288_v52  ;;  %291 = vst [vmem:[%s1426_s8 + $0x1a8] sm:$0xff] %v290_v53  ;;  %v294_v55 = vld [vmem:[%s1421_s7 + $0x878] sm:$0xff]  ;;  %v296_v56 = vld [vmem:[%s1421_s7 + $0x8c0] sm:$0xff] }
  0x35   : > { %293 = vst [vmem:[%s1426_s8 + $0x1b0] sm:$0xff] %v292_v54  ;;  %295 = vst [vmem:[%s1426_s8 + $0x1b8] sm:$0xff] %v294_v55  ;;  %v298_v57 = vld [vmem:[%s1421_s7 + $0x8c8] sm:$0xff]  ;;  %v300_v58 = vld [vmem:[%s1421_s7 + $0x910] sm:$0xff] }
  0x36   : > { %297 = vst [vmem:[%s1426_s8 + $0x1c0] sm:$0xff] %v296_v56  ;;  %v302_v59 = vld [vmem:[%s1421_s7 + $0x918] sm:$0xff]  ;;  %299 = vst [vmem:[%s1426_s8 + $0x1c8] sm:$0xff] %v298_v57  ;;  %v304_v60 = vld [vmem:[%s1421_s7 + $0x960] sm:$0xff] }
  0x37   : > { %301 = vst [vmem:[%s1426_s8 + $0x1d0] sm:$0xff] %v300_v58  ;;  %303 = vst [vmem:[%s1426_s8 + $0x1d8] sm:$0xff] %v302_v59  ;;  %v306_v61 = vld [vmem:[%s1421_s7 + $0x968] sm:$0xff]  ;;  %v308_v62 = vld [vmem:[%s1421_s7 + $0x9b0] sm:$0xff] }
  0x38   : > { %305 = vst [vmem:[%s1426_s8 + $0x1e0] sm:$0xff] %v304_v60  ;;  %307 = vst [vmem:[%s1426_s8 + $0x1e8] sm:$0xff] %v306_v61  ;;  %v310_v63 = vld [vmem:[%s1421_s7 + $0x9b8] sm:$0xff] }
  0x39   : > { %309 = vst [vmem:[%s1426_s8 + $0x1f0] sm:$0xff] %v308_v62  ;;  %311 = vst [vmem:[%s1426_s8 + $0x1f8] sm:$0xff] %v310_v63 }
  0x3a PF: > { %p1132_p7 = scmp.ge.s32.totalorder %s1337_s18, 1  ;;  %p340_p8 = scmp.lt.s32.totalorder %s1337_s18, 11 }
  0x3c   : > { %p341_p9 = pnand %p1132_p7, %p340_p8 }
  0x3d   : > { %s347_s9 = sand.u32 (!%p341_p9), 1, %s1313_s12   ;;  %s1134_s10 = sshll.u32 (!%p341_p9), %s1321_s14, 5 }
  0x3e   : > { %344 = sbr.rel (%p341_p9) target bundleno = 439 (0x1b7), region = 51  ;;  %s1133_s11 = sshll.u32 (!%p341_p9), %s347_s9, 9 }
  0x3f   : > { %p392_p10 = scmp.lt.s32.totalorder (!%p341_p9), %s1134_s10, 159  ;;  %s1136_s21 = sshll.u32 (!%p341_p9), %s1325_s15, 5 }
  0x40   : > { %p401_p11 = scmp.lt.s32.totalorder (!%p341_p9), %s1136_s21, 63  ;;  %s1573_s15 = scalar_lea.vmem (!%p341_p9), [#allocation3], %s1133_s11 }
  0x41   : > { %p1140_p12 = scmp.ne.s32.totalorder (!%p341_p9), %s1321_s14, 0 }
  0x45   : > { %s1807_s10 = smov (!%p392_p10, %s1134_s10), 159  ;;  %s1809_s21 = smov (!%p401_p11, %s1136_s21), 63 }
  0x46   : > { %s1135_s22 = sshll.u32 %s1807_s10, 3  ;;  %s1137_s27 = sshll.u32 %s1809_s21, 3  ;;  %v1339_v0 = vmov (!%p1140_p12), 0.0  }
  0x47   : > { %s1561_s26 = scalar_lea.vmem %s1791_s1, %s1135_s22  ;;  %s1566_s30 = scalar_lea.vmem %s1792_s2, %s1137_s27  ;;  %422 = vst [vmem:[#allocation2] sm:$0xff] (!%p1140_p12), %v1339_v0  ;;  %423 = vst [vmem:[#allocation2 + $0x8] sm:$0xff] (!%p1140_p12), %v1339_v0 }
  0x48   : > { %s1571_s5 = scalar_lea.vmem %s1793_s3, %s1137_s27  ;;  %421 = sbr.rel (%p1140_p12) target bundleno = 87 (0x57), region = 59  ;;  %424 = vst [vmem:[#allocation2 + $0x10] sm:$0xff] (!%p1140_p12), %v1339_v0  ;;  %425 = vst [vmem:[#allocation2 + $0x18] sm:$0xff] (!%p1140_p12), %v1339_v0 }
  0x49   : > { %426 = vst [vmem:[#allocation2 + $0x20] sm:$0xff] (!%p1140_p12), %v1339_v0  ;;  %427 = vst [vmem:[#allocation2 + $0x28] sm:$0xff] (!%p1140_p12), %v1339_v0 }
  0x4a   : > { %428 = vst [vmem:[#allocation2 + $0x30] sm:$0xff] (!%p1140_p12), %v1339_v0  ;;  %429 = vst [vmem:[#allocation2 + $0x38] sm:$0xff] (!%p1140_p12), %v1339_v0 }
  0x4b   : > { %430 = vst [vmem:[#allocation2 + $0x40] sm:$0xff] (!%p1140_p12), %v1339_v0  ;;  %431 = vst [vmem:[#allocation2 + $0x48] sm:$0xff] (!%p1140_p12), %v1339_v0 }
  0x4c   : > { %432 = vst [vmem:[#allocation2 + $0x50] sm:$0xff] (!%p1140_p12), %v1339_v0  ;;  %433 = vst [vmem:[#allocation2 + $0x58] sm:$0xff] (!%p1140_p12), %v1339_v0 }
  0x4d   : > { %434 = vst [vmem:[#allocation2 + $0x60] sm:$0xff] (!%p1140_p12), %v1339_v0  ;;  %435 = vst [vmem:[#allocation2 + $0x68] sm:$0xff] (!%p1140_p12), %v1339_v0 }
  0x4e   : > { %436 = vst [vmem:[#allocation2 + $0x70] sm:$0xff] (!%p1140_p12), %v1339_v0  ;;  %437 = vst [vmem:[#allocation2 + $0x78] sm:$0xff] (!%p1140_p12), %v1339_v0 }
  0x4f   : > { %438 = vst [vmem:[#allocation2 + $0x80] sm:$0xff] %v1339_v0  ;;  %439 = vst [vmem:[#allocation2 + $0x88] sm:$0xff] %v1339_v0 }
  0x50   : > { %440 = vst [vmem:[#allocation2 + $0x90] sm:$0xff] %v1339_v0  ;;  %441 = vst [vmem:[#allocation2 + $0x98] sm:$0xff] %v1339_v0 }
  0x51   : > { %442 = vst [vmem:[#allocation2 + $0xa0] sm:$0xff] %v1339_v0  ;;  %443 = vst [vmem:[#allocation2 + $0xa8] sm:$0xff] %v1339_v0 }
  0x52   : > { %444 = vst [vmem:[#allocation2 + $0xb0] sm:$0xff] %v1339_v0  ;;  %445 = vst [vmem:[#allocation2 + $0xb8] sm:$0xff] %v1339_v0 }
  0x53   : > { %446 = vst [vmem:[#allocation2 + $0xc0] sm:$0xff] %v1339_v0  ;;  %447 = vst [vmem:[#allocation2 + $0xc8] sm:$0xff] %v1339_v0 }
  0x54   : > { %448 = vst [vmem:[#allocation2 + $0xd0] sm:$0xff] %v1339_v0  ;;  %449 = vst [vmem:[#allocation2 + $0xd8] sm:$0xff] %v1339_v0 }
  0x55   : > { %450 = vst [vmem:[#allocation2 + $0xe0] sm:$0xff] %v1339_v0  ;;  %451 = vst [vmem:[#allocation2 + $0xe8] sm:$0xff] %v1339_v0 }
  0x56   : > { %452 = vst [vmem:[#allocation2 + $0xf0] sm:$0xff] %v1339_v0  ;;  %453 = vst [vmem:[#allocation2 + $0xf8] sm:$0xff] %v1339_v0 }
  0x57 PF: > { %v550_v1 = vld [vmem:[%s1561_s26] sm:$0xff]  ;;  %v551_v2 = vld [vmem:[%s1561_s26 + $0x8] sm:$0xff]  ;;  %v552_v3 = vld [vmem:[%s1561_s26 + $0x10] sm:$0xff]  ;;  %v1340_v4 = vmov 0.0|0.0   ;;  %p1141_p13 = scmp.ne.s32.totalorder %s1321_s14, 4 }
  0x58   : > { %1144 = vmatprep.subr.bf16.mxu0 %v1340_v4  ;;  %1192 = vmatprep.subr.bf16.mxu1 %v1340_v4  ;;  %v1145_v5 = vpack.c.bf16 %v551_v2, %v550_v1  ;;  %v553_v6 = vld [vmem:[%s1561_s26 + $0x18] sm:$0xff]  ;;  %v554_v8 = vld [vmem:[%s1561_s26 + $0x20] sm:$0xff]  ;;  %v555_v9 = vld [vmem:[%s1561_s26 + $0x28] sm:$0xff] }
  0x59   : > { %v1148_v7 = vpack.c.bf16 %v553_v6, %v552_v3  ;;  %v1151_v10 = vpack.c.bf16 %v555_v9, %v554_v8  ;;  %v556_v11 = vld [vmem:[%s1561_s26 + $0x30] sm:$0xff]  ;;  %v557_v12 = vld [vmem:[%s1561_s26 + $0x38] sm:$0xff]  ;;  %v487_v13 = vld [vmem:[%s1573_s15 + $0x8] sm:$0xff] }
  0x5a   : > { %1146 = vmatpush1.bf16.msra.mxu0 %v1145_v5  ;;  %1208 = vmatpush1.bf16.msra.mxu1 %v1145_v5  ;;  %v1154_v14 = vpack.c.bf16 %v557_v12, %v556_v11  ;;  %v519_v15 = vld [vmem:[%s1573_s15 + $0x108] sm:$0xff]  ;;  %v558_v16 = vld [vmem:[%s1561_s26 + $0x40] sm:$0xff]  ;;  %v560_v19 = vld [vmem:[%s1561_s26 + $0x50] sm:$0xff] }
  0x5b   : > { %1147 = vmatprep.subr.bf16.mxu0 %v1340_v4  ;;  %1193 = vmatprep.subr.bf16.mxu1 %v1340_v4  ;;  %v559_v17 = vld [vmem:[%s1561_s26 + $0x48] sm:$0xff]  ;;  %v561_v20 = vld [vmem:[%s1561_s26 + $0x58] sm:$0xff]  ;;  %v562_v22 = vld [vmem:[%s1561_s26 + $0x60] sm:$0xff] }
  0x5c   : > { %646 = vmatprep.mubr.f32.mxu0 %v487_v13  ;;  %726 = vmatprep.mubr.f32.mxu1 %v519_v15  ;;  %v1157_v18 = vpack.c.bf16 %v559_v17, %v558_v16  ;;  %v1160_v21 = vpack.c.bf16 %v561_v20, %v560_v19  ;;  %v563_v23 = vld [vmem:[%s1561_s26 + $0x68] sm:$0xff]  ;;  %v564_v25 = vld [vmem:[%s1561_s26 + $0x70] sm:$0xff]  ;;  %v565_v26 = vld [vmem:[%s1561_s26 + $0x78] sm:$0xff] }
  0x5d   : > { %v1163_v24 = vpack.c.bf16 %v563_v23, %v562_v22  ;;  %v1166_v27 = vpack.c.bf16 %v565_v26, %v564_v25  ;;  %v566_v28 = vld [vmem:[%s1561_s26 + $0x80] sm:$0xff]  ;;  %v567_v29 = vld [vmem:[%s1561_s26 + $0x88] sm:$0xff]  ;;  %v568_v31 = vld [vmem:[%s1561_s26 + $0x90] sm:$0xff] }
  0x5e   : > { %1149 = vmatpush1.bf16.msra.mxu0 %v1148_v7  ;;  %1209 = vmatpush1.bf16.msra.mxu1 %v1148_v7  ;;  %v1169_v30 = vpack.c.bf16 %v567_v29, %v566_v28  ;;  %v569_v32 = vld [vmem:[%s1561_s26 + $0x98] sm:$0xff]  ;;  %v570_v34 = vld [vmem:[%s1561_s26 + $0xa0] sm:$0xff]  ;;  %v571_v35 = vld [vmem:[%s1561_s26 + $0xa8] sm:$0xff] }
  0x5f   : > { %1150 = vmatprep.subr.bf16.mxu0 %v1340_v4  ;;  %1194 = vmatprep.subr.bf16.mxu1 %v1340_v4  ;;  %v1172_v33 = vpack.c.bf16 %v569_v32, %v568_v31  ;;  %v1175_v36 = vpack.c.bf16 %v571_v35, %v570_v34  ;;  %v572_v37 = vld [vmem:[%s1561_s26 + $0xb0] sm:$0xff]  ;;  %v573_v38 = vld [vmem:[%s1561_s26 + $0xb8] sm:$0xff]  ;;  %v574_v40 = vld [vmem:[%s1561_s26 + $0xc0] sm:$0xff] }
  0x60   : > { %v1178_v39 = vpack.c.bf16 %v573_v38, %v572_v37  ;;  %v575_v41 = vld [vmem:[%s1561_s26 + $0xc8] sm:$0xff]  ;;  %v576_v43 = vld [vmem:[%s1561_s26 + $0xd0] sm:$0xff]  ;;  %v577_v44 = vld [vmem:[%s1561_s26 + $0xd8] sm:$0xff] }
  0x61   : > { %v1181_v42 = vpack.c.bf16 %v575_v41, %v574_v40  ;;  %v1184_v45 = vpack.c.bf16 %v577_v44, %v576_v43  ;;  %v578_v46 = vld [vmem:[%s1561_s26 + $0xe0] sm:$0xff]  ;;  %v579_v47 = vld [vmem:[%s1561_s26 + $0xe8] sm:$0xff]  ;;  %v580_v49 = vld [vmem:[%s1561_s26 + $0xf0] sm:$0xff] }
  0x62   : > { %1152 = vmatpush1.bf16.msra.mxu0 %v1151_v10  ;;  %1210 = vmatpush1.bf16.msra.mxu1 %v1151_v10  ;;  %v1187_v48 = vpack.c.bf16 %v579_v47, %v578_v46  ;;  %v581_v50 = vld [vmem:[%s1561_s26 + $0xf8] sm:$0xff]  ;;  %v486_v52 = vld [vmem:[%s1573_s15] sm:$0xff]  ;;  %v488_v56 = vld [vmem:[%s1573_s15 + $0x10] sm:$0xff] }
  0x63   : > { %1153 = vmatprep.subr.bf16.mxu0 %v1340_v4  ;;  %1195 = vmatprep.subr.bf16.mxu1 %v1340_v4  ;;  %v1190_v51 = vpack.c.bf16 %v581_v50, %v580_v49  ;;  %v518_v53 = vld [vmem:[%s1573_s15 + $0x100] sm:$0xff]  ;;  %v489_v54 = vld [vmem:[%s1573_s15 + $0x18] sm:$0xff]  ;;  %v520_v57 = vld [vmem:[%s1573_s15 + $0x110] sm:$0xff] }
  0x64   : > { %v521_v55 = vld [vmem:[%s1573_s15 + $0x118] sm:$0xff]  ;;  %v491_v58 = vld [vmem:[%s1573_s15 + $0x28] sm:$0xff]  ;;  %v490_v60 = vld [vmem:[%s1573_s15 + $0x20] sm:$0xff] }
  0x65   : > { %v523_v59 = vld [vmem:[%s1573_s15 + $0x128] sm:$0xff]  ;;  %v522_v61 = vld [vmem:[%s1573_s15 + $0x120] sm:$0xff]  ;;  %v493_v62 = vld [vmem:[%s1573_s15 + $0x38] sm:$0xff] }
  0x66   : > { %1155 = vmatpush1.bf16.msra.mxu0 %v1154_v14  ;;  %1211 = vmatpush1.bf16.msra.mxu1 %v1154_v14  ;;  %v525_v63 = vld [vmem:[%s1573_s15 + $0x138] sm:$0xff]  ;;  %v492_v0 = vld [vmem:[%s1573_s15 + $0x30] sm:$0xff]  ;;  %v495_v2 = vld [vmem:[%s1573_s15 + $0x48] sm:$0xff] }
  0x67   : > { %1156 = vmatprep.subr.bf16.mxu0 %v1340_v4  ;;  %1196 = vmatprep.subr.bf16.mxu1 %v1340_v4  ;;  %v524_v1 = vld [vmem:[%s1573_s15 + $0x130] sm:$0xff]  ;;  %v527_v3 = vld [vmem:[%s1573_s15 + $0x148] sm:$0xff]  ;;  %v526_v5 = vld [vmem:[%s1573_s15 + $0x140] sm:$0xff] }
  0x68   : > { %v497_v6 = vld [vmem:[%s1573_s15 + $0x58] sm:$0xff]  ;;  %v496_v8 = vld [vmem:[%s1573_s15 + $0x50] sm:$0xff]  ;;  %v499_v10 = vld [vmem:[%s1573_s15 + $0x68] sm:$0xff] }
  0x69   : > { %v529_v7 = vld [vmem:[%s1573_s15 + $0x158] sm:$0xff]  ;;  %v528_v9 = vld [vmem:[%s1573_s15 + $0x150] sm:$0xff]  ;;  %v531_v11 = vld [vmem:[%s1573_s15 + $0x168] sm:$0xff] }
  0x6a   : > { %1158 = vmatpush1.bf16.msra.mxu0 %v1157_v18  ;;  %1212 = vmatpush1.bf16.msra.mxu1 %v1157_v18  ;;  %v498_v12 = vld [vmem:[%s1573_s15 + $0x60] sm:$0xff]  ;;  %v501_v14 = vld [vmem:[%s1573_s15 + $0x78] sm:$0xff]  ;;  %v500_v16 = vld [vmem:[%s1573_s15 + $0x70] sm:$0xff] }
  0x6b   : > { %1159 = vmatprep.subr.bf16.mxu0 %v1340_v4  ;;  %1197 = vmatprep.subr.bf16.mxu1 %v1340_v4  ;;  %v530_v13 = vld [vmem:[%s1573_s15 + $0x160] sm:$0xff]  ;;  %v533_v15 = vld [vmem:[%s1573_s15 + $0x178] sm:$0xff]  ;;  %v532_v17 = vld [vmem:[%s1573_s15 + $0x170] sm:$0xff] }
  0x6c   : > { %v503_v18 = vld [vmem:[%s1573_s15 + $0x88] sm:$0xff]  ;;  %v502_v20 = vld [vmem:[%s1573_s15 + $0x80] sm:$0xff]  ;;  %v505_v22 = vld [vmem:[%s1573_s15 + $0x98] sm:$0xff] }
  0x6d   : > { %v535_v19 = vld [vmem:[%s1573_s15 + $0x188] sm:$0xff]  ;;  %v537_v23 = vld [vmem:[%s1573_s15 + $0x198] sm:$0xff]  ;;  %v536_v25 = vld [vmem:[%s1573_s15 + $0x190] sm:$0xff] }
  0x6e   : > { %1161 = vmatpush1.bf16.msra.mxu0 %v1160_v21  ;;  %1213 = vmatpush1.bf16.msra.mxu1 %v1160_v21  ;;  %v534_v21 = vld [vmem:[%s1573_s15 + $0x180] sm:$0xff]  ;;  %v507_v26 = vld [vmem:[%s1573_s15 + $0xa8] sm:$0xff]  ;;  %v541_v31 = vld [vmem:[%s1573_s15 + $0x1b8] sm:$0xff] }
  0x6f   : > { %1162 = vmatprep.subr.bf16.mxu0 %v1340_v4  ;;  %1198 = vmatprep.subr.bf16.mxu1 %v1340_v4  ;;  %v506_v28 = vld [vmem:[%s1573_s15 + $0xa0] sm:$0xff]  ;;  %v508_v32 = vld [vmem:[%s1573_s15 + $0xb0] sm:$0xff]  ;;  %v511_v34 = vld [vmem:[%s1573_s15 + $0xc8] sm:$0xff] }
  0x70   : > { %v538_v29 = vld [vmem:[%s1573_s15 + $0x1a0] sm:$0xff]  ;;  %v543_v35 = vld [vmem:[%s1573_s15 + $0x1c8] sm:$0xff]  ;;  %v513_v38 = vld [vmem:[%s1573_s15 + $0xd8] sm:$0xff] }
  0x71   : > { %v542_v37 = vld [vmem:[%s1573_s15 + $0x1c0] sm:$0xff]  ;;  %v512_v40 = vld [vmem:[%s1573_s15 + $0xd0] sm:$0xff]  ;;  %v547_v43 = vld [vmem:[%s1573_s15 + $0x1e8] sm:$0xff] }
  0x72   : > { %1164 = vmatpush1.bf16.msra.mxu0 %v1163_v24  ;;  %1214 = vmatpush1.bf16.msra.mxu1 %v1163_v24  ;;  %v504_v24 = vld [vmem:[%s1573_s15 + $0x90] sm:$0xff]  ;;  %v514_v44 = vld [vmem:[%s1573_s15 + $0xe0] sm:$0xff]  ;;  %v517_v46 = vld [vmem:[%s1573_s15 + $0xf8] sm:$0xff] }
  0x73   : > { %1165 = vmatprep.subr.bf16.mxu0 %v1340_v4  ;;  %1199 = vmatprep.subr.bf16.mxu1 %v1340_v4  ;;  %v544_v41 = vld [vmem:[%s1573_s15 + $0x1d0] sm:$0xff]  ;;  %v549_v47 = vld [vmem:[%s1573_s15 + $0x1f8] sm:$0xff]  ;;  %v454_v50 = vld [vmem:[#allocation2] sm:$0xff] }
  0x74   : > { %v548_v49 = vld [vmem:[%s1573_s15 + $0x1f0] sm:$0xff] }
  0x76   : > { %1167 = vmatpush1.bf16.msra.mxu0 %v1166_v27  ;;  %1215 = vmatpush1.bf16.msra.mxu1 %v1166_v27  ;;  %v539_v27 = vld [vmem:[%s1573_s15 + $0x1a8] sm:$0xff] }
  0x77   : > { %1168 = vmatprep.subr.bf16.mxu0 %v1340_v4  ;;  %1200 = vmatprep.subr.bf16.mxu1 %v1340_v4 }
  0x7a   : > { %1170 = vmatpush1.bf16.msra.mxu0 %v1169_v30  ;;  %1216 = vmatpush1.bf16.msra.mxu1 %v1169_v30  ;;  %v509_v30 = vld [vmem:[%s1573_s15 + $0xb8] sm:$0xff] }
  0x7b   : > { %1171 = vmatprep.subr.bf16.mxu0 %v1340_v4  ;;  %1201 = vmatprep.subr.bf16.mxu1 %v1340_v4 }
  0x7e   : > { %1173 = vmatpush1.bf16.msra.mxu0 %v1172_v33  ;;  %1217 = vmatpush1.bf16.msra.mxu1 %v1172_v33  ;;  %v540_v33 = vld [vmem:[%s1573_s15 + $0x1b0] sm:$0xff] }
  0x7f   : > { %1174 = vmatprep.subr.bf16.mxu0 %v1340_v4  ;;  %1202 = vmatprep.subr.bf16.mxu1 %v1340_v4 }
  0x82   : > { %1176 = vmatpush1.bf16.msra.mxu0 %v1175_v36  ;;  %1218 = vmatpush1.bf16.msra.mxu1 %v1175_v36  ;;  %v510_v36 = vld [vmem:[%s1573_s15 + $0xc0] sm:$0xff] }
  0x83   : > { %1177 = vmatprep.subr.bf16.mxu0 %v1340_v4  ;;  %1203 = vmatprep.subr.bf16.mxu1 %v1340_v4 }
  0x86   : > { %1179 = vmatpush1.bf16.msra.mxu0 %v1178_v39  ;;  %1219 = vmatpush1.bf16.msra.mxu1 %v1178_v39  ;;  %v545_v39 = vld [vmem:[%s1573_s15 + $0x1d8] sm:$0xff] }
  0x87   : > { %1180 = vmatprep.subr.bf16.mxu0 %v1340_v4  ;;  %1204 = vmatprep.subr.bf16.mxu1 %v1340_v4 }
  0x8a   : > { %1182 = vmatpush1.bf16.msra.mxu0 %v1181_v42  ;;  %1220 = vmatpush1.bf16.msra.mxu1 %v1181_v42  ;;  %v515_v42 = vld [vmem:[%s1573_s15 + $0xe8] sm:$0xff] }
  0x8b   : > { %1183 = vmatprep.subr.bf16.mxu0 %v1340_v4  ;;  %1205 = vmatprep.subr.bf16.mxu1 %v1340_v4 }
  0x8e   : > { %1185 = vmatpush1.bf16.msra.mxu0 %v1184_v45  ;;  %1221 = vmatpush1.bf16.msra.mxu1 %v1184_v45  ;;  %v546_v45 = vld [vmem:[%s1573_s15 + $0x1e0] sm:$0xff] }
  0x8f   : > { %1186 = vmatprep.subr.bf16.mxu0 %v1340_v4  ;;  %1206 = vmatprep.subr.bf16.mxu1 %v1340_v4 }
  0x92   : > { %1188 = vmatpush1.bf16.msra.mxu0 %v1187_v48  ;;  %1222 = vmatpush1.bf16.msra.mxu1 %v1187_v48  ;;  %v516_v48 = vld [vmem:[%s1573_s15 + $0xf0] sm:$0xff] }
  0x93   : > { %1189 = vmatprep.subr.bf16.mxu0 %v1340_v4  ;;  %1207 = vmatprep.subr.bf16.mxu1 %v1340_v4  ;;  %v494_v4 = vld [vmem:[%s1573_s15 + $0x40] sm:$0xff] }
  0x96   : > { %1191 = vmatpush1.bf16.msra.mxu0 %v1190_v51  ;;  %1223 = vmatpush1.bf16.msra.mxu1 %v1190_v51  ;;  %v470_v51 = vld [vmem:[#allocation2 + $0x80] sm:$0xff] }
  0x99   : > { %647 = vmatmul.mubr.f32.vlgmr.msra.gmra.mrb[0].mxu0 %v486_v52  ;;  %727 = vmatmul.mubr.f32.vlgmr.msra.gmra.mrb[0].mxu1 %v518_v53 }
  0x9a   : > { %651 = vmatprep.mubr.f32.mxu0 %v489_v54  ;;  %731 = vmatprep.mubr.f32.mxu1 %v521_v55 }
  0x9d   : > { %652 = vmatmul.mubr.f32.gmra.mrb[2].mxu0 %v488_v56  ;;  %732 = vmatmul.mubr.f32.gmra.mrb[2].mxu1 %v520_v57 }
  0x9e   : > { %656 = vmatprep.mubr.f32.mxu0 %v491_v58  ;;  %736 = vmatprep.mubr.f32.mxu1 %v523_v59  ;;  %v455_v58 = vld [vmem:[#allocation2 + $0x8] sm:$0xff] }
  0x9f   : > { %v471_v59 = vld [vmem:[#allocation2 + $0x88] sm:$0xff] }
  0xa1   : > { %657 = vmatmul.mubr.f32.gmra.mrb[4].mxu0 %v490_v60  ;;  %737 = vmatmul.mubr.f32.gmra.mrb[4].mxu1 %v522_v61 }
  0xa2   : > { %661 = vmatprep.mubr.f32.mxu0 %v493_v62  ;;  %741 = vmatprep.mubr.f32.mxu1 %v525_v63 }
  0xa5   : > { %662 = vmatmul.mubr.f32.gmra.mrb[6].mxu0 %v492_v0  ;;  %742 = vmatmul.mubr.f32.gmra.mrb[6].mxu1 %v524_v1 }
  0xa6   : > { %666 = vmatprep.mubr.f32.mxu0 %v495_v2  ;;  %746 = vmatprep.mubr.f32.mxu1 %v527_v3  ;;  %v456_v2 = vld [vmem:[#allocation2 + $0x10] sm:$0xff] }
  0xa7   : > { %v472_v3 = vld [vmem:[#allocation2 + $0x90] sm:$0xff] }
  0xa9   : > { %667 = vmatmul.mubr.f32.gmra.mrb[8].mxu0 %v494_v4  ;;  %747 = vmatmul.mubr.f32.gmra.mrb[8].mxu1 %v526_v5 }
  0xaa   : > { %671 = vmatprep.mubr.f32.mxu0 %v497_v6  ;;  %751 = vmatprep.mubr.f32.mxu1 %v529_v7 }
  0xad   : > { %672 = vmatmul.mubr.f32.gmra.mrb[10].mxu0 %v496_v8  ;;  %752 = vmatmul.mubr.f32.gmra.mrb[10].mxu1 %v528_v9 }
  0xae   : > { %676 = vmatprep.mubr.f32.mxu0 %v499_v10  ;;  %756 = vmatprep.mubr.f32.mxu1 %v531_v11  ;;  %v457_v10 = vld [vmem:[#allocation2 + $0x18] sm:$0xff] }
  0xaf   : > { %v473_v11 = vld [vmem:[#allocation2 + $0x98] sm:$0xff] }
  0xb1   : > { %677 = vmatmul.mubr.f32.gmra.mrb[12].mxu0 %v498_v12  ;;  %757 = vmatmul.mubr.f32.gmra.mrb[12].mxu1 %v530_v13 }
  0xb2   : > { %681 = vmatprep.mubr.f32.mxu0 %v501_v14  ;;  %761 = vmatprep.mubr.f32.mxu1 %v533_v15 }
  0xb5   : > { %682 = vmatmul.mubr.f32.gmra.mrb[14].mxu0 %v500_v16  ;;  %762 = vmatmul.mubr.f32.gmra.mrb[14].mxu1 %v532_v17 }
  0xb6   : > { %686 = vmatprep.mubr.f32.mxu0 %v503_v18  ;;  %766 = vmatprep.mubr.f32.mxu1 %v535_v19  ;;  %v458_v18 = vld [vmem:[#allocation2 + $0x20] sm:$0xff] }
  0xb7   : > { %v474_v19 = vld [vmem:[#allocation2 + $0xa0] sm:$0xff] }
  0xb9   : > { %687 = vmatmul.mubr.f32.gmra.mrb[16].mxu0 %v502_v20  ;;  %767 = vmatmul.mubr.f32.gmra.mrb[16].mxu1 %v534_v21 }
  0xba   : > { %691 = vmatprep.mubr.f32.mxu0 %v505_v22  ;;  %771 = vmatprep.mubr.f32.mxu1 %v537_v23 }
  0xbd   : > { %692 = vmatmul.mubr.f32.gmra.mrb[18].mxu0 %v504_v24  ;;  %772 = vmatmul.mubr.f32.gmra.mrb[18].mxu1 %v536_v25 }
  0xbe   : > { %696 = vmatprep.mubr.f32.mxu0 %v507_v26  ;;  %776 = vmatprep.mubr.f32.mxu1 %v539_v27  ;;  %v459_v26 = vld [vmem:[#allocation2 + $0x28] sm:$0xff] }
  0xbf   : > { %v475_v27 = vld [vmem:[#allocation2 + $0xa8] sm:$0xff] }
  0xc1   : > { %697 = vmatmul.mubr.f32.gmra.mrb[20].mxu0 %v506_v28  ;;  %777 = vmatmul.mubr.f32.gmra.mrb[20].mxu1 %v538_v29 }
  0xc2   : > { %701 = vmatprep.mubr.f32.mxu0 %v509_v30  ;;  %781 = vmatprep.mubr.f32.mxu1 %v541_v31 }
  0xc5   : > { %702 = vmatmul.mubr.f32.gmra.mrb[22].mxu0 %v508_v32  ;;  %782 = vmatmul.mubr.f32.gmra.mrb[22].mxu1 %v540_v33 }
  0xc6   : > { %706 = vmatprep.mubr.f32.mxu0 %v511_v34  ;;  %786 = vmatprep.mubr.f32.mxu1 %v543_v35  ;;  %v460_v34 = vld [vmem:[#allocation2 + $0x30] sm:$0xff] }
  0xc7   : > { %v476_v35 = vld [vmem:[#allocation2 + $0xb0] sm:$0xff] }
  0xc9   : > { %707 = vmatmul.mubr.f32.gmra.mrb[24].mxu0 %v510_v36  ;;  %787 = vmatmul.mubr.f32.gmra.mrb[24].mxu1 %v542_v37 }
  0xca   : > { %711 = vmatprep.mubr.f32.mxu0 %v513_v38  ;;  %791 = vmatprep.mubr.f32.mxu1 %v545_v39 }
  0xcd   : > { %712 = vmatmul.mubr.f32.gmra.mrb[26].mxu0 %v512_v40  ;;  %792 = vmatmul.mubr.f32.gmra.mrb[26].mxu1 %v544_v41 }
  0xce   : > { %716 = vmatprep.mubr.f32.mxu0 %v515_v42  ;;  %796 = vmatprep.mubr.f32.mxu1 %v547_v43  ;;  %v461_v42 = vld [vmem:[#allocation2 + $0x38] sm:$0xff] }
  0xcf   : > { %v477_v43 = vld [vmem:[#allocation2 + $0xb8] sm:$0xff] }
  0xd1   : > { %717 = vmatmul.mubr.f32.gmra.mrb[28].mxu0 %v514_v44  ;;  %797 = vmatmul.mubr.f32.gmra.mrb[28].mxu1 %v546_v45 }
  0xd2   : > { %721 = vmatprep.mubr.f32.mxu0 %v517_v46  ;;  %801 = vmatprep.mubr.f32.mxu1 %v549_v47 }
  0xd5   : > { %722 = vmatmul.mubr.f32.gmra.mrb[30].mxu0 %v516_v48  ;;  %802 = vmatmul.mubr.f32.gmra.mrb[30].mxu1 %v548_v49 }
 0x16c   : > { %v648_v52 = vpop.f32.mrb[0].mxu0  ;;  %v728_v53 = vpop.f32.mrb[0].mxu1 }
 0x16d   : > { %v807_v54 = vadd.f32 %v648_v52, %v454_v50  ;;  %v823_v55 = vadd.f32 %v728_v53, %v470_v51  ;;  %v650_v56 = vpop.f32.mrb[1].mxu0  ;;  %v730_v57 = vpop.f32.mrb[1].mxu1  ;;  %v462_v50 = vld [vmem:[#allocation2 + $0x40] sm:$0xff] }
 0x16e   : > { %v478_v51 = vld [vmem:[#allocation2 + $0xc0] sm:$0xff] }
 0x16f   : > { %839 = vst [vmem:[#allocation2] sm:$0xff] %v807_v54  ;;  %855 = vst [vmem:[#allocation2 + $0x80] sm:$0xff] %v823_v55 }
 0x170   : > { %v653_v60 = vpop.f32.mrb[2].mxu0  ;;  %v733_v61 = vpop.f32.mrb[2].mxu1 }
 0x171   : > { %v808_v62 = vadd.f32 %v653_v60, %v455_v58  ;;  %v824_v63 = vadd.f32 %v733_v61, %v471_v59  ;;  %v655_v0 = vpop.f32.mrb[3].mxu0  ;;  %v735_v1 = vpop.f32.mrb[3].mxu1  ;;  %v463_v58 = vld [vmem:[#allocation2 + $0x48] sm:$0xff] }
 0x172   : > { %v479_v59 = vld [vmem:[#allocation2 + $0xc8] sm:$0xff] }
 0x173   : > { %840 = vst [vmem:[#allocation2 + $0x8] sm:$0xff] %v808_v62  ;;  %856 = vst [vmem:[#allocation2 + $0x88] sm:$0xff] %v824_v63 }
 0x174   : > { %v658_v4 = vpop.f32.mrb[4].mxu0  ;;  %v738_v5 = vpop.f32.mrb[4].mxu1 }
 0x175   : > { %v809_v6 = vadd.f32 %v658_v4, %v456_v2  ;;  %v825_v7 = vadd.f32 %v738_v5, %v472_v3  ;;  %v660_v8 = vpop.f32.mrb[5].mxu0  ;;  %v740_v9 = vpop.f32.mrb[5].mxu1  ;;  %v464_v2 = vld [vmem:[#allocation2 + $0x50] sm:$0xff] }
 0x176   : > { %v480_v3 = vld [vmem:[#allocation2 + $0xd0] sm:$0xff] }
 0x177   : > { %841 = vst [vmem:[#allocation2 + $0x10] sm:$0xff] %v809_v6  ;;  %857 = vst [vmem:[#allocation2 + $0x90] sm:$0xff] %v825_v7 }
 0x178   : > { %v663_v12 = vpop.f32.mrb[6].mxu0  ;;  %v743_v13 = vpop.f32.mrb[6].mxu1 }
 0x179   : > { %v810_v14 = vadd.f32 %v663_v12, %v457_v10  ;;  %v826_v15 = vadd.f32 %v743_v13, %v473_v11  ;;  %v665_v16 = vpop.f32.mrb[7].mxu0  ;;  %v745_v17 = vpop.f32.mrb[7].mxu1  ;;  %v465_v10 = vld [vmem:[#allocation2 + $0x58] sm:$0xff] }
 0x17a   : > { %v481_v11 = vld [vmem:[#allocation2 + $0xd8] sm:$0xff] }
 0x17b   : > { %842 = vst [vmem:[#allocation2 + $0x18] sm:$0xff] %v810_v14  ;;  %858 = vst [vmem:[#allocation2 + $0x98] sm:$0xff] %v826_v15 }
 0x17c   : > { %v668_v20 = vpop.f32.mrb[8].mxu0  ;;  %v748_v21 = vpop.f32.mrb[8].mxu1 }
 0x17d   : > { %v811_v22 = vadd.f32 %v668_v20, %v458_v18  ;;  %v827_v23 = vadd.f32 %v748_v21, %v474_v19  ;;  %v670_v24 = vpop.f32.mrb[9].mxu0  ;;  %v750_v25 = vpop.f32.mrb[9].mxu1  ;;  %v466_v18 = vld [vmem:[#allocation2 + $0x60] sm:$0xff] }
 0x17e   : > { %v482_v19 = vld [vmem:[#allocation2 + $0xe0] sm:$0xff] }
 0x17f   : > { %843 = vst [vmem:[#allocation2 + $0x20] sm:$0xff] %v811_v22  ;;  %859 = vst [vmem:[#allocation2 + $0xa0] sm:$0xff] %v827_v23 }
 0x180   : > { %v673_v28 = vpop.f32.mrb[10].mxu0  ;;  %v753_v29 = vpop.f32.mrb[10].mxu1 }
 0x181   : > { %v812_v30 = vadd.f32 %v673_v28, %v459_v26  ;;  %v828_v31 = vadd.f32 %v753_v29, %v475_v27  ;;  %v675_v32 = vpop.f32.mrb[11].mxu0  ;;  %v755_v33 = vpop.f32.mrb[11].mxu1  ;;  %v467_v26 = vld [vmem:[#allocation2 + $0x68] sm:$0xff] }
 0x182   : > { %v483_v27 = vld [vmem:[#allocation2 + $0xe8] sm:$0xff] }
 0x183   : > { %844 = vst [vmem:[#allocation2 + $0x28] sm:$0xff] %v812_v30  ;;  %860 = vst [vmem:[#allocation2 + $0xa8] sm:$0xff] %v828_v31 }
 0x184   : > { %v678_v36 = vpop.f32.mrb[12].mxu0  ;;  %v758_v37 = vpop.f32.mrb[12].mxu1 }
 0x185   : > { %v813_v38 = vadd.f32 %v678_v36, %v460_v34  ;;  %v829_v39 = vadd.f32 %v758_v37, %v476_v35  ;;  %v680_v40 = vpop.f32.mrb[13].mxu0  ;;  %v760_v41 = vpop.f32.mrb[13].mxu1  ;;  %v468_v34 = vld [vmem:[#allocation2 + $0x70] sm:$0xff] }
 0x186   : > { %v484_v35 = vld [vmem:[#allocation2 + $0xf0] sm:$0xff] }
 0x187   : > { %845 = vst [vmem:[#allocation2 + $0x30] sm:$0xff] %v813_v38  ;;  %861 = vst [vmem:[#allocation2 + $0xb0] sm:$0xff] %v829_v39 }
 0x188   : > { %v683_v44 = vpop.f32.mrb[14].mxu0  ;;  %v763_v45 = vpop.f32.mrb[14].mxu1 }
 0x189   : > { %v814_v46 = vadd.f32 %v683_v44, %v461_v42  ;;  %v830_v47 = vadd.f32 %v763_v45, %v477_v43  ;;  %v685_v48 = vpop.f32.mrb[15].mxu0  ;;  %v765_v49 = vpop.f32.mrb[15].mxu1  ;;  %v469_v42 = vld [vmem:[#allocation2 + $0x78] sm:$0xff] }
 0x18a   : > { %v485_v43 = vld [vmem:[#allocation2 + $0xf8] sm:$0xff] }
 0x18b   : > { %846 = vst [vmem:[#allocation2 + $0x38] sm:$0xff] %v814_v46  ;;  %862 = vst [vmem:[#allocation2 + $0xb8] sm:$0xff] %v830_v47 }
 0x18c   : > { %v688_v52 = vpop.f32.mrb[16].mxu0  ;;  %v768_v53 = vpop.f32.mrb[16].mxu1 }
 0x18d   : > { %v815_v54 = vadd.f32 %v688_v52, %v462_v50  ;;  %v831_v55 = vadd.f32 %v768_v53, %v478_v51  ;;  %v690_v56 = vpop.f32.mrb[17].mxu0  ;;  %v770_v57 = vpop.f32.mrb[17].mxu1  ;;  %v875_v50 = vld [vmem:[#allocation2] sm:$0xff] (!%p1141_p13)  ;;  %v876_v52 = vld [vmem:[#allocation2 + $0x8] sm:$0xff] (!%p1141_p13) }
 0x18e   : > { %v907_v51 = vld [vmem:[%s1566_s30] sm:$0xff] (!%p1141_p13)  ;;  %v909_v56 = vld [vmem:[%s1566_s30 + $0x10] sm:$0xff] (!%p1141_p13) }
 0x18f   : > { %847 = vst [vmem:[#allocation2 + $0x40] sm:$0xff] %v815_v54  ;;  %863 = vst [vmem:[#allocation2 + $0xc0] sm:$0xff] %v831_v55  ;;  %v939_v53 = vadd.f32 (!%p1141_p13), %v907_v51, %v875_v50  ;;  %v908_v54 = vld [vmem:[%s1566_s30 + $0x8] sm:$0xff] (!%p1141_p13)  ;;  %v877_v55 = vld [vmem:[#allocation2 + $0x10] sm:$0xff] (!%p1141_p13) }
 0x190   : > { %v693_v60 = vpop.f32.mrb[18].mxu0  ;;  %v773_v61 = vpop.f32.mrb[18].mxu1  ;;  %v940_v57 = vadd.f32 (!%p1141_p13), %v908_v54, %v876_v52  ;;  %v928_v50 = vld [vmem:[%s1566_s30 + $0xa8] sm:$0xff] (!%p1141_p13)  ;;  %v897_v51 = vld [vmem:[#allocation2 + $0xb0] sm:$0xff] (!%p1141_p13) }
 0x191   : > { %v816_v62 = vadd.f32 %v693_v60, %v463_v58  ;;  %v832_v63 = vadd.f32 %v773_v61, %v479_v59  ;;  %v695_v0 = vpop.f32.mrb[19].mxu0  ;;  %v775_v1 = vpop.f32.mrb[19].mxu1  ;;  %v941_v58 = vadd.f32 (!%p1141_p13), %v909_v56, %v877_v55  ;;  %v878_v59 = vld [vmem:[#allocation2 + $0x18] sm:$0xff] (!%p1141_p13)  ;;  %v879_v61 = vld [vmem:[#allocation2 + $0x20] sm:$0xff] (!%p1141_p13)  ;;  %971 = vst [vmem:[%s1571_s5] sm:$0xff] (!%p1141_p13), %v939_v53  ;;  %v929_v53 = vld [vmem:[%s1566_s30 + $0xb0] sm:$0xff] (!%p1141_p13) }
 0x192   : > { %v910_v60 = vld [vmem:[%s1566_s30 + $0x18] sm:$0xff] (!%p1141_p13)  ;;  %v880_v0 = vld [vmem:[#allocation2 + $0x28] sm:$0xff] (!%p1141_p13)  ;;  %972 = vst [vmem:[%s1571_s5 + $0x8] sm:$0xff] (!%p1141_p13), %v940_v57  ;;  %v961_v56 = vadd.f32 (!%p1141_p13), %v929_v53, %v897_v51 }
 0x193   : > { %848 = vst [vmem:[#allocation2 + $0x48] sm:$0xff] %v816_v62  ;;  %864 = vst [vmem:[#allocation2 + $0xc8] sm:$0xff] %v832_v63  ;;  %v942_v62 = vadd.f32 (!%p1141_p13), %v910_v60, %v878_v59  ;;  %v911_v63 = vld [vmem:[%s1566_s30 + $0x20] sm:$0xff] (!%p1141_p13)  ;;  %v912_v1 = vld [vmem:[%s1566_s30 + $0x28] sm:$0xff] (!%p1141_p13) }
 0x194   : > { %v698_v4 = vpop.f32.mrb[20].mxu0  ;;  %v778_v5 = vpop.f32.mrb[20].mxu1  ;;  %973 = vst [vmem:[%s1571_s5 + $0x10] sm:$0xff] (!%p1141_p13), %v941_v58  ;;  %v898_v54 = vld [vmem:[#allocation2 + $0xb8] sm:$0xff] (!%p1141_p13)  ;;  %v931_v59 = vld [vmem:[%s1566_s30 + $0xc0] sm:$0xff] (!%p1141_p13)  ;;  %993 = vst [vmem:[%s1571_s5 + $0xb0] sm:$0xff] (!%p1141_p13), %v961_v56 }
 0x195   : > { %v817_v6 = vadd.f32 %v698_v4, %v464_v2  ;;  %v833_v7 = vadd.f32 %v778_v5, %v480_v3  ;;  %v700_v8 = vpop.f32.mrb[21].mxu0  ;;  %v780_v9 = vpop.f32.mrb[21].mxu1  ;;  %v943_v2 = vadd.f32 (!%p1141_p13), %v911_v63, %v879_v61  ;;  %v944_v3 = vadd.f32 (!%p1141_p13), %v912_v1, %v880_v0  ;;  %v881_v4 = vld [vmem:[#allocation2 + $0x30] sm:$0xff] (!%p1141_p13)  ;;  %974 = vst [vmem:[%s1571_s5 + $0x18] sm:$0xff] (!%p1141_p13), %v942_v62  ;;  %v930_v55 = vld [vmem:[%s1566_s30 + $0xb8] sm:$0xff] (!%p1141_p13)  ;;  %v932_v62 = vld [vmem:[%s1566_s30 + $0xc8] sm:$0xff] (!%p1141_p13) }
 0x196   : > { %v913_v5 = vld [vmem:[%s1566_s30 + $0x30] sm:$0xff] (!%p1141_p13)  ;;  %v914_v8 = vld [vmem:[%s1566_s30 + $0x38] sm:$0xff] (!%p1141_p13)  ;;  %v883_v9 = vld [vmem:[#allocation2 + $0x40] sm:$0xff] (!%p1141_p13)  ;;  %v962_v57 = vadd.f32 (!%p1141_p13), %v930_v55, %v898_v54 }
 0x197   : > { %849 = vst [vmem:[#allocation2 + $0x50] sm:$0xff] %v817_v6  ;;  %865 = vst [vmem:[#allocation2 + $0xd0] sm:$0xff] %v833_v7  ;;  %v882_v6 = vld [vmem:[#allocation2 + $0x38] sm:$0xff] (!%p1141_p13)  ;;  %v945_v7 = vadd.f32 (!%p1141_p13), %v913_v5, %v881_v4  ;;  %v899_v58 = vld [vmem:[#allocation2 + $0xc0] sm:$0xff] (!%p1141_p13) }
 0x198   : > { %v703_v12 = vpop.f32.mrb[22].mxu0  ;;  %v783_v13 = vpop.f32.mrb[22].mxu1  ;;  %975 = vst [vmem:[%s1571_s5 + $0x20] sm:$0xff] (!%p1141_p13), %v943_v2  ;;  %976 = vst [vmem:[%s1571_s5 + $0x28] sm:$0xff] (!%p1141_p13), %v944_v3  ;;  %v963_v61 = vadd.f32 (!%p1141_p13), %v931_v59, %v899_v58  ;;  %v933_v0 = vld [vmem:[%s1566_s30 + $0xd0] sm:$0xff] (!%p1141_p13)  ;;  %v934_v4 = vld [vmem:[%s1566_s30 + $0xd8] sm:$0xff] (!%p1141_p13) }
 0x199   : > { %v818_v14 = vadd.f32 %v703_v12, %v465_v10  ;;  %v834_v15 = vadd.f32 %v783_v13, %v481_v11  ;;  %v705_v16 = vpop.f32.mrb[23].mxu0  ;;  %v785_v17 = vpop.f32.mrb[23].mxu1  ;;  %v915_v10 = vld [vmem:[%s1566_s30 + $0x40] sm:$0xff] (!%p1141_p13)  ;;  %v946_v11 = vadd.f32 (!%p1141_p13), %v914_v8, %v882_v6  ;;  %977 = vst [vmem:[%s1571_s5 + $0x30] sm:$0xff] (!%p1141_p13), %v945_v7  ;;  %994 = vst [vmem:[%s1571_s5 + $0xb8] sm:$0xff] (!%p1141_p13), %v962_v57 }
 0x19a   : > { %v947_v12 = vadd.f32 (!%p1141_p13), %v915_v10, %v883_v9  ;;  %v884_v13 = vld [vmem:[#allocation2 + $0x48] sm:$0xff] (!%p1141_p13)  ;;  %v917_v17 = vld [vmem:[%s1566_s30 + $0x50] sm:$0xff] (!%p1141_p13)  ;;  %995 = vst [vmem:[%s1571_s5 + $0xc0] sm:$0xff] (!%p1141_p13), %v963_v61  ;;  %v935_v7 = vld [vmem:[%s1566_s30 + $0xe0] sm:$0xff] (!%p1141_p13) }
 0x19b   : > { %850 = vst [vmem:[#allocation2 + $0x58] sm:$0xff] %v818_v14  ;;  %866 = vst [vmem:[#allocation2 + $0xd8] sm:$0xff] %v834_v15  ;;  %v916_v14 = vld [vmem:[%s1566_s30 + $0x48] sm:$0xff] (!%p1141_p13) }
 0x19c   : > { %v708_v20 = vpop.f32.mrb[24].mxu0  ;;  %v788_v21 = vpop.f32.mrb[24].mxu1  ;;  %v948_v16 = vadd.f32 (!%p1141_p13), %v916_v14, %v884_v13  ;;  %978 = vst [vmem:[%s1571_s5 + $0x38] sm:$0xff] (!%p1141_p13), %v946_v11  ;;  %979 = vst [vmem:[%s1571_s5 + $0x40] sm:$0xff] (!%p1141_p13), %v947_v12  ;;  %v900_v60 = vld [vmem:[#allocation2 + $0xc8] sm:$0xff] (!%p1141_p13)  ;;  %v937_v13 = vld [vmem:[%s1566_s30 + $0xf0] sm:$0xff] (!%p1141_p13) }
 0x19d   : > { %v819_v22 = vadd.f32 %v708_v20, %v466_v18  ;;  %v835_v23 = vadd.f32 %v788_v21, %v482_v19  ;;  %v710_v24 = vpop.f32.mrb[25].mxu0  ;;  %v790_v25 = vpop.f32.mrb[25].mxu1  ;;  %v918_v19 = vld [vmem:[%s1566_s30 + $0x58] sm:$0xff] (!%p1141_p13)  ;;  %v964_v1 = vadd.f32 (!%p1141_p13), %v932_v62, %v900_v60  ;;  %v936_v9 = vld [vmem:[%s1566_s30 + $0xe8] sm:$0xff] (!%p1141_p13) }
 0x19e   : > { %v885_v15 = vld [vmem:[#allocation2 + $0x50] sm:$0xff] (!%p1141_p13)  ;;  %980 = vst [vmem:[%s1571_s5 + $0x48] sm:$0xff] (!%p1141_p13), %v948_v16  ;;  %v938_v16 = vld [vmem:[%s1566_s30 + $0xf8] sm:$0xff] (!%p1141_p13) }
 0x19f   : > { %851 = vst [vmem:[#allocation2 + $0x60] sm:$0xff] %v819_v22  ;;  %867 = vst [vmem:[#allocation2 + $0xe0] sm:$0xff] %v835_v23  ;;  %v949_v20 = vadd.f32 (!%p1141_p13), %v917_v17, %v885_v15  ;;  %v919_v23 = vld [vmem:[%s1566_s30 + $0x60] sm:$0xff] (!%p1141_p13)  ;;  %v901_v63 = vld [vmem:[#allocation2 + $0xd0] sm:$0xff] (!%p1141_p13) }
 0x1a0   : > { %v713_v28 = vpop.f32.mrb[26].mxu0  ;;  %v793_v29 = vpop.f32.mrb[26].mxu1  ;;  %v965_v2 = vadd.f32 (!%p1141_p13), %v933_v0, %v901_v63  ;;  %996 = vst [vmem:[%s1571_s5 + $0xc8] sm:$0xff] (!%p1141_p13), %v964_v1 }
 0x1a1   : > { %v820_v30 = vadd.f32 %v713_v28, %v467_v26  ;;  %v836_v31 = vadd.f32 %v793_v29, %v483_v27  ;;  %v715_v32 = vpop.f32.mrb[27].mxu0  ;;  %v795_v33 = vpop.f32.mrb[27].mxu1  ;;  %v920_v26 = vld [vmem:[%s1566_s30 + $0x68] sm:$0xff] (!%p1141_p13)  ;;  %v921_v28 = vld [vmem:[%s1566_s30 + $0x70] sm:$0xff] (!%p1141_p13)  ;;  %981 = vst [vmem:[%s1571_s5 + $0x50] sm:$0xff] (!%p1141_p13), %v949_v20 }
 0x1a2   : > { %v886_v18 = vld [vmem:[#allocation2 + $0x58] sm:$0xff] (!%p1141_p13)  ;;  %v891_v33 = vld [vmem:[#allocation2 + $0x80] sm:$0xff] (!%p1141_p13)  ;;  %997 = vst [vmem:[%s1571_s5 + $0xd0] sm:$0xff] (!%p1141_p13), %v965_v2 }
 0x1a3   : > { %852 = vst [vmem:[#allocation2 + $0x68] sm:$0xff] %v820_v30  ;;  %868 = vst [vmem:[#allocation2 + $0xe8] sm:$0xff] %v836_v31  ;;  %v950_v21 = vadd.f32 (!%p1141_p13), %v918_v19, %v886_v18  ;;  %v922_v32 = vld [vmem:[%s1566_s30 + $0x78] sm:$0xff] (!%p1141_p13) }
 0x1a4   : > { %v718_v36 = vpop.f32.mrb[28].mxu0  ;;  %v798_v37 = vpop.f32.mrb[28].mxu1  ;;  %v902_v3 = vld [vmem:[#allocation2 + $0xd8] sm:$0xff] (!%p1141_p13) }
 0x1a5   : > { %v821_v38 = vadd.f32 %v718_v36, %v468_v34  ;;  %v837_v39 = vadd.f32 %v798_v37, %v484_v35  ;;  %v720_v40 = vpop.f32.mrb[29].mxu0  ;;  %v800_v41 = vpop.f32.mrb[29].mxu1  ;;  %874 = sbr.rel (%p1141_p13) target bundleno = 439 (0x1b7), region = 63  ;;  %982 = vst [vmem:[%s1571_s5 + $0x58] sm:$0xff] (!%p1141_p13), %v950_v21  ;;  %v923_v35 = vld [vmem:[%s1566_s30 + $0x80] sm:$0xff] (!%p1141_p13)  ;;  %v892_v36 = vld [vmem:[#allocation2 + $0x88] sm:$0xff] (!%p1141_p13)  ;;  %v966_v6 = vadd.f32 (!%p1141_p13), %v934_v4, %v902_v3 }
 0x1a6   : > { %v887_v22 = vld [vmem:[#allocation2 + $0x60] sm:$0xff] (!%p1141_p13)  ;;  %v924_v37 = vld [vmem:[%s1566_s30 + $0x88] sm:$0xff] (!%p1141_p13)  ;;  %v893_v40 = vld [vmem:[#allocation2 + $0x90] sm:$0xff] (!%p1141_p13) }
 0x1a7   : > { %853 = vst [vmem:[#allocation2 + $0x70] sm:$0xff] %v821_v38  ;;  %869 = vst [vmem:[#allocation2 + $0xf0] sm:$0xff] %v837_v39  ;;  %v951_v25 = vadd.f32 (!%p1141_p13), %v919_v23, %v887_v22  ;;  %v955_v38 = vadd.f32 (!%p1141_p13), %v923_v35, %v891_v33  ;;  %v956_v39 = vadd.f32 (!%p1141_p13), %v924_v37, %v892_v36  ;;  %v925_v41 = vld [vmem:[%s1566_s30 + $0x90] sm:$0xff] (!%p1141_p13)  ;;  %v903_v5 = vld [vmem:[#allocation2 + $0xe0] sm:$0xff] (!%p1141_p13) }
 0x1a8   : > { %v723_v44 = vpop.f32.mrb[30].mxu0  ;;  %v803_v45 = vpop.f32.mrb[30].mxu1  ;;  %v967_v10 = vadd.f32 (!%p1141_p13), %v935_v7, %v903_v5  ;;  %998 = vst [vmem:[%s1571_s5 + $0xd8] sm:$0xff] (!%p1141_p13), %v966_v6 }
 0x1a9   : > { %v822_v46 = vadd.f32 %v723_v44, %v469_v42  ;;  %v838_v47 = vadd.f32 %v803_v45, %v485_v43  ;;  %v725_v48 = vpop.f32.mrb[31].mxu0  ;;  %v805_v49 = vpop.f32.mrb[31].mxu1  ;;  %983 = vst [vmem:[%s1571_s5 + $0x60] sm:$0xff] (!%p1141_p13), %v951_v25  ;;  %v894_v42 = vld [vmem:[#allocation2 + $0x98] sm:$0xff] (!%p1141_p13)  ;;  %v957_v43 = vadd.f32 (!%p1141_p13), %v925_v41, %v893_v40  ;;  %v895_v45 = vld [vmem:[#allocation2 + $0xa0] sm:$0xff] (!%p1141_p13)  ;;  %987 = vst [vmem:[%s1571_s5 + $0x80] sm:$0xff] (!%p1141_p13), %v955_v38 }
 0x1aa   : > { %v888_v24 = vld [vmem:[#allocation2 + $0x68] sm:$0xff] (!%p1141_p13)  ;;  %v926_v44 = vld [vmem:[%s1566_s30 + $0x98] sm:$0xff] (!%p1141_p13)  ;;  %988 = vst [vmem:[%s1571_s5 + $0x88] sm:$0xff] (!%p1141_p13), %v956_v39  ;;  %999 = vst [vmem:[%s1571_s5 + $0xe0] sm:$0xff] (!%p1141_p13), %v967_v10 }
 0x1ab   : > { %854 = vst [vmem:[#allocation2 + $0x78] sm:$0xff] %v822_v46  ;;  %870 = vst [vmem:[#allocation2 + $0xf8] sm:$0xff] %v838_v47  ;;  %v952_v29 = vadd.f32 (!%p1141_p13), %v920_v26, %v888_v24  ;;  %v927_v46 = vld [vmem:[%s1566_s30 + $0xa0] sm:$0xff] (!%p1141_p13)  ;;  %v958_v47 = vadd.f32 (!%p1141_p13), %v926_v44, %v894_v42  ;;  %v896_v49 = vld [vmem:[#allocation2 + $0xa8] sm:$0xff] (!%p1141_p13) }
 0x1ac   : > { %v959_v48 = vadd.f32 %v927_v46, %v895_v45  ;;  %989 = vst [vmem:[%s1571_s5 + $0x90] sm:$0xff] %v957_v43  ;;  %v960_v52 = vadd.f32 %v928_v50, %v896_v49  ;;  %v904_v8 = vld [vmem:[#allocation2 + $0xe8] sm:$0xff] }
 0x1ad   : > { %984 = vst [vmem:[%s1571_s5 + $0x68] sm:$0xff] %v952_v29  ;;  %990 = vst [vmem:[%s1571_s5 + $0x98] sm:$0xff] %v958_v47  ;;  %v968_v11 = vadd.f32 %v936_v9, %v904_v8 }
 0x1ae   : > { %v889_v27 = vld [vmem:[#allocation2 + $0x70] sm:$0xff]  ;;  %991 = vst [vmem:[%s1571_s5 + $0xa0] sm:$0xff] %v959_v48  ;;  %992 = vst [vmem:[%s1571_s5 + $0xa8] sm:$0xff] %v960_v52 }
 0x1af   : > { %v953_v30 = vadd.f32 %v921_v28, %v889_v27  ;;  %v905_v12 = vld [vmem:[#allocation2 + $0xf0] sm:$0xff]  ;;  %1000 = vst [vmem:[%s1571_s5 + $0xe8] sm:$0xff] %v968_v11 }
 0x1b0   : > { %v969_v15 = vadd.f32 %v937_v13, %v905_v12 }
 0x1b1   : > { %985 = vst [vmem:[%s1571_s5 + $0x70] sm:$0xff] %v953_v30 }
 0x1b2   : > { %v890_v31 = vld [vmem:[#allocation2 + $0x78] sm:$0xff]  ;;  %1001 = vst [vmem:[%s1571_s5 + $0xf0] sm:$0xff] %v969_v15 }
 0x1b3   : > { %v954_v34 = vadd.f32 %v922_v32, %v890_v31  ;;  %v906_v14 = vld [vmem:[#allocation2 + $0xf8] sm:$0xff] }
 0x1b4   : > { %v970_v17 = vadd.f32 %v938_v16, %v906_v14 }
 0x1b5   : > { %986 = vst [vmem:[%s1571_s5 + $0x78] sm:$0xff] %v954_v34 }
 0x1b6   : > { %1002 = vst [vmem:[%s1571_s5 + $0xf8] sm:$0xff] %v970_v17 }
 0x1b7 PF: > { %s13_s18 = sadd.s32 1, %s1337_s18   ;;  %s1794_s12 = smov %s1317_s13 }
 0x1b8   : > { %p10_p0 = scmp.ge.s32.totalorder %s13_s18, 12   ;;  %s1795_s13 = smov %s1412_s25 }
 0x1b9   : > { %s1796_s14 = smov %s1329_s16  ;;  %s1797_s15 = smov %s1333_s17 }
 0x1ba   : > { %s1798_s16 = smov %s1801_s19  ;;  %s1799_s17 = smov %s1805_s20 }
 0x1bb   :  { %12 = sbr.rel (!%p10_p0) target bundleno = 4 (0x4), region = 104 }

</bundles_post_ra>
